<compile_context>
chip_gen: v7x
topology: tpu7x:2x2x1
jax: 0.10.0
libtpu: 0.0.40
codegen_flags: <defaults>
</compile_context>

<pallas_src>
import jax
import jax.numpy as jnp
from jax import lax
from jax.experimental import pallas as pl
from jax.experimental.pallas import tpu as pltpu


def _conv_phase_stats_kernel(xp_ref, wp_ref, b_ref, conv_ref, psum_ref, psq_ref):
    # xp_ref  : (1, H+2, W+2, Cin)   zero-padded ORIGINAL-resolution input (f32)
    # wp_ref  : (4, 4, Cin, TCO)     polyphase-folded weights [phase=2*py+px, tap=2*dy+dx]
    # b_ref   : (1, TCO)             conv bias (padded channels are zero)
    # conv_ref: (1, 4, H, W, TCO)    conv+bias output, phase-planar, bf16
    # psum_ref: (1, 8, TCO)          row 0 = per-channel sum of (conv+bias)           (f32)
    # psq_ref : (1, 8, TCO)          row 0 = per-channel sum of (conv-before-bias)^2  (f32)
    _, _, H, W, TCO = conv_ref.shape
    Cin = xp_ref.shape[3]

    bias = b_ref[...]                                    # (1, TCO)
    s_acc = jnp.zeros((1, TCO), jnp.float32)
    q_acc = jnp.zeros((1, TCO), jnp.float32)

    # 4 output parities; each is a 2x2 conv over the small padded input.
    for py in range(2):
        for px in range(2):
            p = 2 * py + px
            acc0 = jnp.zeros((H * W, TCO), jnp.float32)
            for dy in range(2):
                for dx in range(2):
                    win = xp_ref[0, py + dy:py + dy + H, px + dx:px + dx + W, :]
                    win = win.reshape(H * W, Cin)
                    acc0 = acc0 + jnp.dot(win, wp_ref[p, 2 * dy + dx],
                                          preferred_element_type=jnp.float32)
            # bias-shifted sum-of-squares reduces cancellation in the one-pass variance
            q_acc = q_acc + jnp.sum(acc0 * acc0, axis=0, keepdims=True)
            acc = acc0 + bias
            s_acc = s_acc + jnp.sum(acc, axis=0, keepdims=True)
            conv_ref[0, p] = acc.reshape(H, W, TCO).astype(conv_ref.dtype)

    psum_ref[0] = jnp.broadcast_to(s_acc, (8, TCO))
    psq_ref[0] = jnp.broadcast_to(q_acc, (8, TCO))


def _bn_relu_kernel(y_ref, scale_ref, shift_ref, out_ref):
    # Fused BatchNorm (folded to per-channel scale/shift) + ReLU; bf16 in, f32 math/out.
    y = y_ref[...].astype(jnp.float32)
    out_ref[...] = jnp.maximum(y * scale_ref[0, :] + shift_ref[0, :], 0.0)


def up_conv_forward(x_nchw, w_oihw, b, gamma, beta, eps=1e-5):
    N, Cin, H, W = x_nchw.shape
    Cout = w_oihw.shape[0]
    TCO = 128                                    # lane-dense Cout tile
    Coutp = ((Cout + TCO - 1) // TCO) * TCO
    n_ct = Coutp // TCO
    Hp, Wp = H + 2, W + 2

    # ---- glue: layout + tiny weight folding (no upsampled tensor is ever built) ----
    x = jnp.transpose(x_nchw, (0, 2, 3, 1)).astype(jnp.float32)        # NHWC
    xp = jnp.pad(x, ((0, 0), (1, 1), (1, 1), (0, 0)))                  # pad ORIGINAL res

    w_hwio = jnp.transpose(w_oihw, (2, 3, 1, 0)).astype(jnp.float32)   # (3,3,Cin,Cout)
    # Row/col folding matrix: parity 0 -> taps {k0 | k1+k2}, parity 1 -> {k0+k1 | k2}
    R = jnp.array([[[1., 0., 0.], [0., 1., 1.]],
                   [[1., 1., 0.], [0., 0., 1.]]], dtype=jnp.float32)   # (parity, tap, k)
    wp = jnp.einsum('pak,qbl,klco->pqabco', R, R, w_hwio)              # (2,2,2,2,Cin,Cout)
    wp = wp.reshape(4, 4, Cin, Cout)
    wp = jnp.pad(wp, ((0, 0), (0, 0), (0, 0), (0, Coutp - Cout)))      # lane-pad Cout

    b_pad = jnp.pad(b.astype(jnp.float32), (0, Coutp - Cout))
    g_pad = jnp.pad(gamma.astype(jnp.float32), (0, Coutp - Cout))
    be_pad = jnp.pad(beta.astype(jnp.float32), (0, Coutp - Cout))
    b2 = b_pad.reshape(1, Coutp)

    cparams = pltpu.CompilerParams(
        dimension_semantics=("parallel", "parallel"),
        vmem_limit_bytes=64 * 1024 * 1024,
    )

    # ---- Pallas kernel 1: polyphase conv + bias + partial BN statistics ----
    conv_out, psum, psq = pl.pallas_call(
        _conv_phase_stats_kernel,
        out_shape=(
            jax.ShapeDtypeStruct((N, 4, H, W, Coutp), jnp.bfloat16),
            jax.ShapeDtypeStruct((N, 8, Coutp), jnp.float32),
            jax.ShapeDtypeStruct((N, 8, Coutp), jnp.float32),
        ),
        grid=(N, n_ct),
        in_specs=[
            pl.BlockSpec((1, Hp, Wp, Cin), lambda n, j: (n, 0, 0, 0)),
            pl.BlockSpec((4, 4, Cin, TCO), lambda n, j: (0, 0, 0, j)),
            pl.BlockSpec((1, TCO), lambda n, j: (0, j)),
        ],
        out_specs=(
            pl.BlockSpec((1, 4, H, W, TCO), lambda n, j: (n, 0, 0, 0, j)),
            pl.BlockSpec((1, 8, TCO), lambda n, j: (n, 0, j)),
            pl.BlockSpec((1, 8, TCO), lambda n, j: (n, 0, j)),
        ),
        compiler_params=cparams,
    )(xp, wp, b2)

    # ---- fold BN (training-mode batch stats, biased variance) into scale/shift ----
    cnt = jnp.float32(N * 4 * H * W)                   # = N * (2H) * (2W)
    ch_sum = jnp.sum(psum[:, 0, :], axis=0)            # (Coutp,)
    ch_q = jnp.sum(psq[:, 0, :], axis=0)               # sum of (conv - bias)^2
    mean = ch_sum / cnt
    var = ch_q / cnt - (mean - b_pad) ** 2             # Var(x) = E[(x-b)^2] - (E[x]-b)^2
    scale = g_pad / jnp.sqrt(var + eps)
    shift = be_pad - mean * scale
    scale2 = scale.reshape(1, Coutp).astype(jnp.float32)
    shift2 = shift.reshape(1, Coutp).astype(jnp.float32)

    # ---- Pallas kernel 2: fused BN + ReLU ----
    y = pl.pallas_call(
        _bn_relu_kernel,
        out_shape=jax.ShapeDtypeStruct((N, 4, H, W, Coutp), jnp.float32),
        grid=(N, n_ct),
        in_specs=[
            pl.BlockSpec((1, 4, H, W, TCO), lambda n, j: (n, 0, 0, 0, j)),
            pl.BlockSpec((1, TCO), lambda n, j: (0, j)),
            pl.BlockSpec((1, TCO), lambda n, j: (0, j)),
        ],
        out_specs=pl.BlockSpec((1, 4, H, W, TCO), lambda n, j: (n, 0, 0, 0, j)),
        compiler_params=cparams,
    )(conv_out, scale2, shift2)

    # ---- de-interleave phases + drop channel padding, fused into the NCHW transpose ----
    y = y[..., :Cout]                                  # (N, 4, H, W, Cout)
    y = y.reshape(N, 2, 2, H, W, Cout)                 # (n, py, px, r, s, o)
    y = jnp.transpose(y, (0, 5, 3, 1, 4, 2))           # (n, o, r, py, s, px)
    return y.reshape(N, Cout, 2 * H, 2 * W)


def up_conv_reference(x_nchw, w_oihw, b, gamma, beta, eps=1e-5):
    # Pure-JAX reference matching the PyTorch forward (training-mode BN).
    up = jnp.repeat(jnp.repeat(x_nchw, 2, axis=2), 2, axis=3)
    conv = lax.conv_general_dilated(
        up, w_oihw, window_strides=(1, 1), padding=((1, 1), (1, 1)),
        dimension_numbers=("NCHW", "OIHW", "NCHW"))
    conv = conv + b[None, :, None, None]
    mean = conv.mean(axis=(0, 2, 3))
    var = conv.var(axis=(0, 2, 3))
    norm = (conv - mean[None, :, None, None]) / jnp.sqrt(var + eps)[None, :, None, None]
    return jnp.maximum(norm * gamma[None, :, None, None] + beta[None, :, None, None], 0.0)


if __name__ == "__main__":
    N, CH_IN, CH_OUT, H, W = 2, 4, 8, 16, 16

    key = jax.random.PRNGKey(0)
    kx, kw, kb, kg, kbe = jax.random.split(key, 5)
    x = jax.random.normal(kx, (N, CH_IN, H, W), dtype=jnp.float32)
    conv_w = 0.1 * jax.random.normal(kw, (CH_OUT, CH_IN, 3, 3), dtype=jnp.float32)
    conv_b = 0.1 * jax.random.normal(kb, (CH_OUT,), dtype=jnp.float32)
    bn_gamma = 1.0 + 0.1 * jax.random.normal(kg, (CH_OUT,), dtype=jnp.float32)
    bn_beta = 0.1 * jax.random.normal(kbe, (CH_OUT,), dtype=jnp.float32)

    fwd = jax.jit(up_conv_forward)
    out = jax.block_until_ready(fwd(x, conv_w, conv_b, bn_gamma, bn_beta))
    ref = up_conv_reference(x, conv_w, conv_b, bn_gamma, bn_beta)

    assert out.shape == (N, CH_OUT, 2 * H, 2 * W), out.shape
    err = float(jnp.max(jnp.abs(out - ref)))
    # conv intermediate is stored in bf16 (HBM-traffic optimization) -> 2e-2 tolerance.
    assert err < 2e-2, f"mismatch vs reference: max abs err = {err}"
    print("KERNEL_OK")
</pallas_src>

<mosaic_0001>
module attributes {stable_mosaic.version = 11 : i64} {
  func.func @_conv_phase_stats_kernel(%arg0: i32, %arg1: i32, %arg2: memref<1x18x18x4xf32, #tpu.memory_space<vmem>>, %arg3: memref<4x4x4x128xf32, #tpu.memory_space<vmem>>, %arg4: memref<1x128xf32, #tpu.memory_space<vmem>>, %arg5: memref<1x4x16x16x128xbf16, #tpu.memory_space<vmem>>, %arg6: memref<1x8x128xf32, #tpu.memory_space<vmem>>, %arg7: memref<1x8x128xf32, #tpu.memory_space<vmem>>) attributes {dimension_semantics = [#tpu.dimension_semantics<parallel>, #tpu.dimension_semantics<parallel>], iteration_bounds = array<i64: 2, 1>, scalar_prefetch = 0 : i64, scratch_operands = 0 : i64, tpu.core_type = #tpu.core_type<tc>, window_params = [{transform_indices = @transform_0, window_bounds = array<i64: 1, 18, 18, 4>}, {transform_indices = @transform_1, window_bounds = array<i64: 4, 4, 4, 128>}, {transform_indices = @transform_2, window_bounds = array<i64: 1, 128>}, {transform_indices = @transform_3, window_bounds = array<i64: 1, 4, 16, 16, 128>}, {transform_indices = @transform_4, window_bounds = array<i64: 1, 8, 128>}, {transform_indices = @transform_5, window_bounds = array<i64: 1, 8, 128>}]} {
    %c0 = arith.constant 0 : index
    %c0_0 = arith.constant 0 : index
    %0 = vector.load %arg4[%c0, %c0_0] : memref<1x128xf32, #tpu.memory_space<vmem>>, vector<1x128xf32>
    %cst = arith.constant 0.000000e+00 : f32
    %1 = vector.broadcast %cst : f32 to vector<1x128xf32>
    %cst_1 = arith.constant 0.000000e+00 : f32
    %2 = vector.broadcast %cst_1 : f32 to vector<1x128xf32>
    %cst_2 = arith.constant 0.000000e+00 : f32
    %3 = vector.broadcast %cst_2 : f32 to vector<256x128xf32>
    %c0_3 = arith.constant 0 : index
    %c0_4 = arith.constant 0 : index
    %c0_5 = arith.constant 0 : index
    %c0_6 = arith.constant 0 : index
    %4 = vector.load %arg2[%c0_3, %c0_4, %c0_5, %c0_6] : memref<1x18x18x4xf32, #tpu.memory_space<vmem>>, vector<1x16x16x4xf32>
    %5 = vector.shape_cast %4 : vector<1x16x16x4xf32> to vector<16x16x4xf32>
    %6 = vector.shape_cast %5 : vector<16x16x4xf32> to vector<256x4xf32>
    %c0_7 = arith.constant 0 : index
    %c0_8 = arith.constant 0 : index
    %c0_9 = arith.constant 0 : index
    %c0_10 = arith.constant 0 : index
    %7 = vector.load %arg3[%c0_7, %c0_8, %c0_9, %c0_10] : memref<4x4x4x128xf32, #tpu.memory_space<vmem>>, vector<1x1x4x128xf32>
    %8 = vector.shape_cast %7 : vector<1x1x4x128xf32> to vector<4x128xf32>
    %cst_11 = arith.constant dense<0.000000e+00> : vector<256x128xf32>
    %9 = tpu.matmul %6, %8, %cst_11 {dimension_numbers = #tpu.dot_dimension_numbers<[1], [0], [0], [1], [0, 0, 1, 1], [], []>} : vector<256x4xf32>, vector<4x128xf32>, vector<256x128xf32> -> vector<256x128xf32>
    %10 = arith.addf %3, %9 : vector<256x128xf32>
    %c0_12 = arith.constant 0 : index
    %c0_13 = arith.constant 0 : index
    %c1 = arith.constant 1 : index
    %c0_14 = arith.constant 0 : index
    %11 = vector.load %arg2[%c0_12, %c0_13, %c1, %c0_14] : memref<1x18x18x4xf32, #tpu.memory_space<vmem>>, vector<1x16x16x4xf32>
    %12 = vector.shape_cast %11 : vector<1x16x16x4xf32> to vector<16x16x4xf32>
    %13 = vector.shape_cast %12 : vector<16x16x4xf32> to vector<256x4xf32>
    %c0_15 = arith.constant 0 : index
    %c1_16 = arith.constant 1 : index
    %c0_17 = arith.constant 0 : index
    %c0_18 = arith.constant 0 : index
    %14 = vector.load %arg3[%c0_15, %c1_16, %c0_17, %c0_18] : memref<4x4x4x128xf32, #tpu.memory_space<vmem>>, vector<1x1x4x128xf32>
    %15 = vector.shape_cast %14 : vector<1x1x4x128xf32> to vector<4x128xf32>
    %cst_19 = arith.constant dense<0.000000e+00> : vector<256x128xf32>
    %16 = tpu.matmul %13, %15, %cst_19 {dimension_numbers = #tpu.dot_dimension_numbers<[1], [0], [0], [1], [0, 0, 1, 1], [], []>} : vector<256x4xf32>, vector<4x128xf32>, vector<256x128xf32> -> vector<256x128xf32>
    %17 = arith.addf %10, %16 : vector<256x128xf32>
    %c0_20 = arith.constant 0 : index
    %c1_21 = arith.constant 1 : index
    %c0_22 = arith.constant 0 : index
    %c0_23 = arith.constant 0 : index
    %18 = vector.load %arg2[%c0_20, %c1_21, %c0_22, %c0_23] : memref<1x18x18x4xf32, #tpu.memory_space<vmem>>, vector<1x16x16x4xf32>
    %19 = vector.shape_cast %18 : vector<1x16x16x4xf32> to vector<16x16x4xf32>
    %20 = vector.shape_cast %19 : vector<16x16x4xf32> to vector<256x4xf32>
    %c0_24 = arith.constant 0 : index
    %c2 = arith.constant 2 : index
    %c0_25 = arith.constant 0 : index
    %c0_26 = arith.constant 0 : index
    %21 = vector.load %arg3[%c0_24, %c2, %c0_25, %c0_26] : memref<4x4x4x128xf32, #tpu.memory_space<vmem>>, vector<1x1x4x128xf32>
    %22 = vector.shape_cast %21 : vector<1x1x4x128xf32> to vector<4x128xf32>
    %cst_27 = arith.constant dense<0.000000e+00> : vector<256x128xf32>
    %23 = tpu.matmul %20, %22, %cst_27 {dimension_numbers = #tpu.dot_dimension_numbers<[1], [0], [0], [1], [0, 0, 1, 1], [], []>} : vector<256x4xf32>, vector<4x128xf32>, vector<256x128xf32> -> vector<256x128xf32>
    %24 = arith.addf %17, %23 : vector<256x128xf32>
    %c0_28 = arith.constant 0 : index
    %c1_29 = arith.constant 1 : index
    %c1_30 = arith.constant 1 : index
    %c0_31 = arith.constant 0 : index
    %25 = vector.load %arg2[%c0_28, %c1_29, %c1_30, %c0_31] : memref<1x18x18x4xf32, #tpu.memory_space<vmem>>, vector<1x16x16x4xf32>
    %26 = vector.shape_cast %25 : vector<1x16x16x4xf32> to vector<16x16x4xf32>
    %27 = vector.shape_cast %26 : vector<16x16x4xf32> to vector<256x4xf32>
    %c0_32 = arith.constant 0 : index
    %c3 = arith.constant 3 : index
    %c0_33 = arith.constant 0 : index
    %c0_34 = arith.constant 0 : index
    %28 = vector.load %arg3[%c0_32, %c3, %c0_33, %c0_34] : memref<4x4x4x128xf32, #tpu.memory_space<vmem>>, vector<1x1x4x128xf32>
    %29 = vector.shape_cast %28 : vector<1x1x4x128xf32> to vector<4x128xf32>
    %cst_35 = arith.constant dense<0.000000e+00> : vector<256x128xf32>
    %30 = tpu.matmul %27, %29, %cst_35 {dimension_numbers = #tpu.dot_dimension_numbers<[1], [0], [0], [1], [0, 0, 1, 1], [], []>} : vector<256x4xf32>, vector<4x128xf32>, vector<256x128xf32> -> vector<256x128xf32>
    %31 = arith.addf %24, %30 : vector<256x128xf32>
    %32 = arith.mulf %31, %31 : vector<256x128xf32>
    %cst_36 = arith.constant dense<0.000000e+00> : vector<128xf32>
    %33 = vector.multi_reduction <add>, %32, %cst_36 [0] : vector<256x128xf32> to vector<128xf32>
    %34 = vector.shape_cast %33 : vector<128xf32> to vector<1x128xf32>
    %35 = arith.addf %2, %34 : vector<1x128xf32>
    %36 = vector.broadcast %0 : vector<1x128xf32> to vector<256x128xf32>
    %37 = arith.addf %31, %36 : vector<256x128xf32>
    %cst_37 = arith.constant dense<0.000000e+00> : vector<128xf32>
    %38 = vector.multi_reduction <add>, %37, %cst_37 [0] : vector<256x128xf32> to vector<128xf32>
    %39 = vector.shape_cast %38 : vector<128xf32> to vector<1x128xf32>
    %40 = arith.addf %1, %39 : vector<1x128xf32>
    %41 = vector.shape_cast %37 : vector<256x128xf32> to vector<16x16x128xf32>
    %42 = arith.truncf %41 : vector<16x16x128xf32> to vector<16x16x128xbf16>
    %c0_38 = arith.constant 0 : index
    %c0_39 = arith.constant 0 : index
    %c0_40 = arith.constant 0 : index
    %c0_41 = arith.constant 0 : index
    %c0_42 = arith.constant 0 : index
    %43 = vector.load %arg5[%c0_38, %c0_39, %c0_40, %c0_41, %c0_42] : memref<1x4x16x16x128xbf16, #tpu.memory_space<vmem>>, vector<1x1x16x16x128xbf16>
    %44 = vector.shape_cast %43 : vector<1x1x16x16x128xbf16> to vector<16x16x128xbf16>
    %45 = vector.shape_cast %42 : vector<16x16x128xbf16> to vector<1x1x16x16x128xbf16>
    tpu.vector_store %arg5[%c0_38, %c0_39, %c0_40, %c0_41, %c0_42], %45 {strides = array<i32>} : memref<1x4x16x16x128xbf16, #tpu.memory_space<vmem>>, vector<1x1x16x16x128xbf16>,
    %cst_43 = arith.constant 0.000000e+00 : f32
    %46 = vector.broadcast %cst_43 : f32 to vector<256x128xf32>
    %c0_44 = arith.constant 0 : index
    %c0_45 = arith.constant 0 : index
    %c1_46 = arith.constant 1 : index
    %c0_47 = arith.constant 0 : index
    %47 = vector.load %arg2[%c0_44, %c0_45, %c1_46, %c0_47] : memref<1x18x18x4xf32, #tpu.memory_space<vmem>>, vector<1x16x16x4xf32>
    %48 = vector.shape_cast %47 : vector<1x16x16x4xf32> to vector<16x16x4xf32>
    %49 = vector.shape_cast %48 : vector<16x16x4xf32> to vector<256x4xf32>
    %c1_48 = arith.constant 1 : index
    %c0_49 = arith.constant 0 : index
    %c0_50 = arith.constant 0 : index
    %c0_51 = arith.constant 0 : index
    %50 = vector.load %arg3[%c1_48, %c0_49, %c0_50, %c0_51] : memref<4x4x4x128xf32, #tpu.memory_space<vmem>>, vector<1x1x4x128xf32>
    %51 = vector.shape_cast %50 : vector<1x1x4x128xf32> to vector<4x128xf32>
    %cst_52 = arith.constant dense<0.000000e+00> : vector<256x128xf32>
    %52 = tpu.matmul %49, %51, %cst_52 {dimension_numbers = #tpu.dot_dimension_numbers<[1], [0], [0], [1], [0, 0, 1, 1], [], []>} : vector<256x4xf32>, vector<4x128xf32>, vector<256x128xf32> -> vector<256x128xf32>
    %53 = arith.addf %46, %52 : vector<256x128xf32>
    %c0_53 = arith.constant 0 : index
    %c0_54 = arith.constant 0 : index
    %c2_55 = arith.constant 2 : index
    %c0_56 = arith.constant 0 : index
    %54 = vector.load %arg2[%c0_53, %c0_54, %c2_55, %c0_56] : memref<1x18x18x4xf32, #tpu.memory_space<vmem>>, vector<1x16x16x4xf32>
    %55 = vector.shape_cast %54 : vector<1x16x16x4xf32> to vector<16x16x4xf32>
    %56 = vector.shape_cast %55 : vector<16x16x4xf32> to vector<256x4xf32>
    %c1_57 = arith.constant 1 : index
    %c1_58 = arith.constant 1 : index
    %c0_59 = arith.constant 0 : index
    %c0_60 = arith.constant 0 : index
    %57 = vector.load %arg3[%c1_57, %c1_58, %c0_59, %c0_60] : memref<4x4x4x128xf32, #tpu.memory_space<vmem>>, vector<1x1x4x128xf32>
    %58 = vector.shape_cast %57 : vector<1x1x4x128xf32> to vector<4x128xf32>
    %cst_61 = arith.constant dense<0.000000e+00> : vector<256x128xf32>
    %59 = tpu.matmul %56, %58, %cst_61 {dimension_numbers = #tpu.dot_dimension_numbers<[1], [0], [0], [1], [0, 0, 1, 1], [], []>} : vector<256x4xf32>, vector<4x128xf32>, vector<256x128xf32> -> vector<256x128xf32>
    %60 = arith.addf %53, %59 : vector<256x128xf32>
    %c0_62 = arith.constant 0 : index
    %c1_63 = arith.constant 1 : index
    %c1_64 = arith.constant 1 : index
    %c0_65 = arith.constant 0 : index
    %61 = vector.load %arg2[%c0_62, %c1_63, %c1_64, %c0_65] : memref<1x18x18x4xf32, #tpu.memory_space<vmem>>, vector<1x16x16x4xf32>
    %62 = vector.shape_cast %61 : vector<1x16x16x4xf32> to vector<16x16x4xf32>
    %63 = vector.shape_cast %62 : vector<16x16x4xf32> to vector<256x4xf32>
    %c1_66 = arith.constant 1 : index
    %c2_67 = arith.constant 2 : index
    %c0_68 = arith.constant 0 : index
    %c0_69 = arith.constant 0 : index
    %64 = vector.load %arg3[%c1_66, %c2_67, %c0_68, %c0_69] : memref<4x4x4x128xf32, #tpu.memory_space<vmem>>, vector<1x1x4x128xf32>
    %65 = vector.shape_cast %64 : vector<1x1x4x128xf32> to vector<4x128xf32>
    %cst_70 = arith.constant dense<0.000000e+00> : vector<256x128xf32>
    %66 = tpu.matmul %63, %65, %cst_70 {dimension_numbers = #tpu.dot_dimension_numbers<[1], [0], [0], [1], [0, 0, 1, 1], [], []>} : vector<256x4xf32>, vector<4x128xf32>, vector<256x128xf32> -> vector<256x128xf32>
    %67 = arith.addf %60, %66 : vector<256x128xf32>
    %c0_71 = arith.constant 0 : index
    %c1_72 = arith.constant 1 : index
    %c2_73 = arith.constant 2 : index
    %c0_74 = arith.constant 0 : index
    %68 = vector.load %arg2[%c0_71, %c1_72, %c2_73, %c0_74] : memref<1x18x18x4xf32, #tpu.memory_space<vmem>>, vector<1x16x16x4xf32>
    %69 = vector.shape_cast %68 : vector<1x16x16x4xf32> to vector<16x16x4xf32>
    %70 = vector.shape_cast %69 : vector<16x16x4xf32> to vector<256x4xf32>
    %c1_75 = arith.constant 1 : index
    %c3_76 = arith.constant 3 : index
    %c0_77 = arith.constant 0 : index
    %c0_78 = arith.constant 0 : index
    %71 = vector.load %arg3[%c1_75, %c3_76, %c0_77, %c0_78] : memref<4x4x4x128xf32, #tpu.memory_space<vmem>>, vector<1x1x4x128xf32>
    %72 = vector.shape_cast %71 : vector<1x1x4x128xf32> to vector<4x128xf32>
    %cst_79 = arith.constant dense<0.000000e+00> : vector<256x128xf32>
    %73 = tpu.matmul %70, %72, %cst_79 {dimension_numbers = #tpu.dot_dimension_numbers<[1], [0], [0], [1], [0, 0, 1, 1], [], []>} : vector<256x4xf32>, vector<4x128xf32>, vector<256x128xf32> -> vector<256x128xf32>
    %74 = arith.addf %67, %73 : vector<256x128xf32>
    %75 = arith.mulf %74, %74 : vector<256x128xf32>
    %cst_80 = arith.constant dense<0.000000e+00> : vector<128xf32>
    %76 = vector.multi_reduction <add>, %75, %cst_80 [0] : vector<256x128xf32> to vector<128xf32>
    %77 = vector.shape_cast %76 : vector<128xf32> to vector<1x128xf32>
    %78 = arith.addf %35, %77 : vector<1x128xf32>
    %79 = vector.broadcast %0 : vector<1x128xf32> to vector<256x128xf32>
    %80 = arith.addf %74, %79 : vector<256x128xf32>
    %cst_81 = arith.constant dense<0.000000e+00> : vector<128xf32>
    %81 = vector.multi_reduction <add>, %80, %cst_81 [0] : vector<256x128xf32> to vector<128xf32>
    %82 = vector.shape_cast %81 : vector<128xf32> to vector<1x128xf32>
    %83 = arith.addf %40, %82 : vector<1x128xf32>
    %84 = vector.shape_cast %80 : vector<256x128xf32> to vector<16x16x128xf32>
    %85 = arith.truncf %84 : vector<16x16x128xf32> to vector<16x16x128xbf16>
    %c0_82 = arith.constant 0 : index
    %c1_83 = arith.constant 1 : index
    %c0_84 = arith.constant 0 : index
    %c0_85 = arith.constant 0 : index
    %c0_86 = arith.constant 0 : index
    %86 = vector.load %arg5[%c0_82, %c1_83, %c0_84, %c0_85, %c0_86] : memref<1x4x16x16x128xbf16, #tpu.memory_space<vmem>>, vector<1x1x16x16x128xbf16>
    %87 = vector.shape_cast %86 : vector<1x1x16x16x128xbf16> to vector<16x16x128xbf16>
    %88 = vector.shape_cast %85 : vector<16x16x128xbf16> to vector<1x1x16x16x128xbf16>
    tpu.vector_store %arg5[%c0_82, %c1_83, %c0_84, %c0_85, %c0_86], %88 {strides = array<i32>} : memref<1x4x16x16x128xbf16, #tpu.memory_space<vmem>>, vector<1x1x16x16x128xbf16>,
    %cst_87 = arith.constant 0.000000e+00 : f32
    %89 = vector.broadcast %cst_87 : f32 to vector<256x128xf32>
    %c0_88 = arith.constant 0 : index
    %c1_89 = arith.constant 1 : index
    %c0_90 = arith.constant 0 : index
    %c0_91 = arith.constant 0 : index
    %90 = vector.load %arg2[%c0_88, %c1_89, %c0_90, %c0_91] : memref<1x18x18x4xf32, #tpu.memory_space<vmem>>, vector<1x16x16x4xf32>
    %91 = vector.shape_cast %90 : vector<1x16x16x4xf32> to vector<16x16x4xf32>
    %92 = vector.shape_cast %91 : vector<16x16x4xf32> to vector<256x4xf32>
    %c2_92 = arith.constant 2 : index
    %c0_93 = arith.constant 0 : index
    %c0_94 = arith.constant 0 : index
    %c0_95 = arith.constant 0 : index
    %93 = vector.load %arg3[%c2_92, %c0_93, %c0_94, %c0_95] : memref<4x4x4x128xf32, #tpu.memory_space<vmem>>, vector<1x1x4x128xf32>
    %94 = vector.shape_cast %93 : vector<1x1x4x128xf32> to vector<4x128xf32>
    %cst_96 = arith.constant dense<0.000000e+00> : vector<256x128xf32>
    %95 = tpu.matmul %92, %94, %cst_96 {dimension_numbers = #tpu.dot_dimension_numbers<[1], [0], [0], [1], [0, 0, 1, 1], [], []>} : vector<256x4xf32>, vector<4x128xf32>, vector<256x128xf32> -> vector<256x128xf32>
    %96 = arith.addf %89, %95 : vector<256x128xf32>
    %c0_97 = arith.constant 0 : index
    %c1_98 = arith.constant 1 : index
    %c1_99 = arith.constant 1 : index
    %c0_100 = arith.constant 0 : index
    %97 = vector.load %arg2[%c0_97, %c1_98, %c1_99, %c0_100] : memref<1x18x18x4xf32, #tpu.memory_space<vmem>>, vector<1x16x16x4xf32>
    %98 = vector.shape_cast %97 : vector<1x16x16x4xf32> to vector<16x16x4xf32>
    %99 = vector.shape_cast %98 : vector<16x16x4xf32> to vector<256x4xf32>
    %c2_101 = arith.constant 2 : index
    %c1_102 = arith.constant 1 : index
    %c0_103 = arith.constant 0 : index
    %c0_104 = arith.constant 0 : index
    %100 = vector.load %arg3[%c2_101, %c1_102, %c0_103, %c0_104] : memref<4x4x4x128xf32, #tpu.memory_space<vmem>>, vector<1x1x4x128xf32>
    %101 = vector.shape_cast %100 : vector<1x1x4x128xf32> to vector<4x128xf32>
    %cst_105 = arith.constant dense<0.000000e+00> : vector<256x128xf32>
    %102 = tpu.matmul %99, %101, %cst_105 {dimension_numbers = #tpu.dot_dimension_numbers<[1], [0], [0], [1], [0, 0, 1, 1], [], []>} : vector<256x4xf32>, vector<4x128xf32>, vector<256x128xf32> -> vector<256x128xf32>
    %103 = arith.addf %96, %102 : vector<256x128xf32>
    %c0_106 = arith.constant 0 : index
    %c2_107 = arith.constant 2 : index
    %c0_108 = arith.constant 0 : index
    %c0_109 = arith.constant 0 : index
    %104 = vector.load %arg2[%c0_106, %c2_107, %c0_108, %c0_109] : memref<1x18x18x4xf32, #tpu.memory_space<vmem>>, vector<1x16x16x4xf32>
    %105 = vector.shape_cast %104 : vector<1x16x16x4xf32> to vector<16x16x4xf32>
    %106 = vector.shape_cast %105 : vector<16x16x4xf32> to vector<256x4xf32>
    %c2_110 = arith.constant 2 : index
    %c2_111 = arith.constant 2 : index
    %c0_112 = arith.constant 0 : index
    %c0_113 = arith.constant 0 : index
    %107 = vector.load %arg3[%c2_110, %c2_111, %c0_112, %c0_113] : memref<4x4x4x128xf32, #tpu.memory_space<vmem>>, vector<1x1x4x128xf32>
    %108 = vector.shape_cast %107 : vector<1x1x4x128xf32> to vector<4x128xf32>
    %cst_114 = arith.constant dense<0.000000e+00> : vector<256x128xf32>
    %109 = tpu.matmul %106, %108, %cst_114 {dimension_numbers = #tpu.dot_dimension_numbers<[1], [0], [0], [1], [0, 0, 1, 1], [], []>} : vector<256x4xf32>, vector<4x128xf32>, vector<256x128xf32> -> vector<256x128xf32>
    %110 = arith.addf %103, %109 : vector<256x128xf32>
    %c0_115 = arith.constant 0 : index
    %c2_116 = arith.constant 2 : index
    %c1_117 = arith.constant 1 : index
    %c0_118 = arith.constant 0 : index
    %111 = vector.load %arg2[%c0_115, %c2_116, %c1_117, %c0_118] : memref<1x18x18x4xf32, #tpu.memory_space<vmem>>, vector<1x16x16x4xf32>
    %112 = vector.shape_cast %111 : vector<1x16x16x4xf32> to vector<16x16x4xf32>
    %113 = vector.shape_cast %112 : vector<16x16x4xf32> to vector<256x4xf32>
    %c2_119 = arith.constant 2 : index
    %c3_120 = arith.constant 3 : index
    %c0_121 = arith.constant 0 : index
    %c0_122 = arith.constant 0 : index
    %114 = vector.load %arg3[%c2_119, %c3_120, %c0_121, %c0_122] : memref<4x4x4x128xf32, #tpu.memory_space<vmem>>, vector<1x1x4x128xf32>
    %115 = vector.shape_cast %114 : vector<1x1x4x128xf32> to vector<4x128xf32>
    %cst_123 = arith.constant dense<0.000000e+00> : vector<256x128xf32>
    %116 = tpu.matmul %113, %115, %cst_123 {dimension_numbers = #tpu.dot_dimension_numbers<[1], [0], [0], [1], [0, 0, 1, 1], [], []>} : vector<256x4xf32>, vector<4x128xf32>, vector<256x128xf32> -> vector<256x128xf32>
    %117 = arith.addf %110, %116 : vector<256x128xf32>
    %118 = arith.mulf %117, %117 : vector<256x128xf32>
    %cst_124 = arith.constant dense<0.000000e+00> : vector<128xf32>
    %119 = vector.multi_reduction <add>, %118, %cst_124 [0] : vector<256x128xf32> to vector<128xf32>
    %120 = vector.shape_cast %119 : vector<128xf32> to vector<1x128xf32>
    %121 = arith.addf %78, %120 : vector<1x128xf32>
    %122 = vector.broadcast %0 : vector<1x128xf32> to vector<256x128xf32>
    %123 = arith.addf %117, %122 : vector<256x128xf32>
    %cst_125 = arith.constant dense<0.000000e+00> : vector<128xf32>
    %124 = vector.multi_reduction <add>, %123, %cst_125 [0] : vector<256x128xf32> to vector<128xf32>
    %125 = vector.shape_cast %124 : vector<128xf32> to vector<1x128xf32>
    %126 = arith.addf %83, %125 : vector<1x128xf32>
    %127 = vector.shape_cast %123 : vector<256x128xf32> to vector<16x16x128xf32>
    %128 = arith.truncf %127 : vector<16x16x128xf32> to vector<16x16x128xbf16>
    %c0_126 = arith.constant 0 : index
    %c2_127 = arith.constant 2 : index
    %c0_128 = arith.constant 0 : index
    %c0_129 = arith.constant 0 : index
    %c0_130 = arith.constant 0 : index
    %129 = vector.load %arg5[%c0_126, %c2_127, %c0_128, %c0_129, %c0_130] : memref<1x4x16x16x128xbf16, #tpu.memory_space<vmem>>, vector<1x1x16x16x128xbf16>
    %130 = vector.shape_cast %129 : vector<1x1x16x16x128xbf16> to vector<16x16x128xbf16>
    %131 = vector.shape_cast %128 : vector<16x16x128xbf16> to vector<1x1x16x16x128xbf16>
    tpu.vector_store %arg5[%c0_126, %c2_127, %c0_128, %c0_129, %c0_130], %131 {strides = array<i32>} : memref<1x4x16x16x128xbf16, #tpu.memory_space<vmem>>, vector<1x1x16x16x128xbf16>,
    %cst_131 = arith.constant 0.000000e+00 : f32
    %132 = vector.broadcast %cst_131 : f32 to vector<256x128xf32>
    %c0_132 = arith.constant 0 : index
    %c1_133 = arith.constant 1 : index
    %c1_134 = arith.constant 1 : index
    %c0_135 = arith.constant 0 : index
    %133 = vector.load %arg2[%c0_132, %c1_133, %c1_134, %c0_135] : memref<1x18x18x4xf32, #tpu.memory_space<vmem>>, vector<1x16x16x4xf32>
    %134 = vector.shape_cast %133 : vector<1x16x16x4xf32> to vector<16x16x4xf32>
    %135 = vector.shape_cast %134 : vector<16x16x4xf32> to vector<256x4xf32>
    %c3_136 = arith.constant 3 : index
    %c0_137 = arith.constant 0 : index
    %c0_138 = arith.constant 0 : index
    %c0_139 = arith.constant 0 : index
    %136 = vector.load %arg3[%c3_136, %c0_137, %c0_138, %c0_139] : memref<4x4x4x128xf32, #tpu.memory_space<vmem>>, vector<1x1x4x128xf32>
    %137 = vector.shape_cast %136 : vector<1x1x4x128xf32> to vector<4x128xf32>
    %cst_140 = arith.constant dense<0.000000e+00> : vector<256x128xf32>
    %138 = tpu.matmul %135, %137, %cst_140 {dimension_numbers = #tpu.dot_dimension_numbers<[1], [0], [0], [1], [0, 0, 1, 1], [], []>} : vector<256x4xf32>, vector<4x128xf32>, vector<256x128xf32> -> vector<256x128xf32>
    %139 = arith.addf %132, %138 : vector<256x128xf32>
    %c0_141 = arith.constant 0 : index
    %c1_142 = arith.constant 1 : index
    %c2_143 = arith.constant 2 : index
    %c0_144 = arith.constant 0 : index
    %140 = vector.load %arg2[%c0_141, %c1_142, %c2_143, %c0_144] : memref<1x18x18x4xf32, #tpu.memory_space<vmem>>, vector<1x16x16x4xf32>
    %141 = vector.shape_cast %140 : vector<1x16x16x4xf32> to vector<16x16x4xf32>
    %142 = vector.shape_cast %141 : vector<16x16x4xf32> to vector<256x4xf32>
    %c3_145 = arith.constant 3 : index
    %c1_146 = arith.constant 1 : index
    %c0_147 = arith.constant 0 : index
    %c0_148 = arith.constant 0 : index
    %143 = vector.load %arg3[%c3_145, %c1_146, %c0_147, %c0_148] : memref<4x4x4x128xf32, #tpu.memory_space<vmem>>, vector<1x1x4x128xf32>
    %144 = vector.shape_cast %143 : vector<1x1x4x128xf32> to vector<4x128xf32>
    %cst_149 = arith.constant dense<0.000000e+00> : vector<256x128xf32>
    %145 = tpu.matmul %142, %144, %cst_149 {dimension_numbers = #tpu.dot_dimension_numbers<[1], [0], [0], [1], [0, 0, 1, 1], [], []>} : vector<256x4xf32>, vector<4x128xf32>, vector<256x128xf32> -> vector<256x128xf32>
    %146 = arith.addf %139, %145 : vector<256x128xf32>
    %c0_150 = arith.constant 0 : index
    %c2_151 = arith.constant 2 : index
    %c1_152 = arith.constant 1 : index
    %c0_153 = arith.constant 0 : index
    %147 = vector.load %arg2[%c0_150, %c2_151, %c1_152, %c0_153] : memref<1x18x18x4xf32, #tpu.memory_space<vmem>>, vector<1x16x16x4xf32>
    %148 = vector.shape_cast %147 : vector<1x16x16x4xf32> to vector<16x16x4xf32>
    %149 = vector.shape_cast %148 : vector<16x16x4xf32> to vector<256x4xf32>
    %c3_154 = arith.constant 3 : index
    %c2_155 = arith.constant 2 : index
    %c0_156 = arith.constant 0 : index
    %c0_157 = arith.constant 0 : index
    %150 = vector.load %arg3[%c3_154, %c2_155, %c0_156, %c0_157] : memref<4x4x4x128xf32, #tpu.memory_space<vmem>>, vector<1x1x4x128xf32>
    %151 = vector.shape_cast %150 : vector<1x1x4x128xf32> to vector<4x128xf32>
    %cst_158 = arith.constant dense<0.000000e+00> : vector<256x128xf32>
    %152 = tpu.matmul %149, %151, %cst_158 {dimension_numbers = #tpu.dot_dimension_numbers<[1], [0], [0], [1], [0, 0, 1, 1], [], []>} : vector<256x4xf32>, vector<4x128xf32>, vector<256x128xf32> -> vector<256x128xf32>
    %153 = arith.addf %146, %152 : vector<256x128xf32>
    %c0_159 = arith.constant 0 : index
    %c2_160 = arith.constant 2 : index
    %c2_161 = arith.constant 2 : index
    %c0_162 = arith.constant 0 : index
    %154 = vector.load %arg2[%c0_159, %c2_160, %c2_161, %c0_162] : memref<1x18x18x4xf32, #tpu.memory_space<vmem>>, vector<1x16x16x4xf32>
    %155 = vector.shape_cast %154 : vector<1x16x16x4xf32> to vector<16x16x4xf32>
    %156 = vector.shape_cast %155 : vector<16x16x4xf32> to vector<256x4xf32>
    %c3_163 = arith.constant 3 : index
    %c3_164 = arith.constant 3 : index
    %c0_165 = arith.constant 0 : index
    %c0_166 = arith.constant 0 : index
    %157 = vector.load %arg3[%c3_163, %c3_164, %c0_165, %c0_166] : memref<4x4x4x128xf32, #tpu.memory_space<vmem>>, vector<1x1x4x128xf32>
    %158 = vector.shape_cast %157 : vector<1x1x4x128xf32> to vector<4x128xf32>
    %cst_167 = arith.constant dense<0.000000e+00> : vector<256x128xf32>
    %159 = tpu.matmul %156, %158, %cst_167 {dimension_numbers = #tpu.dot_dimension_numbers<[1], [0], [0], [1], [0, 0, 1, 1], [], []>} : vector<256x4xf32>, vector<4x128xf32>, vector<256x128xf32> -> vector<256x128xf32>
    %160 = arith.addf %153, %159 : vector<256x128xf32>
    %161 = arith.mulf %160, %160 : vector<256x128xf32>
    %cst_168 = arith.constant dense<0.000000e+00> : vector<128xf32>
    %162 = vector.multi_reduction <add>, %161, %cst_168 [0] : vector<256x128xf32> to vector<128xf32>
    %163 = vector.shape_cast %162 : vector<128xf32> to vector<1x128xf32>
    %164 = arith.addf %121, %163 : vector<1x128xf32>
    %165 = vector.broadcast %0 : vector<1x128xf32> to vector<256x128xf32>
    %166 = arith.addf %160, %165 : vector<256x128xf32>
    %cst_169 = arith.constant dense<0.000000e+00> : vector<128xf32>
    %167 = vector.multi_reduction <add>, %166, %cst_169 [0] : vector<256x128xf32> to vector<128xf32>
    %168 = vector.shape_cast %167 : vector<128xf32> to vector<1x128xf32>
    %169 = arith.addf %126, %168 : vector<1x128xf32>
    %170 = vector.shape_cast %166 : vector<256x128xf32> to vector<16x16x128xf32>
    %171 = arith.truncf %170 : vector<16x16x128xf32> to vector<16x16x128xbf16>
    %c0_170 = arith.constant 0 : index
    %c3_171 = arith.constant 3 : index
    %c0_172 = arith.constant 0 : index
    %c0_173 = arith.constant 0 : index
    %c0_174 = arith.constant 0 : index
    %172 = vector.load %arg5[%c0_170, %c3_171, %c0_172, %c0_173, %c0_174] : memref<1x4x16x16x128xbf16, #tpu.memory_space<vmem>>, vector<1x1x16x16x128xbf16>
    %173 = vector.shape_cast %172 : vector<1x1x16x16x128xbf16> to vector<16x16x128xbf16>
    %174 = vector.shape_cast %171 : vector<16x16x128xbf16> to vector<1x1x16x16x128xbf16>
    tpu.vector_store %arg5[%c0_170, %c3_171, %c0_172, %c0_173, %c0_174], %174 {strides = array<i32>} : memref<1x4x16x16x128xbf16, #tpu.memory_space<vmem>>, vector<1x1x16x16x128xbf16>,
    %175 = vector.shape_cast %169 : vector<1x128xf32> to vector<1x128xf32>
    %176 = vector.broadcast %175 : vector<1x128xf32> to vector<8x128xf32>
    %c0_175 = arith.constant 0 : index
    %c0_176 = arith.constant 0 : index
    %c0_177 = arith.constant 0 : index
    %177 = vector.load %arg6[%c0_175, %c0_176, %c0_177] : memref<1x8x128xf32, #tpu.memory_space<vmem>>, vector<1x8x128xf32>
    %178 = vector.shape_cast %177 : vector<1x8x128xf32> to vector<8x128xf32>
    %179 = vector.shape_cast %176 : vector<8x128xf32> to vector<1x8x128xf32>
    tpu.vector_store %arg6[%c0_175, %c0_176, %c0_177], %179 {strides = array<i32>} : memref<1x8x128xf32, #tpu.memory_space<vmem>>, vector<1x8x128xf32>,
    %180 = vector.shape_cast %164 : vector<1x128xf32> to vector<1x128xf32>
    %181 = vector.broadcast %180 : vector<1x128xf32> to vector<8x128xf32>
    %c0_178 = arith.constant 0 : index
    %c0_179 = arith.constant 0 : index
    %c0_180 = arith.constant 0 : index
    %182 = vector.load %arg7[%c0_178, %c0_179, %c0_180] : memref<1x8x128xf32, #tpu.memory_space<vmem>>, vector<1x8x128xf32>
    %183 = vector.shape_cast %182 : vector<1x8x128xf32> to vector<8x128xf32>
    %184 = vector.shape_cast %181 : vector<8x128xf32> to vector<1x8x128xf32>
    tpu.vector_store %arg7[%c0_178, %c0_179, %c0_180], %184 {strides = array<i32>} : memref<1x8x128xf32, #tpu.memory_space<vmem>>, vector<1x8x128xf32>,
    return
  }
  func.func @transform_0(%arg0: i32, %arg1: i32) -> (i32, i32, i32, i32) {
    %c0_i32 = arith.constant 0 : i32
    %c0_i32_0 = arith.constant 0 : i32
    %c0_i32_1 = arith.constant 0 : i32
    %c0_i32_2 = arith.constant 0 : i32
    return %arg0, %c0_i32, %c0_i32_0, %c0_i32_1 : i32, i32, i32, i32
  }
  func.func @transform_1(%arg0: i32, %arg1: i32) -> (i32, i32, i32, i32) {
    %c0_i32 = arith.constant 0 : i32
    %c0_i32_0 = arith.constant 0 : i32
    %c0_i32_1 = arith.constant 0 : i32
    %c0_i32_2 = arith.constant 0 : i32
    return %c0_i32, %c0_i32_0, %c0_i32_1, %arg1 : i32, i32, i32, i32
  }
  func.func @transform_2(%arg0: i32, %arg1: i32) -> (i32, i32) {
    %c0_i32 = arith.constant 0 : i32
    %c0_i32_0 = arith.constant 0 : i32
    return %c0_i32, %arg1 : i32, i32
  }
  func.func @transform_3(%arg0: i32, %arg1: i32) -> (i32, i32, i32, i32, i32) {
    %c0_i32 = arith.constant 0 : i32
    %c0_i32_0 = arith.constant 0 : i32
    %c0_i32_1 = arith.constant 0 : i32
    %c0_i32_2 = arith.constant 0 : i32
    return %arg0, %c0_i32, %c0_i32_0, %c0_i32_1, %arg1 : i32, i32, i32, i32, i32
  }
  func.func @transform_4(%arg0: i32, %arg1: i32) -> (i32, i32, i32) {
    %c0_i32 = arith.constant 0 : i32
    %c0_i32_0 = arith.constant 0 : i32
    return %arg0, %c0_i32, %arg1 : i32, i32, i32
  }
  func.func @transform_5(%arg0: i32, %arg1: i32) -> (i32, i32, i32) {
    %c0_i32 = arith.constant 0 : i32
    %c0_i32_0 = arith.constant 0 : i32
    return %arg0, %c0_i32, %arg1 : i32, i32, i32
  }
}

module attributes {stable_mosaic.version = 11 : i64} {
  func.func @_bn_relu_kernel(%arg0: i32, %arg1: i32, %arg2: memref<1x4x16x16x128xbf16, #tpu.memory_space<vmem>>, %arg3: memref<1x128xf32, #tpu.memory_space<vmem>>, %arg4: memref<1x128xf32, #tpu.memory_space<vmem>>, %arg5: memref<1x4x16x16x128xf32, #tpu.memory_space<vmem>>) attributes {dimension_semantics = [#tpu.dimension_semantics<parallel>, #tpu.dimension_semantics<parallel>], iteration_bounds = array<i64: 2, 1>, scalar_prefetch = 0 : i64, scratch_operands = 0 : i64, tpu.core_type = #tpu.core_type<tc>, window_params = [{transform_indices = @transform_0, window_bounds = array<i64: 1, 4, 16, 16, 128>}, {transform_indices = @transform_1, window_bounds = array<i64: 1, 128>}, {transform_indices = @transform_2, window_bounds = array<i64: 1, 128>}, {transform_indices = @transform_3, window_bounds = array<i64: 1, 4, 16, 16, 128>}]} {
    %c0 = arith.constant 0 : index
    %c0_0 = arith.constant 0 : index
    %c0_1 = arith.constant 0 : index
    %c0_2 = arith.constant 0 : index
    %c0_3 = arith.constant 0 : index
    %0 = vector.load %arg2[%c0, %c0_0, %c0_1, %c0_2, %c0_3] : memref<1x4x16x16x128xbf16, #tpu.memory_space<vmem>>, vector<1x4x16x16x128xbf16>
    %1 = arith.extf %0 : vector<1x4x16x16x128xbf16> to vector<1x4x16x16x128xf32>
    %c0_4 = arith.constant 0 : index
    %c0_5 = arith.constant 0 : index
    %2 = vector.load %arg3[%c0_4, %c0_5] : memref<1x128xf32, #tpu.memory_space<vmem>>, vector<1x128xf32>
    %3 = vector.shape_cast %2 : vector<1x128xf32> to vector<128xf32>
    %4 = vector.shape_cast %3 : vector<128xf32> to vector<1x1x1x1x128xf32>
    %5 = vector.broadcast %4 : vector<1x1x1x1x128xf32> to vector<1x4x16x16x128xf32>
    %6 = arith.mulf %1, %5 : vector<1x4x16x16x128xf32>
    %c0_6 = arith.constant 0 : index
    %c0_7 = arith.constant 0 : index
    %7 = vector.load %arg4[%c0_6, %c0_7] : memref<1x128xf32, #tpu.memory_space<vmem>>, vector<1x128xf32>
    %8 = vector.shape_cast %7 : vector<1x128xf32> to vector<128xf32>
    %9 = vector.shape_cast %8 : vector<128xf32> to vector<1x1x1x1x128xf32>
    %10 = vector.broadcast %9 : vector<1x1x1x1x128xf32> to vector<1x4x16x16x128xf32>
    %11 = arith.addf %6, %10 : vector<1x4x16x16x128xf32>
    %cst = arith.constant 0.000000e+00 : f32
    %12 = vector.broadcast %cst : f32 to vector<1x4x16x16x128xf32>
    %13 = arith.maximumf %11, %12 : vector<1x4x16x16x128xf32>
    %c0_8 = arith.constant 0 : index
    %c0_9 = arith.constant 0 : index
    %c0_10 = arith.constant 0 : index
    %c0_11 = arith.constant 0 : index
    %c0_12 = arith.constant 0 : index
    %14 = vector.load %arg5[%c0_8, %c0_9, %c0_10, %c0_11, %c0_12] : memref<1x4x16x16x128xf32, #tpu.memory_space<vmem>>, vector<1x4x16x16x128xf32>
    tpu.vector_store %arg5[%c0_8, %c0_9, %c0_10, %c0_11, %c0_12], %13 {strides = array<i32>} : memref<1x4x16x16x128xf32, #tpu.memory_space<vmem>>, vector<1x4x16x16x128xf32>,
    return
  }
  func.func @transform_0(%arg0: i32, %arg1: i32) -> (i32, i32, i32, i32, i32) {
    %c0_i32 = arith.constant 0 : i32
    %c0_i32_0 = arith.constant 0 : i32
    %c0_i32_1 = arith.constant 0 : i32
    %c0_i32_2 = arith.constant 0 : i32
    return %arg0, %c0_i32, %c0_i32_0, %c0_i32_1, %arg1 : i32, i32, i32, i32, i32
  }
  func.func @transform_1(%arg0: i32, %arg1: i32) -> (i32, i32) {
    %c0_i32 = arith.constant 0 : i32
    %c0_i32_0 = arith.constant 0 : i32
    return %c0_i32, %arg1 : i32, i32
  }
  func.func @transform_2(%arg0: i32, %arg1: i32) -> (i32, i32) {
    %c0_i32 = arith.constant 0 : i32
    %c0_i32_0 = arith.constant 0 : i32
    return %c0_i32, %arg1 : i32, i32
  }
  func.func @transform_3(%arg0: i32, %arg1: i32) -> (i32, i32, i32, i32, i32) {
    %c0_i32 = arith.constant 0 : i32
    %c0_i32_0 = arith.constant 0 : i32
    %c0_i32_1 = arith.constant 0 : i32
    %c0_i32_2 = arith.constant 0 : i32
    return %arg0, %c0_i32, %c0_i32_0, %c0_i32_1, %arg1 : i32, i32, i32, i32, i32
  }
}

</mosaic_0001>

<bundles_post_ra>
// kernel: up_conv_forward.3
= control target key start
LH: loop header
LB: loop body
LE: loop exit
PB: predicated region body
PF: predicated region fallthrough
CT: control target
= control target key end

     0   :  { %8 = vsyncpa [#allocation3], 0  ;;  %s2494_s0 = inlined_call_operand.hbm [shape: bf16[2,4,16,16,128], index: 0, kind: input, shape index: {}]   ;;  %s2495_s1 = inlined_call_operand.hbm [shape: f32[1,128], index: 1, kind: input, shape index: {}]   ;;  %s2496_s2 = inlined_call_operand.hbm [shape: f32[1,128], index: 2, kind: input, shape index: {}]   ;;  %s2497_s3 = inlined_call_operand.hbm [shape: f32[2,4,16,16,128], index: 3, kind: output, shape index: {}]  }
   0x1   :  { %10 = vsyncpa [#allocation3 + $0x1], 0 }
   0x2   :  { %11 = vsyncpa [#allocation6], 0 }
   0x3   :  { %12 = vsyncpa [#allocation4], 0 }
   0x4   :  { %14 = vsyncpa [#allocation4 + $0x1], 0  ;;  %s1783_s12 = smov 0   ;;  %s1785_s13 = smov 0  }
   0x5   :  { %s1787_s14 = smov 0   ;;  %s1789_s15 = smov 0  }
   0x6   :  { %s1791_s16 = smov 0   ;;  %s1793_s17 = smov 0  }
   0x7 LB: > { %s1150_s18 = sadd.s32 4294967295, %s1753_s17   ;;  %s1151_s19 = sadd.s32 4294967294, %s1753_s17   ;;  %s1753_s17 = sphi %s1793_s17, %s20_s17   ;;  %s1749_s16 = sphi %s1791_s16, %s2523_s16   ;;  %s1745_s15 = sphi %s1789_s15, %s2522_s15   ;;  %s1741_s14 = sphi %s1787_s14, %s2521_s14   ;;  %s1737_s13 = sphi %s1785_s13, %s2520_s13   ;;  %s1733_s12 = sphi %s1783_s12, %s2519_s12  }
   0x8   : > { %s41_s20 = sadd.s32 1, %s1741_s14  ;;  %p48_p0 = scmp.ne.s32.totalorder %s1741_s14, %s1737_s13 }
   0x9   : > { %p49_p1 = scmp.eq.s32.totalorder %s1753_s17, 0  ;;  %p54_p2 = scmp.ne.s32.totalorder %s1737_s13, %s1733_s12 }
   0xa   : > { %p1821_p3 = scmp.eq.s32.totalorder %s1150_s18, 0  ;;  %p132_p4 = scmp.eq.s32.totalorder %s1150_s18, 1 }
   0xb   : > { %p1825_p5 = por %p49_p1, %p48_p0  ;;  %p138_p6 = scmp.eq.s32.totalorder %s1151_s19, 1 }
   0xc   : > { %s2504_s21 = scalar_select %p1821_p3, 1, 0 }
   0xd   : > { %p1831_p7 = por %p1821_p3, %p54_p2  ;;  %p1835_p8 = por %p132_p4, %p48_p0 }
   0xe   : > { %p1839_p9 = por %p138_p6, %p54_p2  ;;  %p1152_p10 = scmp.ge.s32.totalorder %s1753_s17, 1 }
   0xf   : > { %s2506_s23 = scalar_select %p1831_p7, 1, 0 }
  0x10   : > { %s2507_s24 = scalar_select %p1835_p8, 1, 0 }
  0x11   : > { %s2508_s25 = scalar_select %p1839_p9, 1, 0 }
  0x12   : > { %p145_p11 = scmp.lt.s32.totalorder %s1753_s17, 3  ;;  %s1755_s27 = smov [#allocation5]  }
  0x13   : > { %s160_s28 = sshll.u32 %s1755_s27, 4  ;;  %p1521_p1 = scmp.lt.s32.totalorder %s1753_s17, 2  ;;  %s161_s28 = int_to_ptr.vmem [resolvable:$true] %s160_s28 }
  0x14   : > { %p1846_p13 = pnand %p1152_p10, %p145_p11  ;;  %s1756_s30 = smov [#allocation7]  }
  0x15   : > { %p1855_p4 = pnand %p1521_p1, %p1825_p5  ;;  %s173_s4 = sshll.u32 %s1756_s30, 4  ;;  %s1865_s4 = int_to_ptr.vmem [resolvable:$true] %s173_s4 }
  0x16   : > { %s2509_s26 = scalar_select %p1846_p13, 1, 0 }
  0x17   : > { %p1504_p0 = pneg %p1846_p13  ;;  %s1581_s8 = scalar_lea.hbm %s2495_s1, 16 }
  0x18   : > { %s2510_s29 = scalar_select %p1855_p4, 1, 0 }
  0x19   : > { %p1861_p2 = pnand %p1504_p0, %p1821_p3  ;;  %p1582_p5 = scmp.ne.s32.totalorder %s2495_s1, %s1581_s8 }
  0x1a   : > { %p1588_p1 = scmp.lt.u32.totalorder %s1581_s8, %s2495_s1 }
  0x1b   : > { %p1583_p6 = pneg %p1861_p2 }
  0x1d   : > { %p1584_p10 = pnand %p1583_p6, %p1582_p5 }
  0x1f   : > { %p1585_p11 = pneg %p1584_p10 }
  0x21   : > { %p1590_p0 = pnand %p1588_p1, %p1585_p11 }
  0x23   : > { %1593 = shalt.err (!%p1590_p0)
}
  0x24   : > { %s1594_s19 = scalar_lea.vmem %s161_s28, 16  ;;  %s1601_s22 = scalar_lea.vmem %s161_s28, 32 }
  0x25   : > { %p1595_p12 = scmp.ne.s32.totalorder %s161_s28, %s1594_s19  ;;  %p1602_p3 = scmp.lt.s32.totalorder %s161_s28, %s161_s28 }
  0x26   : > { %p1603_p7 = scmp.lt.s32.totalorder %s1601_s22, %s1594_s19 }
  0x27   : > { %p1597_p9 = pnand %p1595_p12, %p1583_p6 }
  0x28   : > { %p1604_p13 = por %p1603_p7, %p1602_p3 }
  0x29   : > { %p1598_p8 = pneg %p1597_p9 }
  0x2b   : > { %p1605_p4 = pnand %p1604_p13, %p1598_p8 }
  0x2d   : > { %1608 = shalt.err (!%p1605_p4)
}
  0x2e   : > { %1507 = dma.hbm_to_vmem [thread:$0]  (!%p1861_p2), %s2495_s1, 16, %s161_s28, [#allocation6]  }
  0x2f   : > { %s1609_s8 = scalar_lea.hbm %s2496_s2, 16 }
  0x30   : > { %p1610_p9 = scmp.ne.s32.totalorder %s2496_s2, %s1609_s8  ;;  %p1616_p8 = scmp.lt.u32.totalorder %s1609_s8, %s2496_s2 }
  0x32   : > { %p1612_p3 = pnand %p1610_p9, %p1583_p6 }
  0x34   : > { %p1613_p7 = pneg %p1612_p3 }
  0x36   : > { %p1618_p12 = pnand %p1616_p8, %p1613_p7 }
  0x38   : > { %1621 = shalt.err (!%p1618_p12)
}
  0x39   : > { %s1622_s28 = scalar_lea.vmem %s1865_s4, 16  ;;  %s1629_s19 = scalar_lea.vmem %s1865_s4, 32 }
  0x3a   : > { %p1623_p13 = scmp.ne.s32.totalorder %s1865_s4, %s1622_s28  ;;  %p1630_p10 = scmp.lt.s32.totalorder %s1865_s4, %s1865_s4 }
  0x3b   : > { %p1631_p11 = scmp.lt.s32.totalorder %s1629_s19, %s1622_s28 }
  0x3c   : > { %p1625_p4 = pnand %p1623_p13, %p1583_p6 }
  0x3d   : > { %p1632_p1 = por %p1631_p11, %p1630_p10 }
  0x3e   : > { %p1626_p5 = pneg %p1625_p4 }
  0x40   : > { %p1633_p0 = pnand %p1632_p1, %p1626_p5 }
  0x42   : > { %1636 = shalt.err (!%p1633_p0)
}
  0x43   : > { %1510 = dma.hbm_to_vmem [thread:$0]  (!%p1861_p2), %s2496_s2, 16, %s1865_s4, [#allocation6]  }
  0x44   : > { %s32_s30 = sadd.s32 1, %s1749_s16  ;;  %s184_s6 = sand.u32 1, %s1741_s14  }
  0x45   : > { %p34_p6 = scmp.ge.s32.totalorder %s32_s30, 2  ;;  %s1156_s7 = sshll.u32 %s184_s6, 9 }
  0x46   : > { %s1171_s8 = sshll.u32 %s1749_s16, 13  ;;  %s188_s4 = scalar_lea.vmem [#allocation2], %s1156_s7 }
  0x47   : > { %s2525_s30 = smov (%p34_p6, %s32_s30), 0  ;;  %s1923_s10 = scalar_lea.hbm %s2494_s0, %s1171_s8 }
  0x48   : > { %s36_s11 = ssub.s32 %s1749_s16, %s2525_s30  ;;  %s196_s18 = sshll.u32 %s188_s4, 4  ;;  %s1927_s18 = int_to_ptr.vmem [resolvable:$true] %s196_s18 }
  0x49   : > { %p39_p2 = scmp.eq.s32.totalorder %s36_s11, 0  ;;  %s1934_s19 = scalar_lea.sflag [#allocation3], %s184_s6 }
  0x4a   : > { %s1637_s22 = scalar_lea.hbm %s1923_s10, 8192  ;;  %p2512_p3 = scmp.ne.s32.totalorder %s2510_s29, 0 }
  0x4b   : > { %s1932_s28 = scalar_select %p39_p2, %s1741_s14, %s41_s20  }
  0x4c   : > { %p1638_p9 = scmp.ne.s32.totalorder %s1923_s10, %s1637_s22  ;;  %p1639_p7 = pneg %p2512_p3 }
  0x4d   : > { %s1642_s7 = scalar_lea.hbm %s2494_s0, 16384  ;;  %p1643_p13 = scmp.lt.u32.totalorder %s1923_s10, %s2494_s0 }
  0x4e   : > { %p1640_p8 = pnand %p1639_p7, %p1638_p9  ;;  %p1644_p4 = scmp.lt.u32.totalorder %s1642_s7, %s1637_s22 }
  0x4f   : > { %p1646_p10 = scmp.lt.u32.totalorder %s1637_s22, %s1923_s10 }
  0x50   : > { %p1641_p12 = pneg %p1640_p8  ;;  %p1645_p5 = por %p1644_p4, %p1643_p13 }
  0x52   : > { %p1647_p11 = por %p1646_p10, %p1645_p5 }
  0x54   : > { %p1648_p1 = pnand %p1647_p11, %p1641_p12 }
  0x56   : > { %1651 = shalt.err (!%p1648_p1)
}
  0x57   : > { %s1652_s20 = scalar_lea.vmem %s1927_s18, 8192  ;;  %s1757_s6 = smov [#allocation2]  }
  0x58   : > { %p1653_p0 = scmp.ne.s32.totalorder %s1927_s18, %s1652_s20  ;;  %s1657_s11 = sshll.u32 %s1757_s6, 4  ;;  %s1658_s11 = int_to_ptr.vmem [resolvable:$false] %s1657_s11 }
  0x59   : > { %s1659_s4 = scalar_lea.vmem %s1658_s11, 16384  ;;  %p1660_p9 = scmp.lt.s32.totalorder %s1927_s18, %s1658_s11 }
  0x5a   : > { %p1655_p6 = pnand %p1653_p0, %p1639_p7  ;;  %p1661_p8 = scmp.lt.s32.totalorder %s1659_s4, %s1652_s20 }
  0x5c   : > { %p1656_p2 = pneg %p1655_p6  ;;  %p1662_p13 = por %p1661_p8, %p1660_p9 }
  0x5e   : > { %p1663_p4 = pnand %p1662_p13, %p1656_p2 }
  0x60   : > { %1666 = shalt.err (!%p1663_p4)
}
  0x61   : > { %s1758_s22 = smov 64   ;;  %s1759_s27 = smov 4  }
  0x62   : > { %1514 = dma.hbm_to_vmem [thread:$0]  (!%p2512_p3), %s1923_s10, 8192, %s1927_s18, %s1934_s19, %s1758_s22, %s1758_s22, %s1759_s27  }
  0x63   : > { %p2513_p7 = scmp.ne.s32.totalorder %s2509_s26, 0 }
  0x64   : > { %s1965_s8 = sand.u32 (!%p2513_p7), 1, %s1737_s13   ;;  %p2514_p12 = scmp.ne.s32.totalorder (!%p2513_p7), %s2506_s23, 0 }
  0x65   : > { %208 = sbr.rel (%p2513_p7) target bundleno = 258 (0x102), region = 32  ;;  %s1160_s7 = sshll.u32 (!%p2513_p7), %s1965_s8, 9 }
  0x66   : > { %s211_s5 = scalar_lea.sflag (!%p2513_p7), [#allocation3], %s1965_s8  ;;  %s1969_s9 = scalar_lea.vmem (!%p2513_p7), [#allocation2], %s1160_s7 }
  0x6c   : > { %1720 = dma.done.wait (%p2514_p12), %s211_s5, 8192  }
  0x6d   : > { %1722 = vsyncadd (%p2514_p12), %s211_s5, 4294959104  ;;  %p2515_p3 = scmp.ne.s32.totalorder %s2504_s21, 0 }
  0x6f   : > { %1724 = dma.done.wait (%p2515_p3), [#allocation6], 32  }
  0x70   : > { %1726 = vsyncadd (%p2515_p3), [#allocation6], 4294967264  ;;  %v1174_v0 = vld [vmem:[%s1969_s9] sm:$0xff]   ;;  %v1429_v4 = vld [vmem:[%s1969_s9 + $0x8] sm:$0xff]   ;;  %s1163_s21 = sshll.u32 %s1965_s8, 10  ;;  %s1172_s26 = sshll.u32 %s1745_s15, 14 }
  0x71   : > { %v1980_v1 = vld [vmem:[#allocation5] ss:$0 sm:$0xff]  ;;  %v1175_v2 = vunpack.c.l.bf16 %v1174_v0  ;;  %v1176_v3 = vunpack.c.h.bf16 %v1174_v0  ;;  %v1430_v5 = vld [vmem:[%s1969_s9 + $0x10] sm:$0xff]   ;;  %v1431_v6 = vld [vmem:[%s1969_s9 + $0x18] sm:$0xff]   ;;  %v1179_v8 = vunpack.c.l.bf16 %v1429_v4  ;;  %v1180_v9 = vunpack.c.h.bf16 %v1429_v4  ;;  %s2008_s23 = scalar_lea.vmem [#allocation8], %s1163_s21  ;;  %s2435_s18 = scalar_lea.hbm %s2497_s3, %s1172_s26 }
  0x72   : > { %v1985_v7 = vld [vmem:[#allocation7] ss:$0 sm:$0xff]  ;;  %v1183_v10 = vunpack.c.l.bf16 %v1430_v5  ;;  %v1184_v11 = vunpack.c.h.bf16 %v1430_v5  ;;  %v1187_v14 = vunpack.c.l.bf16 %v1431_v6  ;;  %v1188_v15 = vunpack.c.h.bf16 %v1431_v6  ;;  %v1433_v33 = vld [vmem:[%s1969_s9 + $0x28] sm:$0xff]   ;;  %v1434_v34 = vld [vmem:[%s1969_s9 + $0x30] sm:$0xff]   ;;  %s1042_s29 = sshll.u32 %s2008_s23, 4  ;;  %s1028_s19 = scalar_lea.sflag [#allocation4], %s1965_s8  ;;  %s2437_s29 = int_to_ptr.vmem [resolvable:$true] %s1042_s29 }
  0x73   : > { %v508_v12 = vmul.f32 %v1175_v2, %v1980_v1  ;;  %v509_v13 = vmul.f32 %v1176_v3, %v1980_v1  ;;  %v510_v16 = vmul.f32 %v1179_v8, %v1980_v1  ;;  %v511_v17 = vmul.f32 %v1180_v9, %v1980_v1  ;;  %v1432_v28 = vld [vmem:[%s1969_s9 + $0x20] sm:$0xff]   ;;  %v1435_v39 = vld [vmem:[%s1969_s9 + $0x38] sm:$0xff]   ;;  %v1437_v6 = vld [vmem:[%s1969_s9 + $0x48] sm:$0xff]   ;;  %s1667_s20 = scalar_lea.vmem %s2437_s29, 16384  ;;  %p2516_p10 = scmp.ne.s32.totalorder %s2507_s24, 0 }
  0x74   : > { %v512_v18 = vmul.f32 %v1183_v10, %v1980_v1  ;;  %v513_v19 = vmul.f32 %v1184_v11, %v1980_v1  ;;  %v514_v22 = vmul.f32 %v1187_v14, %v1980_v1  ;;  %v515_v23 = vmul.f32 %v1188_v15, %v1980_v1  ;;  %v1436_v0 = vld [vmem:[%s1969_s9 + $0x40] sm:$0xff]   ;;  %v1438_v8 = vld [vmem:[%s1969_s9 + $0x50] sm:$0xff]   ;;  %p1668_p5 = scmp.ne.s32.totalorder %s2437_s29, %s1667_s20  ;;  %s1760_s6 = smov [#allocation8]  }
  0x75   : > { %v643_v20 = vadd.f32 %v1985_v7, %v508_v12  ;;  %v644_v21 = vadd.f32 %v1985_v7, %v509_v13  ;;  %v645_v24 = vadd.f32 %v1985_v7, %v510_v16  ;;  %v646_v25 = vadd.f32 %v1985_v7, %v511_v17  ;;  %v1439_v13 = vld [vmem:[%s1969_s9 + $0x58] sm:$0xff]   ;;  %s1671_s11 = sshll.u32 %s1760_s6, 4  ;;  %s1672_s11 = int_to_ptr.vmem [resolvable:$false] %s1671_s11 }
  0x76   : > { %v647_v26 = vadd.f32 %v1985_v7, %v512_v18  ;;  %v648_v27 = vadd.f32 %v1985_v7, %v513_v19  ;;  %v649_v31 = vadd.f32 %v1985_v7, %v514_v22  ;;  %v650_v32 = vadd.f32 %v1985_v7, %v515_v23  ;;  %p1669_p11 = pnand %p1668_p5, %p2516_p10  ;;  %s1673_s4 = scalar_lea.vmem %s1672_s11, 32768 }
  0x77   : > { %v771_v29 = vmax.f32 %v643_v20, 0.0  ;;  %v772_v30 = vmax.f32 %v644_v21, 0.0  ;;  %v773_v35 = vmax.f32 %v645_v24, 0.0  ;;  %v774_v36 = vmax.f32 %v646_v25, 0.0  ;;  %p1674_p0 = scmp.lt.s32.totalorder %s2437_s29, %s1672_s11  ;;  %p1675_p6 = scmp.lt.s32.totalorder %s1673_s4, %s1667_s20 }
  0x78   : > { %v775_v37 = vmax.f32 %v647_v26, 0.0  ;;  %v776_v38 = vmax.f32 %v648_v27, 0.0  ;;  %v777_v40 = vmax.f32 %v649_v31, 0.0  ;;  %v778_v41 = vmax.f32 %v650_v32, 0.0  ;;  %p1670_p1 = pneg %p1669_p11 }
  0x79   : > { %899 = vst [vmem:[%s2008_s23] sm:$0xff] %v771_v29  ;;  %900 = vst [vmem:[%s2008_s23 + $0x8] sm:$0xff] %v772_v30  ;;  %v1191_v42 = vunpack.c.l.bf16 %v1432_v28  ;;  %v1192_v43 = vunpack.c.h.bf16 %v1432_v28  ;;  %v1195_v44 = vunpack.c.l.bf16 %v1433_v33  ;;  %v1196_v45 = vunpack.c.h.bf16 %v1433_v33  ;;  %p1676_p2 = por %p1675_p6, %p1674_p0 }
  0x7a   : > { %901 = vst [vmem:[%s2008_s23 + $0x10] sm:$0xff] %v773_v35  ;;  %902 = vst [vmem:[%s2008_s23 + $0x18] sm:$0xff] %v774_v36  ;;  %v1199_v46 = vunpack.c.l.bf16 %v1434_v34  ;;  %v1200_v47 = vunpack.c.h.bf16 %v1434_v34  ;;  %v1203_v50 = vunpack.c.l.bf16 %v1435_v39  ;;  %v1204_v51 = vunpack.c.h.bf16 %v1435_v39 }
  0x7b   : > { %903 = vst [vmem:[%s2008_s23 + $0x20] sm:$0xff] %v775_v37  ;;  %904 = vst [vmem:[%s2008_s23 + $0x28] sm:$0xff] %v776_v38  ;;  %v516_v48 = vmul.f32 %v1191_v42, %v1980_v1  ;;  %v517_v49 = vmul.f32 %v1192_v43, %v1980_v1  ;;  %v518_v52 = vmul.f32 %v1195_v44, %v1980_v1  ;;  %v1207_v16 = vunpack.c.l.bf16 %v1436_v0  ;;  %v1440_v38 = vld [vmem:[%s1969_s9 + $0x60] sm:$0xff]   ;;  %v1441_v43 = vld [vmem:[%s1969_s9 + $0x68] sm:$0xff]   ;;  %p1677_p9 = pnand %p1676_p2, %p1670_p1 }
  0x7c   : > { %905 = vst [vmem:[%s2008_s23 + $0x30] sm:$0xff] %v777_v40  ;;  %906 = vst [vmem:[%s2008_s23 + $0x38] sm:$0xff] %v778_v41  ;;  %v519_v53 = vmul.f32 %v1196_v45, %v1980_v1  ;;  %v520_v54 = vmul.f32 %v1199_v46, %v1980_v1  ;;  %v521_v55 = vmul.f32 %v1200_v47, %v1980_v1  ;;  %v1208_v17 = vunpack.c.h.bf16 %v1436_v0  ;;  %v1442_v44 = vld [vmem:[%s1969_s9 + $0x70] sm:$0xff]  }
  0x7d   : > { %v651_v56 = vadd.f32 %v1985_v7, %v516_v48  ;;  %v652_v57 = vadd.f32 %v1985_v7, %v517_v49  ;;  %v522_v58 = vmul.f32 %v1203_v50, %v1980_v1  ;;  %v523_v59 = vmul.f32 %v1204_v51, %v1980_v1  ;;  %v1443_v49 = vld [vmem:[%s1969_s9 + $0x78] sm:$0xff]  }
  0x7e   : > { %v653_v60 = vadd.f32 %v1985_v7, %v518_v52  ;;  %v654_v61 = vadd.f32 %v1985_v7, %v519_v53  ;;  %v655_v62 = vadd.f32 %v1985_v7, %v520_v54  ;;  %v656_v63 = vadd.f32 %v1985_v7, %v521_v55 }
  0x7f   : > { %v779_v2 = vmax.f32 %v651_v56, 0.0  ;;  %v780_v3 = vmax.f32 %v652_v57, 0.0  ;;  %v657_v4 = vadd.f32 %v1985_v7, %v522_v58  ;;  %v658_v5 = vadd.f32 %v1985_v7, %v523_v59 }
  0x80   : > { %v781_v9 = vmax.f32 %v653_v60, 0.0  ;;  %v782_v10 = vmax.f32 %v654_v61, 0.0  ;;  %v783_v11 = vmax.f32 %v655_v62, 0.0  ;;  %v784_v12 = vmax.f32 %v656_v63, 0.0 }
  0x81   : > { %907 = vst [vmem:[%s2008_s23 + $0x40] sm:$0xff] %v779_v2  ;;  %908 = vst [vmem:[%s2008_s23 + $0x48] sm:$0xff] %v780_v3  ;;  %v785_v14 = vmax.f32 %v657_v4, 0.0  ;;  %v786_v15 = vmax.f32 %v658_v5, 0.0  ;;  %v1211_v18 = vunpack.c.l.bf16 %v1437_v6  ;;  %v1212_v19 = vunpack.c.h.bf16 %v1437_v6 }
  0x82   : > { %909 = vst [vmem:[%s2008_s23 + $0x50] sm:$0xff] %v781_v9  ;;  %910 = vst [vmem:[%s2008_s23 + $0x58] sm:$0xff] %v782_v10  ;;  %v1215_v20 = vunpack.c.l.bf16 %v1438_v8  ;;  %v1216_v21 = vunpack.c.h.bf16 %v1438_v8  ;;  %v524_v22 = vmul.f32 %v1207_v16, %v1980_v1  ;;  %v525_v23 = vmul.f32 %v1208_v17, %v1980_v1  ;;  %v1445_v17 = vld [vmem:[%s1969_s9 + $0x88] sm:$0xff]  }
  0x83   : > { %911 = vst [vmem:[%s2008_s23 + $0x60] sm:$0xff] %v783_v11  ;;  %912 = vst [vmem:[%s2008_s23 + $0x68] sm:$0xff] %v784_v12  ;;  %v1219_v24 = vunpack.c.l.bf16 %v1439_v13  ;;  %v1220_v25 = vunpack.c.h.bf16 %v1439_v13  ;;  %v526_v26 = vmul.f32 %v1211_v18, %v1980_v1  ;;  %v527_v27 = vmul.f32 %v1212_v19, %v1980_v1  ;;  %v1444_v12 = vld [vmem:[%s1969_s9 + $0x80] sm:$0xff]   ;;  %v1446_v18 = vld [vmem:[%s1969_s9 + $0x90] sm:$0xff]  }
  0x84   : > { %913 = vst [vmem:[%s2008_s23 + $0x70] sm:$0xff] %v785_v14  ;;  %914 = vst [vmem:[%s2008_s23 + $0x78] sm:$0xff] %v786_v15  ;;  %v528_v28 = vmul.f32 %v1215_v20, %v1980_v1  ;;  %v529_v29 = vmul.f32 %v1216_v21, %v1980_v1  ;;  %v659_v30 = vadd.f32 %v1985_v7, %v524_v22  ;;  %v1223_v52 = vunpack.c.l.bf16 %v1440_v38 }
  0x85   : > { %v660_v31 = vadd.f32 %v1985_v7, %v525_v23  ;;  %v530_v32 = vmul.f32 %v1219_v24, %v1980_v1  ;;  %v531_v33 = vmul.f32 %v1220_v25, %v1980_v1  ;;  %v661_v34 = vadd.f32 %v1985_v7, %v526_v26  ;;  %v1447_v23 = vld [vmem:[%s1969_s9 + $0x98] sm:$0xff]  }
  0x86   : > { %v662_v35 = vadd.f32 %v1985_v7, %v527_v27  ;;  %v663_v36 = vadd.f32 %v1985_v7, %v528_v28  ;;  %v664_v37 = vadd.f32 %v1985_v7, %v529_v29  ;;  %v787_v39 = vmax.f32 %v659_v30, 0.0 }
  0x87   : > { %v788_v40 = vmax.f32 %v660_v31, 0.0  ;;  %v665_v41 = vadd.f32 %v1985_v7, %v530_v32  ;;  %v666_v42 = vadd.f32 %v1985_v7, %v531_v33  ;;  %v789_v45 = vmax.f32 %v661_v34, 0.0 }
  0x88   : > { %v790_v46 = vmax.f32 %v662_v35, 0.0  ;;  %v791_v47 = vmax.f32 %v663_v36, 0.0  ;;  %v792_v48 = vmax.f32 %v664_v37, 0.0  ;;  %915 = vst [vmem:[%s2008_s23 + $0x80] sm:$0xff] %v787_v39  ;;  %v1224_v53 = vunpack.c.h.bf16 %v1440_v38 }
  0x89   : > { %916 = vst [vmem:[%s2008_s23 + $0x88] sm:$0xff] %v788_v40  ;;  %v793_v50 = vmax.f32 %v665_v41, 0.0  ;;  %v794_v51 = vmax.f32 %v666_v42, 0.0  ;;  %917 = vst [vmem:[%s2008_s23 + $0x90] sm:$0xff] %v789_v45  ;;  %v1227_v54 = vunpack.c.l.bf16 %v1441_v43  ;;  %v1228_v55 = vunpack.c.h.bf16 %v1441_v43 }
  0x8a   : > { %918 = vst [vmem:[%s2008_s23 + $0x98] sm:$0xff] %v790_v46  ;;  %919 = vst [vmem:[%s2008_s23 + $0xa0] sm:$0xff] %v791_v47  ;;  %v1231_v56 = vunpack.c.l.bf16 %v1442_v44  ;;  %v1232_v57 = vunpack.c.h.bf16 %v1442_v44  ;;  %v532_v58 = vmul.f32 %v1223_v52, %v1980_v1  ;;  %v533_v59 = vmul.f32 %v1224_v53, %v1980_v1  ;;  %v1449_v53 = vld [vmem:[%s1969_s9 + $0xa8] sm:$0xff]  }
  0x8b   : > { %920 = vst [vmem:[%s2008_s23 + $0xa8] sm:$0xff] %v792_v48  ;;  %921 = vst [vmem:[%s2008_s23 + $0xb0] sm:$0xff] %v793_v50  ;;  %v1235_v60 = vunpack.c.l.bf16 %v1443_v49  ;;  %v1236_v61 = vunpack.c.h.bf16 %v1443_v49  ;;  %v534_v62 = vmul.f32 %v1227_v54, %v1980_v1  ;;  %v535_v63 = vmul.f32 %v1228_v55, %v1980_v1  ;;  %v1448_v48 = vld [vmem:[%s1969_s9 + $0xa0] sm:$0xff]   ;;  %v1450_v54 = vld [vmem:[%s1969_s9 + $0xb0] sm:$0xff]  }
  0x8c   : > { %922 = vst [vmem:[%s2008_s23 + $0xb8] sm:$0xff] %v794_v51  ;;  %v536_v0 = vmul.f32 %v1231_v56, %v1980_v1  ;;  %v537_v2 = vmul.f32 %v1232_v57, %v1980_v1  ;;  %v667_v3 = vadd.f32 %v1985_v7, %v532_v58  ;;  %v668_v4 = vadd.f32 %v1985_v7, %v533_v59  ;;  %v1451_v59 = vld [vmem:[%s1969_s9 + $0xb8] sm:$0xff]  }
  0x8d   : > { %v538_v5 = vmul.f32 %v1235_v60, %v1980_v1  ;;  %v539_v6 = vmul.f32 %v1236_v61, %v1980_v1  ;;  %v669_v8 = vadd.f32 %v1985_v7, %v534_v62  ;;  %v670_v9 = vadd.f32 %v1985_v7, %v535_v63 }
  0x8e   : > { %v671_v10 = vadd.f32 %v1985_v7, %v536_v0  ;;  %v672_v11 = vadd.f32 %v1985_v7, %v537_v2  ;;  %v795_v13 = vmax.f32 %v667_v3, 0.0  ;;  %v796_v14 = vmax.f32 %v668_v4, 0.0 }
  0x8f   : > { %v673_v15 = vadd.f32 %v1985_v7, %v538_v5  ;;  %v674_v16 = vadd.f32 %v1985_v7, %v539_v6  ;;  %v797_v19 = vmax.f32 %v669_v8, 0.0  ;;  %v798_v20 = vmax.f32 %v670_v9, 0.0 }
  0x90   : > { %v799_v21 = vmax.f32 %v671_v10, 0.0  ;;  %v800_v22 = vmax.f32 %v672_v11, 0.0  ;;  %923 = vst [vmem:[%s2008_s23 + $0xc0] sm:$0xff] %v795_v13  ;;  %924 = vst [vmem:[%s2008_s23 + $0xc8] sm:$0xff] %v796_v14  ;;  %v1239_v26 = vunpack.c.l.bf16 %v1444_v12  ;;  %v1240_v27 = vunpack.c.h.bf16 %v1444_v12 }
  0x91   : > { %v801_v24 = vmax.f32 %v673_v15, 0.0  ;;  %v802_v25 = vmax.f32 %v674_v16, 0.0  ;;  %925 = vst [vmem:[%s2008_s23 + $0xd0] sm:$0xff] %v797_v19  ;;  %926 = vst [vmem:[%s2008_s23 + $0xd8] sm:$0xff] %v798_v20  ;;  %v1243_v28 = vunpack.c.l.bf16 %v1445_v17  ;;  %v1244_v29 = vunpack.c.h.bf16 %v1445_v17 }
  0x92   : > { %927 = vst [vmem:[%s2008_s23 + $0xe0] sm:$0xff] %v799_v21  ;;  %928 = vst [vmem:[%s2008_s23 + $0xe8] sm:$0xff] %v800_v22  ;;  %v1247_v30 = vunpack.c.l.bf16 %v1446_v18  ;;  %v1248_v31 = vunpack.c.h.bf16 %v1446_v18  ;;  %v540_v32 = vmul.f32 %v1239_v26, %v1980_v1  ;;  %v541_v33 = vmul.f32 %v1240_v27, %v1980_v1  ;;  %v1452_v22 = vld [vmem:[%s1969_s9 + $0xc0] sm:$0xff]   ;;  %v1453_v27 = vld [vmem:[%s1969_s9 + $0xc8] sm:$0xff]  }
  0x93   : > { %929 = vst [vmem:[%s2008_s23 + $0xf0] sm:$0xff] %v801_v24  ;;  %930 = vst [vmem:[%s2008_s23 + $0xf8] sm:$0xff] %v802_v25  ;;  %v1251_v34 = vunpack.c.l.bf16 %v1447_v23  ;;  %v1252_v35 = vunpack.c.h.bf16 %v1447_v23  ;;  %v542_v36 = vmul.f32 %v1243_v28, %v1980_v1  ;;  %v543_v37 = vmul.f32 %v1244_v29, %v1980_v1  ;;  %v1454_v28 = vld [vmem:[%s1969_s9 + $0xd0] sm:$0xff]  }
  0x94   : > { %v544_v38 = vmul.f32 %v1247_v30, %v1980_v1  ;;  %v545_v39 = vmul.f32 %v1248_v31, %v1980_v1  ;;  %v675_v40 = vadd.f32 %v1985_v7, %v540_v32  ;;  %v676_v41 = vadd.f32 %v1985_v7, %v541_v33  ;;  %v1455_v33 = vld [vmem:[%s1969_s9 + $0xd8] sm:$0xff]  }
  0x95   : > { %v546_v42 = vmul.f32 %v1251_v34, %v1980_v1  ;;  %v547_v43 = vmul.f32 %v1252_v35, %v1980_v1  ;;  %v677_v44 = vadd.f32 %v1985_v7, %v542_v36  ;;  %v678_v45 = vadd.f32 %v1985_v7, %v543_v37 }
  0x96   : > { %v679_v46 = vadd.f32 %v1985_v7, %v544_v38  ;;  %v680_v47 = vadd.f32 %v1985_v7, %v545_v39  ;;  %v803_v49 = vmax.f32 %v675_v40, 0.0  ;;  %v804_v50 = vmax.f32 %v676_v41, 0.0 }
  0x97   : > { %v681_v51 = vadd.f32 %v1985_v7, %v546_v42  ;;  %v682_v52 = vadd.f32 %v1985_v7, %v547_v43  ;;  %v805_v55 = vmax.f32 %v677_v44, 0.0  ;;  %v806_v56 = vmax.f32 %v678_v45, 0.0 }
  0x98   : > { %v807_v57 = vmax.f32 %v679_v46, 0.0  ;;  %v808_v58 = vmax.f32 %v680_v47, 0.0  ;;  %931 = vst [vmem:[%s2008_s23 + $0x100] sm:$0xff] %v803_v49  ;;  %932 = vst [vmem:[%s2008_s23 + $0x108] sm:$0xff] %v804_v50  ;;  %v1255_v62 = vunpack.c.l.bf16 %v1448_v48  ;;  %v1256_v63 = vunpack.c.h.bf16 %v1448_v48 }
  0x99   : > { %v809_v60 = vmax.f32 %v681_v51, 0.0  ;;  %v810_v61 = vmax.f32 %v682_v52, 0.0  ;;  %933 = vst [vmem:[%s2008_s23 + $0x110] sm:$0xff] %v805_v55  ;;  %934 = vst [vmem:[%s2008_s23 + $0x118] sm:$0xff] %v806_v56  ;;  %v1259_v0 = vunpack.c.l.bf16 %v1449_v53  ;;  %v1260_v2 = vunpack.c.h.bf16 %v1449_v53 }
  0x9a   : > { %935 = vst [vmem:[%s2008_s23 + $0x120] sm:$0xff] %v807_v57  ;;  %936 = vst [vmem:[%s2008_s23 + $0x128] sm:$0xff] %v808_v58  ;;  %v1263_v3 = vunpack.c.l.bf16 %v1450_v54  ;;  %v1264_v4 = vunpack.c.h.bf16 %v1450_v54  ;;  %v548_v5 = vmul.f32 %v1255_v62, %v1980_v1  ;;  %v549_v6 = vmul.f32 %v1256_v63, %v1980_v1  ;;  %v1456_v58 = vld [vmem:[%s1969_s9 + $0xe0] sm:$0xff]   ;;  %v1457_v63 = vld [vmem:[%s1969_s9 + $0xe8] sm:$0xff]  }
  0x9b   : > { %937 = vst [vmem:[%s2008_s23 + $0x130] sm:$0xff] %v809_v60  ;;  %938 = vst [vmem:[%s2008_s23 + $0x138] sm:$0xff] %v810_v61  ;;  %v1267_v8 = vunpack.c.l.bf16 %v1451_v59  ;;  %v1268_v9 = vunpack.c.h.bf16 %v1451_v59  ;;  %v550_v10 = vmul.f32 %v1259_v0, %v1980_v1  ;;  %v551_v11 = vmul.f32 %v1260_v2, %v1980_v1  ;;  %v1458_v0 = vld [vmem:[%s1969_s9 + $0xf0] sm:$0xff]  }
  0x9c   : > { %v552_v12 = vmul.f32 %v1263_v3, %v1980_v1  ;;  %v553_v13 = vmul.f32 %v1264_v4, %v1980_v1  ;;  %v683_v14 = vadd.f32 %v1985_v7, %v548_v5  ;;  %v684_v15 = vadd.f32 %v1985_v7, %v549_v6  ;;  %v1459_v6 = vld [vmem:[%s1969_s9 + $0xf8] sm:$0xff]  }
  0x9d   : > { %v554_v16 = vmul.f32 %v1267_v8, %v1980_v1  ;;  %v555_v17 = vmul.f32 %v1268_v9, %v1980_v1  ;;  %v685_v18 = vadd.f32 %v1985_v7, %v550_v10  ;;  %v686_v19 = vadd.f32 %v1985_v7, %v551_v11 }
  0x9e   : > { %v687_v20 = vadd.f32 %v1985_v7, %v552_v12  ;;  %v688_v21 = vadd.f32 %v1985_v7, %v553_v13  ;;  %v811_v23 = vmax.f32 %v683_v14, 0.0  ;;  %v812_v24 = vmax.f32 %v684_v15, 0.0 }
  0x9f   : > { %v689_v25 = vadd.f32 %v1985_v7, %v554_v16  ;;  %v690_v26 = vadd.f32 %v1985_v7, %v555_v17  ;;  %v813_v29 = vmax.f32 %v685_v18, 0.0  ;;  %v814_v30 = vmax.f32 %v686_v19, 0.0 }
  0xa0   : > { %v815_v31 = vmax.f32 %v687_v20, 0.0  ;;  %v816_v32 = vmax.f32 %v688_v21, 0.0  ;;  %939 = vst [vmem:[%s2008_s23 + $0x140] sm:$0xff] %v811_v23  ;;  %940 = vst [vmem:[%s2008_s23 + $0x148] sm:$0xff] %v812_v24  ;;  %v1271_v36 = vunpack.c.l.bf16 %v1452_v22  ;;  %v1272_v37 = vunpack.c.h.bf16 %v1452_v22 }
  0xa1   : > { %v817_v34 = vmax.f32 %v689_v25, 0.0  ;;  %v818_v35 = vmax.f32 %v690_v26, 0.0  ;;  %941 = vst [vmem:[%s2008_s23 + $0x150] sm:$0xff] %v813_v29  ;;  %942 = vst [vmem:[%s2008_s23 + $0x158] sm:$0xff] %v814_v30  ;;  %v1275_v38 = vunpack.c.l.bf16 %v1453_v27  ;;  %v1276_v39 = vunpack.c.h.bf16 %v1453_v27 }
  0xa2   : > { %943 = vst [vmem:[%s2008_s23 + $0x160] sm:$0xff] %v815_v31  ;;  %944 = vst [vmem:[%s2008_s23 + $0x168] sm:$0xff] %v816_v32  ;;  %v1279_v40 = vunpack.c.l.bf16 %v1454_v28  ;;  %v1280_v41 = vunpack.c.h.bf16 %v1454_v28  ;;  %v556_v42 = vmul.f32 %v1271_v36, %v1980_v1  ;;  %v557_v43 = vmul.f32 %v1272_v37, %v1980_v1  ;;  %v1460_v32 = vld [vmem:[%s1969_s9 + $0x100] sm:$0xff]   ;;  %v1461_v37 = vld [vmem:[%s1969_s9 + $0x108] sm:$0xff]  }
  0xa3   : > { %945 = vst [vmem:[%s2008_s23 + $0x170] sm:$0xff] %v817_v34  ;;  %946 = vst [vmem:[%s2008_s23 + $0x178] sm:$0xff] %v818_v35  ;;  %v1283_v44 = vunpack.c.l.bf16 %v1455_v33  ;;  %v1284_v45 = vunpack.c.h.bf16 %v1455_v33  ;;  %v558_v46 = vmul.f32 %v1275_v38, %v1980_v1  ;;  %v559_v47 = vmul.f32 %v1276_v39, %v1980_v1  ;;  %v1462_v38 = vld [vmem:[%s1969_s9 + $0x110] sm:$0xff]  }
  0xa4   : > { %v560_v48 = vmul.f32 %v1279_v40, %v1980_v1  ;;  %v561_v49 = vmul.f32 %v1280_v41, %v1980_v1  ;;  %v691_v50 = vadd.f32 %v1985_v7, %v556_v42  ;;  %v692_v51 = vadd.f32 %v1985_v7, %v557_v43  ;;  %v1463_v43 = vld [vmem:[%s1969_s9 + $0x118] sm:$0xff]  }
  0xa5   : > { %v562_v52 = vmul.f32 %v1283_v44, %v1980_v1  ;;  %v563_v53 = vmul.f32 %v1284_v45, %v1980_v1  ;;  %v693_v54 = vadd.f32 %v1985_v7, %v558_v46  ;;  %v694_v55 = vadd.f32 %v1985_v7, %v559_v47 }
  0xa6   : > { %v695_v56 = vadd.f32 %v1985_v7, %v560_v48  ;;  %v696_v57 = vadd.f32 %v1985_v7, %v561_v49  ;;  %v819_v59 = vmax.f32 %v691_v50, 0.0  ;;  %v820_v60 = vmax.f32 %v692_v51, 0.0 }
  0xa7   : > { %v697_v61 = vadd.f32 %v1985_v7, %v562_v52  ;;  %v698_v62 = vadd.f32 %v1985_v7, %v563_v53  ;;  %v821_v2 = vmax.f32 %v693_v54, 0.0  ;;  %v822_v3 = vmax.f32 %v694_v55, 0.0 }
  0xa8   : > { %v823_v4 = vmax.f32 %v695_v56, 0.0  ;;  %v824_v5 = vmax.f32 %v696_v57, 0.0  ;;  %947 = vst [vmem:[%s2008_s23 + $0x180] sm:$0xff] %v819_v59  ;;  %948 = vst [vmem:[%s2008_s23 + $0x188] sm:$0xff] %v820_v60  ;;  %v1287_v10 = vunpack.c.l.bf16 %v1456_v58  ;;  %v1288_v11 = vunpack.c.h.bf16 %v1456_v58 }
  0xa9   : > { %v825_v8 = vmax.f32 %v697_v61, 0.0  ;;  %v826_v9 = vmax.f32 %v698_v62, 0.0  ;;  %949 = vst [vmem:[%s2008_s23 + $0x190] sm:$0xff] %v821_v2  ;;  %950 = vst [vmem:[%s2008_s23 + $0x198] sm:$0xff] %v822_v3  ;;  %v1291_v12 = vunpack.c.l.bf16 %v1457_v63  ;;  %v1292_v13 = vunpack.c.h.bf16 %v1457_v63 }
  0xaa   : > { %951 = vst [vmem:[%s2008_s23 + $0x1a0] sm:$0xff] %v823_v4  ;;  %952 = vst [vmem:[%s2008_s23 + $0x1a8] sm:$0xff] %v824_v5  ;;  %v1295_v14 = vunpack.c.l.bf16 %v1458_v0  ;;  %v1296_v15 = vunpack.c.h.bf16 %v1458_v0  ;;  %v564_v16 = vmul.f32 %v1287_v10, %v1980_v1  ;;  %v565_v17 = vmul.f32 %v1288_v11, %v1980_v1  ;;  %v1464_v5 = vld [vmem:[%s1969_s9 + $0x120] sm:$0xff]   ;;  %v1465_v11 = vld [vmem:[%s1969_s9 + $0x128] sm:$0xff]  }
  0xab   : > { %953 = vst [vmem:[%s2008_s23 + $0x1b0] sm:$0xff] %v825_v8  ;;  %954 = vst [vmem:[%s2008_s23 + $0x1b8] sm:$0xff] %v826_v9  ;;  %v1299_v18 = vunpack.c.l.bf16 %v1459_v6  ;;  %v1300_v19 = vunpack.c.h.bf16 %v1459_v6  ;;  %v566_v20 = vmul.f32 %v1291_v12, %v1980_v1  ;;  %v567_v21 = vmul.f32 %v1292_v13, %v1980_v1  ;;  %v1466_v12 = vld [vmem:[%s1969_s9 + $0x130] sm:$0xff]  }
  0xac   : > { %v568_v22 = vmul.f32 %v1295_v14, %v1980_v1  ;;  %v569_v23 = vmul.f32 %v1296_v15, %v1980_v1  ;;  %v699_v24 = vadd.f32 %v1985_v7, %v564_v16  ;;  %v700_v25 = vadd.f32 %v1985_v7, %v565_v17  ;;  %v1467_v17 = vld [vmem:[%s1969_s9 + $0x138] sm:$0xff]  }
  0xad   : > { %v570_v26 = vmul.f32 %v1299_v18, %v1980_v1  ;;  %v571_v27 = vmul.f32 %v1300_v19, %v1980_v1  ;;  %v701_v28 = vadd.f32 %v1985_v7, %v566_v20  ;;  %v702_v29 = vadd.f32 %v1985_v7, %v567_v21 }
  0xae   : > { %v703_v30 = vadd.f32 %v1985_v7, %v568_v22  ;;  %v704_v31 = vadd.f32 %v1985_v7, %v569_v23  ;;  %v827_v33 = vmax.f32 %v699_v24, 0.0  ;;  %v828_v34 = vmax.f32 %v700_v25, 0.0 }
  0xaf   : > { %v705_v35 = vadd.f32 %v1985_v7, %v570_v26  ;;  %v706_v36 = vadd.f32 %v1985_v7, %v571_v27  ;;  %v829_v39 = vmax.f32 %v701_v28, 0.0  ;;  %v830_v40 = vmax.f32 %v702_v29, 0.0 }
  0xb0   : > { %v831_v41 = vmax.f32 %v703_v30, 0.0  ;;  %v832_v42 = vmax.f32 %v704_v31, 0.0  ;;  %955 = vst [vmem:[%s2008_s23 + $0x1c0] sm:$0xff] %v827_v33  ;;  %956 = vst [vmem:[%s2008_s23 + $0x1c8] sm:$0xff] %v828_v34  ;;  %v1303_v46 = vunpack.c.l.bf16 %v1460_v32  ;;  %v1304_v47 = vunpack.c.h.bf16 %v1460_v32 }
  0xb1   : > { %v833_v44 = vmax.f32 %v705_v35, 0.0  ;;  %v834_v45 = vmax.f32 %v706_v36, 0.0  ;;  %957 = vst [vmem:[%s2008_s23 + $0x1d0] sm:$0xff] %v829_v39  ;;  %958 = vst [vmem:[%s2008_s23 + $0x1d8] sm:$0xff] %v830_v40  ;;  %v1307_v48 = vunpack.c.l.bf16 %v1461_v37  ;;  %v1308_v49 = vunpack.c.h.bf16 %v1461_v37 }
  0xb2   : > { %959 = vst [vmem:[%s2008_s23 + $0x1e0] sm:$0xff] %v831_v41  ;;  %960 = vst [vmem:[%s2008_s23 + $0x1e8] sm:$0xff] %v832_v42  ;;  %v1311_v50 = vunpack.c.l.bf16 %v1462_v38  ;;  %v1312_v51 = vunpack.c.h.bf16 %v1462_v38  ;;  %v572_v52 = vmul.f32 %v1303_v46, %v1980_v1  ;;  %v573_v53 = vmul.f32 %v1304_v47, %v1980_v1  ;;  %v1468_v42 = vld [vmem:[%s1969_s9 + $0x140] sm:$0xff]   ;;  %v1469_v47 = vld [vmem:[%s1969_s9 + $0x148] sm:$0xff]  }
  0xb3   : > { %961 = vst [vmem:[%s2008_s23 + $0x1f0] sm:$0xff] %v833_v44  ;;  %962 = vst [vmem:[%s2008_s23 + $0x1f8] sm:$0xff] %v834_v45  ;;  %v1315_v54 = vunpack.c.l.bf16 %v1463_v43  ;;  %v1316_v55 = vunpack.c.h.bf16 %v1463_v43  ;;  %v574_v56 = vmul.f32 %v1307_v48, %v1980_v1  ;;  %v575_v57 = vmul.f32 %v1308_v49, %v1980_v1  ;;  %v1470_v48 = vld [vmem:[%s1969_s9 + $0x150] sm:$0xff]  }
  0xb4   : > { %v576_v58 = vmul.f32 %v1311_v50, %v1980_v1  ;;  %v577_v59 = vmul.f32 %v1312_v51, %v1980_v1  ;;  %v707_v60 = vadd.f32 %v1985_v7, %v572_v52  ;;  %v708_v61 = vadd.f32 %v1985_v7, %v573_v53  ;;  %v1471_v53 = vld [vmem:[%s1969_s9 + $0x158] sm:$0xff]  }
  0xb5   : > { %v578_v62 = vmul.f32 %v1315_v54, %v1980_v1  ;;  %v579_v63 = vmul.f32 %v1316_v55, %v1980_v1  ;;  %v709_v0 = vadd.f32 %v1985_v7, %v574_v56  ;;  %v710_v2 = vadd.f32 %v1985_v7, %v575_v57 }
  0xb6   : > { %v711_v3 = vadd.f32 %v1985_v7, %v576_v58  ;;  %v712_v4 = vadd.f32 %v1985_v7, %v577_v59  ;;  %v835_v6 = vmax.f32 %v707_v60, 0.0  ;;  %v836_v8 = vmax.f32 %v708_v61, 0.0 }
  0xb7   : > { %v713_v9 = vadd.f32 %v1985_v7, %v578_v62  ;;  %v714_v10 = vadd.f32 %v1985_v7, %v579_v63  ;;  %v837_v13 = vmax.f32 %v709_v0, 0.0  ;;  %v838_v14 = vmax.f32 %v710_v2, 0.0 }
  0xb8   : > { %v839_v15 = vmax.f32 %v711_v3, 0.0  ;;  %v840_v16 = vmax.f32 %v712_v4, 0.0  ;;  %963 = vst [vmem:[%s2008_s23 + $0x200] sm:$0xff] %v835_v6  ;;  %964 = vst [vmem:[%s2008_s23 + $0x208] sm:$0xff] %v836_v8  ;;  %v1319_v20 = vunpack.c.l.bf16 %v1464_v5  ;;  %v1320_v21 = vunpack.c.h.bf16 %v1464_v5 }
  0xb9   : > { %v841_v18 = vmax.f32 %v713_v9, 0.0  ;;  %v842_v19 = vmax.f32 %v714_v10, 0.0  ;;  %965 = vst [vmem:[%s2008_s23 + $0x210] sm:$0xff] %v837_v13  ;;  %966 = vst [vmem:[%s2008_s23 + $0x218] sm:$0xff] %v838_v14  ;;  %v1323_v22 = vunpack.c.l.bf16 %v1465_v11  ;;  %v1324_v23 = vunpack.c.h.bf16 %v1465_v11 }
  0xba   : > { %967 = vst [vmem:[%s2008_s23 + $0x220] sm:$0xff] %v839_v15  ;;  %968 = vst [vmem:[%s2008_s23 + $0x228] sm:$0xff] %v840_v16  ;;  %v1327_v24 = vunpack.c.l.bf16 %v1466_v12  ;;  %v1328_v25 = vunpack.c.h.bf16 %v1466_v12  ;;  %v580_v26 = vmul.f32 %v1319_v20, %v1980_v1  ;;  %v581_v27 = vmul.f32 %v1320_v21, %v1980_v1  ;;  %v1472_v16 = vld [vmem:[%s1969_s9 + $0x160] sm:$0xff]   ;;  %v1473_v21 = vld [vmem:[%s1969_s9 + $0x168] sm:$0xff]  }
  0xbb   : > { %969 = vst [vmem:[%s2008_s23 + $0x230] sm:$0xff] %v841_v18  ;;  %970 = vst [vmem:[%s2008_s23 + $0x238] sm:$0xff] %v842_v19  ;;  %v1331_v28 = vunpack.c.l.bf16 %v1467_v17  ;;  %v1332_v29 = vunpack.c.h.bf16 %v1467_v17  ;;  %v582_v30 = vmul.f32 %v1323_v22, %v1980_v1  ;;  %v583_v31 = vmul.f32 %v1324_v23, %v1980_v1  ;;  %v1474_v22 = vld [vmem:[%s1969_s9 + $0x170] sm:$0xff]  }
  0xbc   : > { %v584_v32 = vmul.f32 %v1327_v24, %v1980_v1  ;;  %v585_v33 = vmul.f32 %v1328_v25, %v1980_v1  ;;  %v715_v34 = vadd.f32 %v1985_v7, %v580_v26  ;;  %v716_v35 = vadd.f32 %v1985_v7, %v581_v27  ;;  %v1475_v27 = vld [vmem:[%s1969_s9 + $0x178] sm:$0xff]  }
  0xbd   : > { %v586_v36 = vmul.f32 %v1331_v28, %v1980_v1  ;;  %v587_v37 = vmul.f32 %v1332_v29, %v1980_v1  ;;  %v717_v38 = vadd.f32 %v1985_v7, %v582_v30  ;;  %v718_v39 = vadd.f32 %v1985_v7, %v583_v31 }
  0xbe   : > { %v719_v40 = vadd.f32 %v1985_v7, %v584_v32  ;;  %v720_v41 = vadd.f32 %v1985_v7, %v585_v33  ;;  %v843_v43 = vmax.f32 %v715_v34, 0.0  ;;  %v844_v44 = vmax.f32 %v716_v35, 0.0 }
  0xbf   : > { %v721_v45 = vadd.f32 %v1985_v7, %v586_v36  ;;  %v722_v46 = vadd.f32 %v1985_v7, %v587_v37  ;;  %v845_v49 = vmax.f32 %v717_v38, 0.0  ;;  %v846_v50 = vmax.f32 %v718_v39, 0.0 }
  0xc0   : > { %v847_v51 = vmax.f32 %v719_v40, 0.0  ;;  %v848_v52 = vmax.f32 %v720_v41, 0.0  ;;  %971 = vst [vmem:[%s2008_s23 + $0x240] sm:$0xff] %v843_v43  ;;  %972 = vst [vmem:[%s2008_s23 + $0x248] sm:$0xff] %v844_v44  ;;  %v1335_v56 = vunpack.c.l.bf16 %v1468_v42  ;;  %v1336_v57 = vunpack.c.h.bf16 %v1468_v42 }
  0xc1   : > { %v849_v54 = vmax.f32 %v721_v45, 0.0  ;;  %v850_v55 = vmax.f32 %v722_v46, 0.0  ;;  %973 = vst [vmem:[%s2008_s23 + $0x250] sm:$0xff] %v845_v49  ;;  %974 = vst [vmem:[%s2008_s23 + $0x258] sm:$0xff] %v846_v50  ;;  %v1339_v58 = vunpack.c.l.bf16 %v1469_v47  ;;  %v1340_v59 = vunpack.c.h.bf16 %v1469_v47 }
  0xc2   : > { %975 = vst [vmem:[%s2008_s23 + $0x260] sm:$0xff] %v847_v51  ;;  %976 = vst [vmem:[%s2008_s23 + $0x268] sm:$0xff] %v848_v52  ;;  %v1343_v60 = vunpack.c.l.bf16 %v1470_v48  ;;  %v1344_v61 = vunpack.c.h.bf16 %v1470_v48  ;;  %v588_v62 = vmul.f32 %v1335_v56, %v1980_v1  ;;  %v589_v63 = vmul.f32 %v1336_v57, %v1980_v1  ;;  %v1476_v52 = vld [vmem:[%s1969_s9 + $0x180] sm:$0xff]   ;;  %v1477_v56 = vld [vmem:[%s1969_s9 + $0x188] sm:$0xff]  }
  0xc3   : > { %977 = vst [vmem:[%s2008_s23 + $0x270] sm:$0xff] %v849_v54  ;;  %978 = vst [vmem:[%s2008_s23 + $0x278] sm:$0xff] %v850_v55  ;;  %v1347_v0 = vunpack.c.l.bf16 %v1471_v53  ;;  %v1348_v2 = vunpack.c.h.bf16 %v1471_v53  ;;  %v590_v3 = vmul.f32 %v1339_v58, %v1980_v1  ;;  %v591_v4 = vmul.f32 %v1340_v59, %v1980_v1  ;;  %v1478_v57 = vld [vmem:[%s1969_s9 + $0x190] sm:$0xff]  }
  0xc4   : > { %v592_v5 = vmul.f32 %v1343_v60, %v1980_v1  ;;  %v593_v6 = vmul.f32 %v1344_v61, %v1980_v1  ;;  %v723_v8 = vadd.f32 %v1985_v7, %v588_v62  ;;  %v724_v9 = vadd.f32 %v1985_v7, %v589_v63  ;;  %v1479_v62 = vld [vmem:[%s1969_s9 + $0x198] sm:$0xff]  }
  0xc5   : > { %v594_v10 = vmul.f32 %v1347_v0, %v1980_v1  ;;  %v595_v11 = vmul.f32 %v1348_v2, %v1980_v1  ;;  %v725_v12 = vadd.f32 %v1985_v7, %v590_v3  ;;  %v726_v13 = vadd.f32 %v1985_v7, %v591_v4 }
  0xc6   : > { %v727_v14 = vadd.f32 %v1985_v7, %v592_v5  ;;  %v728_v15 = vadd.f32 %v1985_v7, %v593_v6  ;;  %v851_v17 = vmax.f32 %v723_v8, 0.0  ;;  %v852_v18 = vmax.f32 %v724_v9, 0.0  ;;  %v2326_v8 = vld [vmem:[#allocation5] ss:$0 sm:$0xff] }
  0xc7   : > { %v729_v19 = vadd.f32 %v1985_v7, %v594_v10  ;;  %v730_v20 = vadd.f32 %v1985_v7, %v595_v11  ;;  %v853_v23 = vmax.f32 %v725_v12, 0.0  ;;  %v854_v24 = vmax.f32 %v726_v13, 0.0 }
  0xc8   : > { %v855_v25 = vmax.f32 %v727_v14, 0.0  ;;  %v856_v26 = vmax.f32 %v728_v15, 0.0  ;;  %979 = vst [vmem:[%s2008_s23 + $0x280] sm:$0xff] %v851_v17  ;;  %980 = vst [vmem:[%s2008_s23 + $0x288] sm:$0xff] %v852_v18  ;;  %v1351_v30 = vunpack.c.l.bf16 %v1472_v16  ;;  %v1352_v31 = vunpack.c.h.bf16 %v1472_v16  ;;  %v2334_v17 = vld [vmem:[#allocation7] ss:$0 sm:$0xff] }
  0xc9   : > { %v857_v28 = vmax.f32 %v729_v19, 0.0  ;;  %v858_v29 = vmax.f32 %v730_v20, 0.0  ;;  %981 = vst [vmem:[%s2008_s23 + $0x290] sm:$0xff] %v853_v23  ;;  %982 = vst [vmem:[%s2008_s23 + $0x298] sm:$0xff] %v854_v24  ;;  %v1355_v32 = vunpack.c.l.bf16 %v1473_v21  ;;  %v1356_v33 = vunpack.c.h.bf16 %v1473_v21 }
  0xca   : > { %983 = vst [vmem:[%s2008_s23 + $0x2a0] sm:$0xff] %v855_v25  ;;  %984 = vst [vmem:[%s2008_s23 + $0x2a8] sm:$0xff] %v856_v26  ;;  %v1359_v34 = vunpack.c.l.bf16 %v1474_v22  ;;  %v1360_v35 = vunpack.c.h.bf16 %v1474_v22  ;;  %v596_v36 = vmul.f32 %v1351_v30, %v1980_v1  ;;  %v597_v37 = vmul.f32 %v1352_v31, %v1980_v1  ;;  %v1480_v26 = vld [vmem:[%s1969_s9 + $0x1a0] sm:$0xff]   ;;  %v1481_v31 = vld [vmem:[%s1969_s9 + $0x1a8] sm:$0xff]  }
  0xcb   : > { %985 = vst [vmem:[%s2008_s23 + $0x2b0] sm:$0xff] %v857_v28  ;;  %986 = vst [vmem:[%s2008_s23 + $0x2b8] sm:$0xff] %v858_v29  ;;  %v1363_v38 = vunpack.c.l.bf16 %v1475_v27  ;;  %v1364_v39 = vunpack.c.h.bf16 %v1475_v27  ;;  %v598_v40 = vmul.f32 %v1355_v32, %v1980_v1  ;;  %v599_v41 = vmul.f32 %v1356_v33, %v1980_v1  ;;  %v1482_v32 = vld [vmem:[%s1969_s9 + $0x1b0] sm:$0xff]  }
  0xcc   : > { %v600_v42 = vmul.f32 %v1359_v34, %v1980_v1  ;;  %v601_v43 = vmul.f32 %v1360_v35, %v1980_v1  ;;  %v731_v44 = vadd.f32 %v1985_v7, %v596_v36  ;;  %v732_v45 = vadd.f32 %v1985_v7, %v597_v37  ;;  %v1483_v37 = vld [vmem:[%s1969_s9 + $0x1b8] sm:$0xff]  }
  0xcd   : > { %v602_v46 = vmul.f32 %v1363_v38, %v1980_v1  ;;  %v603_v47 = vmul.f32 %v1364_v39, %v1980_v1  ;;  %v733_v48 = vadd.f32 %v1985_v7, %v598_v40  ;;  %v734_v49 = vadd.f32 %v1985_v7, %v599_v41 }
  0xce   : > { %v735_v50 = vadd.f32 %v1985_v7, %v600_v42  ;;  %v736_v51 = vadd.f32 %v1985_v7, %v601_v43  ;;  %v859_v53 = vmax.f32 %v731_v44, 0.0  ;;  %v860_v54 = vmax.f32 %v732_v45, 0.0 }
  0xcf   : > { %v737_v55 = vadd.f32 %v1985_v7, %v602_v46  ;;  %v738_v1 = vadd.f32 %v1985_v7, %v603_v47  ;;  %v861_v58 = vmax.f32 %v733_v48, 0.0  ;;  %v862_v59 = vmax.f32 %v734_v49, 0.0 }
  0xd0   : > { %v863_v60 = vmax.f32 %v735_v50, 0.0  ;;  %v864_v61 = vmax.f32 %v736_v51, 0.0  ;;  %987 = vst [vmem:[%s2008_s23 + $0x2c0] sm:$0xff] %v859_v53  ;;  %988 = vst [vmem:[%s2008_s23 + $0x2c8] sm:$0xff] %v860_v54  ;;  %v1367_v2 = vunpack.c.l.bf16 %v1476_v52  ;;  %v1368_v3 = vunpack.c.h.bf16 %v1476_v52 }
  0xd1   : > { %v865_v63 = vmax.f32 %v737_v55, 0.0  ;;  %v866_v0 = vmax.f32 %v738_v1, 0.0  ;;  %989 = vst [vmem:[%s2008_s23 + $0x2d0] sm:$0xff] %v861_v58  ;;  %990 = vst [vmem:[%s2008_s23 + $0x2d8] sm:$0xff] %v862_v59  ;;  %v1371_v7 = vunpack.c.l.bf16 %v1477_v56  ;;  %v1372_v4 = vunpack.c.h.bf16 %v1477_v56 }
  0xd2   : > { %991 = vst [vmem:[%s2008_s23 + $0x2e0] sm:$0xff] %v863_v60  ;;  %992 = vst [vmem:[%s2008_s23 + $0x2e8] sm:$0xff] %v864_v61  ;;  %v1375_v5 = vunpack.c.l.bf16 %v1478_v57  ;;  %v1376_v6 = vunpack.c.h.bf16 %v1478_v57  ;;  %v604_v9 = vmul.f32 %v2326_v8, %v1367_v2  ;;  %v605_v10 = vmul.f32 %v2326_v8, %v1368_v3  ;;  %v1484_v61 = vld [vmem:[%s1969_s9 + $0x1c0] sm:$0xff]   ;;  %v1485_v3 = vld [vmem:[%s1969_s9 + $0x1c8] sm:$0xff]  }
  0xd3   : > { %993 = vst [vmem:[%s2008_s23 + $0x2f0] sm:$0xff] %v865_v63  ;;  %994 = vst [vmem:[%s2008_s23 + $0x2f8] sm:$0xff] %v866_v0  ;;  %v1379_v11 = vunpack.c.l.bf16 %v1479_v62  ;;  %v1380_v12 = vunpack.c.h.bf16 %v1479_v62  ;;  %v606_v13 = vmul.f32 %v2326_v8, %v1371_v7  ;;  %v607_v14 = vmul.f32 %v2326_v8, %v1372_v4  ;;  %v1486_v7 = vld [vmem:[%s1969_s9 + $0x1d0] sm:$0xff]  }
  0xd4   : > { %v608_v15 = vmul.f32 %v2326_v8, %v1375_v5  ;;  %v609_v16 = vmul.f32 %v2326_v8, %v1376_v6  ;;  %v739_v18 = vadd.f32 %v2334_v17, %v604_v9  ;;  %v740_v19 = vadd.f32 %v2334_v17, %v605_v10  ;;  %v1487_v10 = vld [vmem:[%s1969_s9 + $0x1d8] sm:$0xff]  }
  0xd5   : > { %v610_v20 = vmul.f32 %v2326_v8, %v1379_v11  ;;  %v611_v21 = vmul.f32 %v2326_v8, %v1380_v12  ;;  %v741_v22 = vadd.f32 %v2334_v17, %v606_v13  ;;  %v742_v23 = vadd.f32 %v2334_v17, %v607_v14 }
  0xd6   : > { %v743_v24 = vadd.f32 %v2334_v17, %v608_v15  ;;  %v744_v25 = vadd.f32 %v2334_v17, %v609_v16  ;;  %v867_v27 = vmax.f32 %v739_v18, 0.0  ;;  %v868_v28 = vmax.f32 %v740_v19, 0.0 }
  0xd7   : > { %v745_v29 = vadd.f32 %v2334_v17, %v610_v20  ;;  %v746_v30 = vadd.f32 %v2334_v17, %v611_v21  ;;  %v869_v33 = vmax.f32 %v741_v22, 0.0  ;;  %v870_v34 = vmax.f32 %v742_v23, 0.0 }
  0xd8   : > { %v871_v35 = vmax.f32 %v743_v24, 0.0  ;;  %v872_v36 = vmax.f32 %v744_v25, 0.0  ;;  %995 = vst [vmem:[%s2008_s23 + $0x300] sm:$0xff] %v867_v27  ;;  %996 = vst [vmem:[%s2008_s23 + $0x308] sm:$0xff] %v868_v28  ;;  %v1383_v40 = vunpack.c.l.bf16 %v1480_v26  ;;  %v1384_v41 = vunpack.c.h.bf16 %v1480_v26 }
  0xd9   : > { %v873_v38 = vmax.f32 %v745_v29, 0.0  ;;  %v874_v39 = vmax.f32 %v746_v30, 0.0  ;;  %997 = vst [vmem:[%s2008_s23 + $0x310] sm:$0xff] %v869_v33  ;;  %998 = vst [vmem:[%s2008_s23 + $0x318] sm:$0xff] %v870_v34  ;;  %v1387_v42 = vunpack.c.l.bf16 %v1481_v31  ;;  %v1388_v43 = vunpack.c.h.bf16 %v1481_v31 }
  0xda   : > { %999 = vst [vmem:[%s2008_s23 + $0x320] sm:$0xff] %v871_v35  ;;  %1000 = vst [vmem:[%s2008_s23 + $0x328] sm:$0xff] %v872_v36  ;;  %v1391_v44 = vunpack.c.l.bf16 %v1482_v32  ;;  %v1392_v45 = vunpack.c.h.bf16 %v1482_v32  ;;  %v612_v46 = vmul.f32 %v2326_v8, %v1383_v40  ;;  %v613_v47 = vmul.f32 %v2326_v8, %v1384_v41  ;;  %v1488_v36 = vld [vmem:[%s1969_s9 + $0x1e0] sm:$0xff]   ;;  %v1489_v41 = vld [vmem:[%s1969_s9 + $0x1e8] sm:$0xff]  }
  0xdb   : > { %1001 = vst [vmem:[%s2008_s23 + $0x330] sm:$0xff] %v873_v38  ;;  %1002 = vst [vmem:[%s2008_s23 + $0x338] sm:$0xff] %v874_v39  ;;  %v1395_v48 = vunpack.c.l.bf16 %v1483_v37  ;;  %v1396_v49 = vunpack.c.h.bf16 %v1483_v37  ;;  %v614_v50 = vmul.f32 %v2326_v8, %v1387_v42  ;;  %v615_v51 = vmul.f32 %v2326_v8, %v1388_v43  ;;  %v1490_v42 = vld [vmem:[%s1969_s9 + $0x1f0] sm:$0xff]  }
  0xdc   : > { %v616_v52 = vmul.f32 %v2326_v8, %v1391_v44  ;;  %v617_v53 = vmul.f32 %v2326_v8, %v1392_v45  ;;  %v747_v54 = vadd.f32 %v2334_v17, %v612_v46  ;;  %v748_v55 = vadd.f32 %v2334_v17, %v613_v47  ;;  %v1491_v47 = vld [vmem:[%s1969_s9 + $0x1f8] sm:$0xff]  }
  0xdd   : > { %v618_v1 = vmul.f32 %v2326_v8, %v1395_v48  ;;  %v619_v56 = vmul.f32 %v2326_v8, %v1396_v49  ;;  %v749_v57 = vadd.f32 %v2334_v17, %v614_v50  ;;  %v750_v58 = vadd.f32 %v2334_v17, %v615_v51 }
  0xde   : > { %v751_v59 = vadd.f32 %v2334_v17, %v616_v52  ;;  %v752_v60 = vadd.f32 %v2334_v17, %v617_v53  ;;  %v875_v62 = vmax.f32 %v747_v54, 0.0  ;;  %v876_v63 = vmax.f32 %v748_v55, 0.0 }
  0xdf   : > { %v753_v0 = vadd.f32 %v2334_v17, %v618_v1  ;;  %v754_v2 = vadd.f32 %v2334_v17, %v619_v56  ;;  %v877_v4 = vmax.f32 %v749_v57, 0.0  ;;  %v878_v5 = vmax.f32 %v750_v58, 0.0 }
  0xe0   : > { %v879_v6 = vmax.f32 %v751_v59, 0.0  ;;  %v880_v9 = vmax.f32 %v752_v60, 0.0  ;;  %1003 = vst [vmem:[%s2008_s23 + $0x340] sm:$0xff] %v875_v62  ;;  %1004 = vst [vmem:[%s2008_s23 + $0x348] sm:$0xff] %v876_v63  ;;  %v1399_v13 = vunpack.c.l.bf16 %v1484_v61  ;;  %v1400_v14 = vunpack.c.h.bf16 %v1484_v61 }
  0xe1   : > { %v881_v11 = vmax.f32 %v753_v0, 0.0  ;;  %v882_v12 = vmax.f32 %v754_v2, 0.0  ;;  %1005 = vst [vmem:[%s2008_s23 + $0x350] sm:$0xff] %v877_v4  ;;  %1006 = vst [vmem:[%s2008_s23 + $0x358] sm:$0xff] %v878_v5  ;;  %v1403_v15 = vunpack.c.l.bf16 %v1485_v3  ;;  %v1404_v16 = vunpack.c.h.bf16 %v1485_v3 }
  0xe2   : > { %1007 = vst [vmem:[%s2008_s23 + $0x360] sm:$0xff] %v879_v6  ;;  %1008 = vst [vmem:[%s2008_s23 + $0x368] sm:$0xff] %v880_v9  ;;  %v1407_v18 = vunpack.c.l.bf16 %v1486_v7  ;;  %v1408_v19 = vunpack.c.h.bf16 %v1486_v7  ;;  %v620_v20 = vmul.f32 %v2326_v8, %v1399_v13  ;;  %v621_v21 = vmul.f32 %v2326_v8, %v1400_v14 }
  0xe3   : > { %1009 = vst [vmem:[%s2008_s23 + $0x370] sm:$0xff] %v881_v11  ;;  %1010 = vst [vmem:[%s2008_s23 + $0x378] sm:$0xff] %v882_v12  ;;  %v1411_v22 = vunpack.c.l.bf16 %v1487_v10  ;;  %v1412_v23 = vunpack.c.h.bf16 %v1487_v10  ;;  %v622_v24 = vmul.f32 %v2326_v8, %v1403_v15  ;;  %v623_v25 = vmul.f32 %v2326_v8, %v1404_v16 }
  0xe4   : > { %v624_v26 = vmul.f32 %v2326_v8, %v1407_v18  ;;  %v625_v27 = vmul.f32 %v2326_v8, %v1408_v19  ;;  %v755_v28 = vadd.f32 %v2334_v17, %v620_v20  ;;  %v756_v29 = vadd.f32 %v2334_v17, %v621_v21 }
  0xe5   : > { %v626_v30 = vmul.f32 %v2326_v8, %v1411_v22  ;;  %v627_v31 = vmul.f32 %v2326_v8, %v1412_v23  ;;  %v757_v32 = vadd.f32 %v2334_v17, %v622_v24  ;;  %v758_v33 = vadd.f32 %v2334_v17, %v623_v25 }
  0xe6   : > { %v759_v34 = vadd.f32 %v2334_v17, %v624_v26  ;;  %v760_v35 = vadd.f32 %v2334_v17, %v625_v27  ;;  %v883_v37 = vmax.f32 %v755_v28, 0.0  ;;  %v884_v38 = vmax.f32 %v756_v29, 0.0 }
  0xe7   : > { %v761_v39 = vadd.f32 %v2334_v17, %v626_v30  ;;  %v762_v40 = vadd.f32 %v2334_v17, %v627_v31  ;;  %v885_v43 = vmax.f32 %v757_v32, 0.0  ;;  %v886_v44 = vmax.f32 %v758_v33, 0.0 }
  0xe8   : > { %v887_v45 = vmax.f32 %v759_v34, 0.0  ;;  %v888_v46 = vmax.f32 %v760_v35, 0.0  ;;  %1011 = vst [vmem:[%s2008_s23 + $0x380] sm:$0xff] %v883_v37  ;;  %1012 = vst [vmem:[%s2008_s23 + $0x388] sm:$0xff] %v884_v38  ;;  %v1415_v50 = vunpack.c.l.bf16 %v1488_v36  ;;  %v1416_v51 = vunpack.c.h.bf16 %v1488_v36 }
  0xe9   : > { %v889_v48 = vmax.f32 %v761_v39, 0.0  ;;  %v890_v49 = vmax.f32 %v762_v40, 0.0  ;;  %1013 = vst [vmem:[%s2008_s23 + $0x390] sm:$0xff] %v885_v43  ;;  %1014 = vst [vmem:[%s2008_s23 + $0x398] sm:$0xff] %v886_v44  ;;  %v1419_v52 = vunpack.c.l.bf16 %v1489_v41  ;;  %v1420_v53 = vunpack.c.h.bf16 %v1489_v41 }
  0xea   : > { %1015 = vst [vmem:[%s2008_s23 + $0x3a0] sm:$0xff] %v887_v45  ;;  %1016 = vst [vmem:[%s2008_s23 + $0x3a8] sm:$0xff] %v888_v46  ;;  %v1423_v54 = vunpack.c.l.bf16 %v1490_v42  ;;  %v1424_v55 = vunpack.c.h.bf16 %v1490_v42  ;;  %v628_v1 = vmul.f32 %v2326_v8, %v1415_v50  ;;  %v629_v56 = vmul.f32 %v2326_v8, %v1416_v51 }
  0xeb   : > { %1017 = vst [vmem:[%s2008_s23 + $0x3b0] sm:$0xff] %v889_v48  ;;  %1018 = vst [vmem:[%s2008_s23 + $0x3b8] sm:$0xff] %v890_v49  ;;  %v1427_v57 = vunpack.c.l.bf16 %v1491_v47  ;;  %v1428_v58 = vunpack.c.h.bf16 %v1491_v47  ;;  %v630_v59 = vmul.f32 %v2326_v8, %v1419_v52  ;;  %v631_v60 = vmul.f32 %v2326_v8, %v1420_v53 }
  0xec   : > { %v632_v61 = vmul.f32 %v2326_v8, %v1423_v54  ;;  %v633_v62 = vmul.f32 %v2326_v8, %v1424_v55  ;;  %v763_v63 = vadd.f32 %v2334_v17, %v628_v1  ;;  %v764_v0 = vadd.f32 %v2334_v17, %v629_v56 }
  0xed   : > { %v634_v2 = vmul.f32 %v2326_v8, %v1427_v57  ;;  %v635_v3 = vmul.f32 %v2326_v8, %v1428_v58  ;;  %v765_v7 = vadd.f32 %v2334_v17, %v630_v59  ;;  %v766_v4 = vadd.f32 %v2334_v17, %v631_v60 }
  0xee   : > { %v767_v5 = vadd.f32 %v2334_v17, %v632_v61  ;;  %v768_v6 = vadd.f32 %v2334_v17, %v633_v62  ;;  %v891_v9 = vmax.f32 %v763_v63, 0.0  ;;  %v892_v10 = vmax.f32 %v764_v0, 0.0 }
  0xef   : > { %v769_v8 = vadd.f32 %v2334_v17, %v634_v2  ;;  %v770_v11 = vadd.f32 %v2334_v17, %v635_v3  ;;  %v893_v12 = vmax.f32 %v765_v7, 0.0  ;;  %v894_v13 = vmax.f32 %v766_v4, 0.0 }
  0xf0   : > { %v895_v14 = vmax.f32 %v767_v5, 0.0  ;;  %v896_v15 = vmax.f32 %v768_v6, 0.0  ;;  %1019 = vst [vmem:[%s2008_s23 + $0x3c0] sm:$0xff] %v891_v9  ;;  %1020 = vst [vmem:[%s2008_s23 + $0x3c8] sm:$0xff] %v892_v10 }
  0xf1   : > { %v897_v16 = vmax.f32 %v769_v8, 0.0  ;;  %v898_v17 = vmax.f32 %v770_v11, 0.0  ;;  %1021 = vst [vmem:[%s2008_s23 + $0x3d0] sm:$0xff] %v893_v12  ;;  %1022 = vst [vmem:[%s2008_s23 + $0x3d8] sm:$0xff] %v894_v13 }
  0xf2   : > { %1023 = vst [vmem:[%s2008_s23 + $0x3e0] sm:$0xff] %v895_v14  ;;  %1024 = vst [vmem:[%s2008_s23 + $0x3e8] sm:$0xff] %v896_v15 }
  0xf3   : > { %1025 = vst [vmem:[%s2008_s23 + $0x3f0] sm:$0xff] %v897_v16  ;;  %1026 = vst [vmem:[%s2008_s23 + $0x3f8] sm:$0xff] %v898_v17 }
  0xf4   : > { %1680 = shalt.err (!%p1677_p9)
}
  0xf5   : > { %s1681_s22 = scalar_lea.hbm %s2435_s18, 16384  ;;  %s1685_s5 = scalar_lea.hbm %s2497_s3, 32768 }
  0xf6   : > { %p1682_p8 = scmp.ne.s32.totalorder %s2435_s18, %s1681_s22  ;;  %p1686_p7 = scmp.lt.u32.totalorder %s2435_s18, %s2497_s3 }
  0xf7   : > { %p1687_p12 = scmp.lt.u32.totalorder %s1685_s5, %s1681_s22  ;;  %p1689_p5 = scmp.lt.u32.totalorder %s1681_s22, %s2435_s18 }
  0xf8   : > { %p1683_p13 = pnand %p1682_p8, %p2516_p10 }
  0xf9   : > { %p1688_p3 = por %p1687_p12, %p1686_p7 }
  0xfa   : > { %p1684_p4 = pneg %p1683_p13 }
  0xfb   : > { %p1690_p11 = por %p1689_p5, %p1688_p3 }
  0xfd   : > { %p1691_p1 = pnand %p1690_p11, %p1684_p4 }
  0xff   : > { %1694 = shalt.err (!%p1691_p1)
}
 0x100   : > { %s1761_s23 = smov 128   ;;  %s1762_s26 = smov 8  }
 0x101   : > { %1502 = dma.vmem_to_hbm [thread:$0]  (%p2516_p10), %s2437_s29, 16384, %s2435_s18, %s1028_s19, %s1761_s23, %s1761_s23, %s1762_s26  }
 0x102 PF: > { %s1057_s15 = sand.u32 1, %s1733_s12   ;;  %p2517_p0 = scmp.ne.s32.totalorder %s2508_s25, 0 }
 0x103   : > { %p2518_p6 = scmp.ge.s32.totalorder %s1753_s17, 2  ;;  %s1058_s10 = scalar_lea.sflag [#allocation4], %s1057_s15 }
 0x105   : > { %p1516_p2 = pnand %p2518_p6, %p2517_p0 }
 0x107   : > { %1728 = dma.done.wait (!%p1516_p2), %s1058_s10, 16384  }
 0x108   : > { %1730 = vsyncadd (!%p1516_p2), %s1058_s10, 4294950912  ;;  %s20_s17 = sadd.s32 1, %s1753_s17   ;;  %s2519_s12 = smov %s1737_s13 }
 0x109   : > { %p17_p9 = scmp.ge.s32.totalorder %s20_s17, 4   ;;  %s2520_s13 = smov %s1741_s14 }
 0x10a   : > { %s2521_s14 = smov %s1932_s28  ;;  %s2522_s15 = smov %s1749_s16 }
 0x10b   : > { %s2523_s16 = smov %s2525_s30  ;;  %19 = sbr.rel (!%p17_p9) target bundleno = 7 (0x7), region = 87 }
 0x112   :  { %1063 = vsyncpa [#allocation3], 1 }
 0x113   :  { %1065 = vsyncpa [#allocation3 + $0x1], 1 }
 0x114   :  { %1066 = vsyncpa [#allocation6], 1 }
 0x115   :  { %1067 = vsyncpa [#allocation4], 1 }
 0x116   :  { %1069 = vsyncpa [#allocation4 + $0x1], 1 }

// kernel: up_conv_forward.2
= control target key start
LH: loop header
LB: loop body
LE: loop exit
PB: predicated region body
PF: predicated region fallthrough
CT: control target
= control target key end

     0   :  { %11 = vsyncpa [#allocation3], 0  ;;  %s13667_s0 = inlined_call_operand.hbm [shape: f32[2,18,18,4], index: 0, kind: input, shape index: {}]   ;;  %s13668_s1 = inlined_call_operand.hbm [shape: f32[4,4,4,128], index: 1, kind: input, shape index: {}]   ;;  %s13669_s2 = inlined_call_operand.hbm [shape: f32[1,128], index: 2, kind: input, shape index: {}]   ;;  %s13670_s3 = inlined_call_operand.hbm [shape: bf16[2,4,16,16,128], index: 3, kind: output, shape index: {0}]   ;;  %s13671_s4 = inlined_call_operand.hbm [shape: f32[2,8,128], index: 4, kind: output, shape index: {1}]   ;;  %s13672_s5 = inlined_call_operand.hbm [shape: f32[2,8,128], index: 5, kind: output, shape index: {2}]  }
   0x1   :  { %13 = vsyncpa [#allocation3 + $0x1], 0 }
   0x2   :  { %14 = vsyncpa [#allocation6], 0 }
   0x3   :  { %15 = vsyncpa [#allocation4], 0 }
   0x4   :  { %17 = vsyncpa [#allocation4 + $0x1], 0 }
   0x5   :  { %18 = vsyncpa [#allocation10], 0 }
   0x6   :  { %20 = vsyncpa [#allocation10 + $0x1], 0  ;;  %s11503_s18 = smov 0   ;;  %s11505_s19 = smov 0  }
   0x7   :  { %s11507_s20 = smov 0   ;;  %s11509_s21 = smov 0  }
   0x8   :  { %s11511_s22 = smov 0   ;;  %s11513_s23 = smov 0  }
   0x9 LB: > { %s11534_s24 = sadd.s32 4294967295, %s11459_s23   ;;  %s13674_s25 = sadd.s32 4294967294, %s11459_s23   ;;  %s11459_s23 = sphi %s11513_s23, %s26_s23   ;;  %s11455_s22 = sphi %s11511_s22, %s13785_s22   ;;  %s11451_s21 = sphi %s11509_s21, %s13784_s21   ;;  %s11447_s20 = sphi %s11507_s20, %s13783_s20   ;;  %s11443_s19 = sphi %s11505_s19, %s13782_s19   ;;  %s11439_s18 = sphi %s11503_s18, %s13781_s18  }
   0xa   : > { %p58_p0 = scmp.ne.s32.totalorder %s11443_s19, %s11439_s18  ;;  %p13673_p1 = scmp.eq.s32.totalorder %s11534_s24, 0 }
   0xb   : > { %p142_p3 = scmp.eq.s32.totalorder %s13674_s25, 1  ;;  %p7743_p5 = scmp.ge.s32.totalorder %s11459_s23, 1 }
   0xc   : > { %p11545_p4 = por %p13673_p1, %p58_p0  ;;  %p205_p7 = scmp.lt.s32.totalorder %s11459_s23, 3 }
   0xd   : > { %p11550_p6 = por %p142_p3, %p58_p0  ;;  %s11461_s29 = smov [#allocation5]  }
   0xe   : > { %s13707_s26 = scalar_select %p11545_p4, 1, 0 }
   0xf   : > { %s13708_s27 = scalar_select %p11550_p6, 1, 0 }
  0x10   : > { %p11555_p8 = pnand %p7743_p5, %p205_p7  ;;  %s219_s30 = sshll.u32 %s11461_s29, 4  ;;  %s11559_s30 = int_to_ptr.vmem [resolvable:$true] %s219_s30 }
  0x11   : > { %s11462_s7 = smov [#allocation7]   ;;  %s11227_s11 = scalar_lea.hbm %s13668_s1, 1024 }
  0x12   : > { %p11143_p9 = pneg %p11555_p8  ;;  %s235_s8 = sshll.u32 %s11462_s7, 4  ;;  %s11570_s8 = int_to_ptr.vmem [resolvable:$true] %s235_s8 }
  0x13   : > { %p11228_p12 = scmp.ne.s32.totalorder %s13668_s1, %s11227_s11  ;;  %p11234_p5 = scmp.lt.u32.totalorder %s11227_s11, %s13668_s1 }
  0x14   : > { %p11566_p11 = pnand %p11143_p9, %p13673_p1 }
  0x16   : > { %p11229_p13 = pneg %p11566_p11 }
  0x18   : > { %p11230_p0 = pnand %p11229_p13, %p11228_p12 }
  0x1a   : > { %p11231_p3 = pneg %p11230_p0 }
  0x1c   : > { %p11236_p7 = pnand %p11234_p5, %p11231_p3 }
  0x1e   : > { %11239 = shalt.err (!%p11236_p7)
}
  0x1f   : > { %s11240_s16 = scalar_lea.vmem %s11559_s30, 1024  ;;  %p11248_p2 = scmp.lt.s32.totalorder %s11559_s30, %s11559_s30 }
  0x20   : > { %p11241_p9 = scmp.ne.s32.totalorder %s11559_s30, %s11240_s16  ;;  %p11249_p12 = scmp.lt.s32.totalorder %s11240_s16, %s11240_s16 }
  0x22   : > { %p11243_p10 = pnand %p11241_p9, %p11229_p13  ;;  %p11250_p0 = por %p11249_p12, %p11248_p2 }
  0x24   : > { %p11244_p1 = pneg %p11243_p10 }
  0x26   : > { %p11251_p6 = pnand %p11250_p0, %p11244_p1 }
  0x28   : > { %11254 = shalt.err (!%p11251_p6)
}
  0x29   : > { %s11463_s17 = smov 64   ;;  %s11464_s29 = smov 4  }
  0x2a   : > { %11146 = dma.hbm_to_vmem [thread:$0]  (!%p11566_p11), %s13668_s1, 1024, %s11559_s30, [#allocation6], %s11463_s17, %s11463_s17, %s11464_s29  }
  0x2b   : > { %s11255_s12 = scalar_lea.hbm %s13669_s2, 16 }
  0x2c   : > { %p11256_p2 = scmp.ne.s32.totalorder %s13669_s2, %s11255_s12  ;;  %p11262_p10 = scmp.lt.u32.totalorder %s11255_s12, %s13669_s2 }
  0x2e   : > { %p11258_p1 = pnand %p11256_p2, %p11229_p13 }
  0x30   : > { %p11259_p6 = pneg %p11258_p1 }
  0x32   : > { %p11264_p3 = pnand %p11262_p10, %p11259_p6 }
  0x34   : > { %11267 = shalt.err (!%p11264_p3)
}
  0x35   : > { %s11268_s30 = scalar_lea.vmem %s11570_s8, 16  ;;  %s11275_s17 = scalar_lea.vmem %s11570_s8, 32 }
  0x36   : > { %p11269_p5 = scmp.ne.s32.totalorder %s11570_s8, %s11268_s30  ;;  %p11276_p12 = scmp.lt.s32.totalorder %s11570_s8, %s11570_s8 }
  0x37   : > { %p11277_p0 = scmp.lt.s32.totalorder %s11275_s17, %s11268_s30 }
  0x38   : > { %p11271_p7 = pnand %p11269_p5, %p11229_p13 }
  0x39   : > { %p11278_p2 = por %p11277_p0, %p11276_p12 }
  0x3a   : > { %p11272_p9 = pneg %p11271_p7 }
  0x3c   : > { %p11279_p1 = pnand %p11278_p2, %p11272_p9 }
  0x3e   : > { %11282 = shalt.err (!%p11279_p1)
}
  0x3f   : > { %11149 = dma.hbm_to_vmem [thread:$0]  (!%p11566_p11), %s13669_s2, 16, %s11570_s8, [#allocation6]  }
  0x40   : > { %s38_s9 = sadd.s32 1, %s11455_s22  ;;  %s45_s10 = sadd.s32 1, %s11447_s20 }
  0x41   : > { %p40_p13 = scmp.ge.s32.totalorder %s38_s9, 2  ;;  %p52_p6 = scmp.ne.s32.totalorder %s11447_s20, %s11443_s19 }
  0x42   : > { %p53_p10 = scmp.eq.s32.totalorder %s11459_s23, 0  ;;  %p11166_p3 = scmp.lt.s32.totalorder %s11459_s23, 2 }
  0x43   : > { %s13787_s9 = smov (%p40_p13, %s38_s9), 0  ;;  %p13711_p7 = scmp.eq.s32.totalorder %s11534_s24, 1 }
  0x44   : > { %p54_p5 = por %p53_p10, %p52_p6  ;;  %s42_s11 = ssub.s32 %s11455_s22, %s13787_s9 }
  0x45   : > { %p11635_p9 = por %p13711_p7, %p52_p6  ;;  %s246_s12 = sand.u32 1, %s11447_s20  }
  0x46   : > { %p43_p12 = scmp.eq.s32.totalorder %s42_s11, 0  ;;  %s11124_s8 = smul.u32 432, %s246_s12 }
  0x47   : > { %s13712_s6 = scalar_select %p11635_p9, 1, 0 }
  0x48   : > { %p11642_p11 = pnand %p11166_p3, %p54_p5  ;;  %s11125_s15 = smul.u32 6912, %s11455_s22 }
  0x49   : > { %s11647_s14 = scalar_select %p43_p12, %s11447_s20, %s45_s10  }
  0x4a   : > { %s250_s16 = scalar_lea.vmem [#allocation2], %s11124_s8  ;;  %s11653_s7 = scalar_lea.hbm %s13667_s0, %s11125_s15 }
  0x4b   : > { %s257_s30 = sshll.u32 %s250_s16, 4  ;;  %s11657_s11 = scalar_lea.sflag [#allocation3], %s246_s12  ;;  %s11655_s30 = int_to_ptr.vmem [resolvable:$true] %s257_s30 }
  0x4c   : > { %s11283_s25 = scalar_lea.hbm %s11653_s7, 6912  ;;  %p11285_p2 = pneg %p11642_p11 }
  0x4d   : > { %p11284_p0 = scmp.ne.s32.totalorder %s11653_s7, %s11283_s25  ;;  %s11288_s15 = scalar_lea.hbm %s13667_s0, 13824 }
  0x4e   : > { %p11289_p6 = scmp.lt.u32.totalorder %s11653_s7, %s13667_s0  ;;  %p11290_p10 = scmp.lt.u32.totalorder %s11288_s15, %s11283_s25 }
  0x4f   : > { %p11286_p1 = pnand %p11285_p2, %p11284_p0  ;;  %p11292_p5 = scmp.lt.u32.totalorder %s11283_s25, %s11653_s7 }
  0x50   : > { %p11291_p3 = por %p11290_p10, %p11289_p6 }
  0x51   : > { %p11287_p13 = pneg %p11286_p1 }
  0x52   : > { %p11293_p7 = por %p11292_p5, %p11291_p3 }
  0x54   : > { %p11294_p12 = pnand %p11293_p7, %p11287_p13 }
  0x56   : > { %11297 = shalt.err (!%p11294_p12)
}
  0x57   : > { %s11298_s12 = scalar_lea.vmem %s11655_s30, 6912  ;;  %s11465_s29 = smov [#allocation2]  }
  0x58   : > { %p11299_p0 = scmp.ne.s32.totalorder %s11655_s30, %s11298_s12  ;;  %s11303_s10 = sshll.u32 %s11465_s29, 4  ;;  %s11304_s10 = int_to_ptr.vmem [resolvable:$false] %s11303_s10 }
  0x59   : > { %s11305_s8 = scalar_lea.vmem %s11304_s10, 13824  ;;  %p11306_p4 = scmp.lt.s32.totalorder %s11655_s30, %s11304_s10 }
  0x5a   : > { %p11301_p1 = pnand %p11299_p0, %p11285_p2  ;;  %p11307_p6 = scmp.lt.s32.totalorder %s11305_s8, %s11298_s12 }
  0x5c   : > { %p11302_p9 = pneg %p11301_p1  ;;  %p11308_p10 = por %p11307_p6, %p11306_p4 }
  0x5e   : > { %p11309_p3 = pnand %p11308_p10, %p11302_p9 }
  0x60   : > { %11312 = shalt.err (!%p11309_p3)
}
  0x61   : > { %s11466_s25 = smov 128   ;;  %s11467_s15 = smov 8  }
  0x62   : > { %11153 = dma.hbm_to_vmem [thread:$0]  (!%p11642_p11), %s11653_s7, 6912, %s11655_s30, %s11657_s11, %s11466_s25, %s11466_s25, %s11467_s15  }
  0x63   : > { %269 = sbr.rel (%p11555_p8) target bundleno = 920 (0x398), region = 32 }
  0x6a   : > { %s11688_s16 = sand.u32 1, %s11443_s19   ;;  %p13714_p4 = scmp.ne.s32.totalorder %s13707_s26, 0 }
  0x6b   : > { %s11126_s17 = smul.u32 432, %s11688_s16  ;;  %s272_s12 = scalar_lea.sflag [#allocation3], %s11688_s16 }
  0x6d   : > { %s11692_s29 = scalar_lea.vmem [#allocation2], %s11126_s17 }
  0x6e   : > { %11422 = dma.done.wait (%p13714_p4), %s272_s12, 6912  }
  0x6f   : > { %11424 = vsyncadd (%p13714_p4), %s272_s12, 4294960384  ;;  %p13715_p9 = scmp.eq.s32.totalorder %s11534_s24, 0 }
  0x71   : > { %11426 = dma.done.wait (%p13715_p9), [#allocation6], 1040   ;;  %p13716_p8 = pmov %p13715_p9 }
  0x72   : > { %vm485_vm0 = vcmask 1043456   ;;  %vm388_vm1 = vcmask 31744   ;;  %v387_v0 = vld [vmem:[#allocation5 + $0x4] sm:$0xf]  ;;  %v2192_v1 = vld [vmem:[#allocation5 + $0x14] sm:$0xf] }
  0x73   : > { %11428 = vsyncadd (%p13716_p8), [#allocation6], 4294966256  ;;  %v11703_v2 = vld [vmem:[%s11692_s29 + $0x1] sm:$0xff]  ;;  %9940 = vmatprep.subr.msk.mxu0 %vm485_vm0, %v387_v0  ;;  %10140 = vmatprep.subr.msk.mxu1 %vm485_vm0, %v2192_v1  ;;  %v11709_v4 = vld [vmem:[%s11692_s29 + $0x9] sm:$0xff]  ;;  %s7751_s26 = sshll.u32 %s11688_s16, 9  ;;  %s9028_s13 = sshll.u32 %s11451_s21, 13 }
  0x74   : > { %v2159_v3 = vld [vmem:[%s11692_s29 + $0x2] sm:$0xff]  ;;  %9941 = vmatpush3.msk.msra.mxu0 %vm485_vm0, %v387_v0  ;;  %9942 = vmatprep.mubr.msk.f32.mxu0 %vm388_vm1, %v11703_v2  ;;  %v2160_v6 = vld [vmem:[%s11692_s29 + $0xa] sm:$0xff]  ;;  %v11718_v8 = vld [vmem:[%s11692_s29 + $0x19] sm:$0xff]  ;;  %s13079_s28 = scalar_lea.vmem [#allocation8], %s7751_s26  ;;  %s13547_s10 = scalar_lea.hbm %s13670_s3, %s9028_s13 }
  0x75   : > { %v353_v5 = vld [vmem:[#allocation5] sm:$0xf]  ;;  %10141 = vmatpush3.msk.msra.mxu1 %vm485_vm0, %v2192_v1  ;;  %10142 = vmatprep.mubr.msk.f32.mxu1 %vm388_vm1, %v2159_v3  ;;  %v2158_v7 = vld [vmem:[#allocation5 + $0x10] sm:$0xf]  ;;  %v11826_v30 = vld [vmem:[#allocation5 + $0x8] sm:$0xf] }
  0x76   : > { %9943 = vmatmul.mubr.msk.f32.vlgmr.msra.gmra.mrb[0].mxu0 %vm388_vm1, %v11709_v4  ;;  %9990 = vmatprep.subr.msk.mxu0 %vm485_vm0, %v353_v5  ;;  %v11724_v9 = vld [vmem:[%s11692_s29 + $0x1a] sm:$0xff]  ;;  %v11735_v11 = vld [vmem:[%s11692_s29 + $0x22] sm:$0xff]  ;;  %v11738_v12 = vld [vmem:[%s11692_s29 + $0x31] sm:$0xff]  ;;  %s7544_s30 = sshll.u32 %s13079_s28, 4  ;;  %s7520_s8 = scalar_lea.sflag [#allocation4], %s11688_s16  ;;  %s13549_s30 = int_to_ptr.vmem [resolvable:$true] %s7544_s30 }
  0x77   : > { %13717 = vst [vmem:[#allocation16_spill] sm:$0xff] %v11724_v9  ;;  %10143 = vmatmul.mubr.msk.f32.vlgmr.msra.gmra.mrb[0].mxu1 %vm388_vm1, %v2160_v6  ;;  %9991 = vmatpush3.msk.msra.mxu0 %vm485_vm0, %v353_v5  ;;  %v11729_v10 = vld [vmem:[%s11692_s29 + $0x21] sm:$0xff]  ;;  %13718 = vst [vmem:[#allocation17_spill] sm:$0xff] %v11735_v11  ;;  %v11744_v13 = vld [vmem:[%s11692_s29 + $0x32] sm:$0xff]  ;;  %s11313_s25 = scalar_lea.vmem %s13549_s30, 8192  ;;  %p13777_p2 = scmp.ne.s32.totalorder %s13712_s6, 0 }
  0x78   : > { %10190 = vmatprep.subr.msk.mxu1 %vm485_vm0, %v2158_v7  ;;  %9945 = vmatprep.mubr.msk.f32.mxu0 %vm388_vm1, %v11718_v8  ;;  %13719 = vst [vmem:[#allocation18_spill] sm:$0xff] %v11744_v13  ;;  %v11753_v14 = vld [vmem:[%s11692_s29 + $0x39] sm:$0xff]  ;;  %v11761_v16 = vld [vmem:[%s11692_s29 + $0x49] sm:$0xff]  ;;  %v11773_v18 = vld [vmem:[%s11692_s29 + $0x51] sm:$0xff]  ;;  %p11314_p11 = scmp.ne.s32.totalorder %s13549_s30, %s11313_s25  ;;  %s11468_s15 = smov [#allocation8]  }
  0x79   : > { %10145 = vmatprep.mubr.msk.f32.mxu1 %vm388_vm1, %v11724_v9  ;;  %10191 = vmatpush3.msk.msra.mxu1 %vm485_vm0, %v2158_v7  ;;  %v11758_v15 = vld [vmem:[%s11692_s29 + $0x3a] sm:$0xff]  ;;  %v11764_v17 = vld [vmem:[%s11692_s29 + $0x4a] sm:$0xff]  ;;  %v11778_v19 = vld [vmem:[%s11692_s29 + $0x52] sm:$0xff]  ;;  %s11317_s17 = sshll.u32 %s11468_s15, 4  ;;  %s11318_s17 = int_to_ptr.vmem [resolvable:$false] %s11317_s17 }
  0x7a   : > { %9946 = vmatmul.mubr.msk.f32.gmra.mrb[2].mxu0 %vm388_vm1, %v11729_v10  ;;  %13720 = vst [vmem:[#allocation19_spill] sm:$0xff] %v11758_v15  ;;  %13721 = vst [vmem:[#allocation20_spill] sm:$0xff] %v11764_v17  ;;  %v11781_v20 = vld [vmem:[%s11692_s29 + $0x61] sm:$0xff]  ;;  %v11793_v22 = vld [vmem:[%s11692_s29 + $0x69] sm:$0xff]  ;;  %10040 = vmatprep.subr.msk.mxu0 %vm485_vm0, %v11826_v30  ;;  %p11315_p13 = pnand %p11314_p11, %p13777_p2  ;;  %s11319_s12 = scalar_lea.vmem %s11318_s17, 16384 }
  0x7b   : > { %10146 = vmatmul.mubr.msk.f32.gmra.mrb[2].mxu1 %vm388_vm1, %v11735_v11  ;;  %9948 = vmatprep.mubr.msk.f32.mxu0 %vm388_vm1, %v11738_v12  ;;  %13722 = vst [vmem:[#allocation21_spill] sm:$0xff] %v11778_v19  ;;  %v11784_v21 = vld [vmem:[%s11692_s29 + $0x62] sm:$0xff]  ;;  %v11798_v23 = vld [vmem:[%s11692_s29 + $0x6a] sm:$0xff]  ;;  %v11801_v24 = vld [vmem:[%s11692_s29 + $0x79] sm:$0xff]  ;;  %p11320_p7 = scmp.lt.s32.totalorder %s13549_s30, %s11318_s17  ;;  %p11321_p12 = scmp.lt.s32.totalorder %s11319_s12, %s11313_s25 }
  0x7c   : > { %10148 = vmatprep.mubr.msk.f32.mxu1 %vm388_vm1, %v11744_v13  ;;  %13723 = vst [vmem:[#allocation22_spill] sm:$0xff] %v11784_v21  ;;  %13724 = vst [vmem:[#allocation23_spill] sm:$0xff] %v11798_v23  ;;  %v11804_v25 = vld [vmem:[%s11692_s29 + $0x7a] sm:$0xff]  ;;  %v11818_v27 = vld [vmem:[%s11692_s29 + $0x82] sm:$0xff]  ;;  %p11316_p5 = pneg %p11315_p13 }
  0x7d   : > { %13725 = vst [vmem:[#allocation24_spill] sm:$0xff] %v11804_v25  ;;  %v11813_v26 = vld [vmem:[%s11692_s29 + $0x81] sm:$0xff]  ;;  %13726 = vst [vmem:[#allocation25_spill] sm:$0xff] %v11818_v27  ;;  %v11821_v28 = vld [vmem:[%s11692_s29 + $0x91] sm:$0xff]  ;;  %p11322_p0 = por %p11321_p12, %p11320_p7 }
  0x7e   : > { %9949 = vmatmul.mubr.msk.f32.gmra.mrb[4].mxu0 %vm388_vm1, %v11753_v14  ;;  %v11824_v29 = vld [vmem:[%s11692_s29 + $0x92] sm:$0xff]  ;;  %v11844_v33 = vld [vmem:[%s11692_s29 + $0x9a] sm:$0xff]  ;;  %v11847_v34 = vld [vmem:[%s11692_s29 + $0xa9] sm:$0xff] }
  0x7f   : > { %10149 = vmatmul.mubr.msk.f32.gmra.mrb[4].mxu1 %vm388_vm1, %v11758_v15  ;;  %9951 = vmatprep.mubr.msk.f32.mxu0 %vm388_vm1, %v11761_v16  ;;  %13727 = vst [vmem:[#allocation26_spill] sm:$0xff] %v11824_v29  ;;  %v11828_v31 = vld [vmem:[#allocation5 + $0x18] sm:$0xf]  ;;  %13728 = vst [vmem:[#allocation27_spill] sm:$0xff] %v11844_v33  ;;  %v12254_v13 = vld [vmem:[%s11692_s29 + $0x170] sm:$0xff]  ;;  %p11323_p1 = pnand %p11322_p0, %p11316_p5 }
  0x80   : > { %10151 = vmatprep.mubr.msk.f32.mxu1 %vm388_vm1, %v11764_v17  ;;  %v11839_v32 = vld [vmem:[%s11692_s29 + $0x99] sm:$0xff]  ;;  %10240 = vmatprep.subr.msk.mxu1 %vm485_vm0, %v11828_v31  ;;  %v11852_v35 = vld [vmem:[%s11692_s29 + $0xaa] sm:$0xff]  ;;  %v11869_v38 = vld [vmem:[%s11692_s29 + $0xc1] sm:$0xff] }
  0x81   : > { %13729 = vst [vmem:[#allocation28_spill] sm:$0xff] %v11852_v35  ;;  %v11861_v36 = vld [vmem:[%s11692_s29 + $0xb1] sm:$0xff]  ;;  %v11872_v39 = vld [vmem:[%s11692_s29 + $0xc2] sm:$0xff]  ;;  %v11889_v42 = vld [vmem:[%s11692_s29 + $0xd9] sm:$0xff] }
  0x82   : > { %9952 = vmatmul.mubr.msk.f32.gmra.mrb[6].mxu0 %vm388_vm1, %v11773_v18  ;;  %v11866_v37 = vld [vmem:[%s11692_s29 + $0xb2] sm:$0xff]  ;;  %13731 = vst [vmem:[#allocation30_spill] sm:$0xff] %v11872_v39  ;;  %v11881_v40 = vld [vmem:[%s11692_s29 + $0xc9] sm:$0xff]  ;;  %v11892_v43 = vld [vmem:[%s11692_s29 + $0xda] sm:$0xff] }
  0x83   : > { %10152 = vmatmul.mubr.msk.f32.gmra.mrb[6].mxu1 %vm388_vm1, %v11778_v19  ;;  %9954 = vmatprep.mubr.msk.f32.mxu0 %vm388_vm1, %v11781_v20  ;;  %13730 = vst [vmem:[#allocation29_spill] sm:$0xff] %v11866_v37  ;;  %v11886_v41 = vld [vmem:[%s11692_s29 + $0xca] sm:$0xff]  ;;  %13733 = vst [vmem:[#allocation32_spill] sm:$0xff] %v11892_v43  ;;  %v11901_v44 = vld [vmem:[%s11692_s29 + $0xe1] sm:$0xff] }
  0x84   : > { %10154 = vmatprep.mubr.msk.f32.mxu1 %vm388_vm1, %v11784_v21  ;;  %13732 = vst [vmem:[#allocation31_spill] sm:$0xff] %v11886_v41  ;;  %v11906_v45 = vld [vmem:[%s11692_s29 + $0xe2] sm:$0xff]  ;;  %v11909_v46 = vld [vmem:[%s11692_s29 + $0xf1] sm:$0xff]  ;;  %v11921_v48 = vld [vmem:[%s11692_s29 + $0xf9] sm:$0xff] }
  0x85   : > { %13734 = vst [vmem:[#allocation33_spill] sm:$0xff] %v11906_v45  ;;  %v11912_v47 = vld [vmem:[%s11692_s29 + $0xf2] sm:$0xff]  ;;  %v11926_v49 = vld [vmem:[%s11692_s29 + $0xfa] sm:$0xff]  ;;  %v11929_v50 = vld [vmem:[%s11692_s29 + $0x109] sm:$0xff] }
  0x86   : > { %9955 = vmatmul.mubr.msk.f32.gmra.mrb[8].mxu0 %vm388_vm1, %v11793_v22  ;;  %13735 = vst [vmem:[#allocation34_spill] sm:$0xff] %v11912_v47  ;;  %13736 = vst [vmem:[#allocation35_spill] sm:$0xff] %v11926_v49  ;;  %v11932_v51 = vld [vmem:[%s11692_s29 + $0x10a] sm:$0xff]  ;;  %v11946_v53 = vld [vmem:[%s11692_s29 + $0x112] sm:$0xff] }
  0x87   : > { %10155 = vmatmul.mubr.msk.f32.gmra.mrb[8].mxu1 %vm388_vm1, %v11798_v23  ;;  %9957 = vmatprep.mubr.msk.f32.mxu0 %vm388_vm1, %v11801_v24  ;;  %13737 = vst [vmem:[#allocation36_spill] sm:$0xff] %v11932_v51  ;;  %v11941_v52 = vld [vmem:[%s11692_s29 + $0x111] sm:$0xff]  ;;  %13738 = vst [vmem:[#allocation37_spill] sm:$0xff] %v11946_v53  ;;  %v11949_v54 = vld [vmem:[%s11692_s29 + $0x121] sm:$0xff] }
  0x88   : > { %10157 = vmatprep.mubr.msk.f32.mxu1 %vm388_vm1, %v11804_v25  ;;  %v11952_v55 = vld [vmem:[%s11692_s29 + $0x122] sm:$0xff]  ;;  %v11966_v57 = vld [vmem:[%s11692_s29 + $0x12a] sm:$0xff]  ;;  %v11969_v58 = vld [vmem:[%s11692_s29 + $0x139] sm:$0xff] }
  0x89   : > { %13739 = vst [vmem:[#allocation38_spill] sm:$0xff] %v11952_v55  ;;  %v11961_v56 = vld [vmem:[%s11692_s29 + $0x129] sm:$0xff]  ;;  %13740 = vst [vmem:[#allocation39_spill] sm:$0xff] %v11966_v57  ;;  %v11972_v59 = vld [vmem:[%s11692_s29 + $0x13a] sm:$0xff] }
  0x8a   : > { %9958 = vmatmul.mubr.msk.f32.gmra.mrb[10].mxu0 %vm388_vm1, %v11813_v26  ;;  %13741 = vst [vmem:[#allocation40_spill] sm:$0xff] %v11972_v59  ;;  %v11981_v60 = vld [vmem:[%s11692_s29 + $0x141] sm:$0xff]  ;;  %v11989_v62 = vld [vmem:[%s11692_s29 + $0x151] sm:$0xff]  ;;  %v12001_v0 = vld [vmem:[%s11692_s29 + $0x159] sm:$0xff] }
  0x8b   : > { %10158 = vmatmul.mubr.msk.f32.gmra.mrb[10].mxu1 %vm388_vm1, %v11818_v27  ;;  %9960 = vmatprep.mubr.msk.f32.mxu0 %vm388_vm1, %v11821_v28  ;;  %v11986_v61 = vld [vmem:[%s11692_s29 + $0x142] sm:$0xff]  ;;  %v11992_v63 = vld [vmem:[%s11692_s29 + $0x152] sm:$0xff]  ;;  %v12006_v1 = vld [vmem:[%s11692_s29 + $0x15a] sm:$0xff] }
  0x8c   : > { %10160 = vmatprep.mubr.msk.f32.mxu1 %vm388_vm1, %v11824_v29  ;;  %13742 = vst [vmem:[#allocation41_spill] sm:$0xff] %v11986_v61  ;;  %13743 = vst [vmem:[#allocation42_spill] sm:$0xff] %v11992_v63  ;;  %v12009_v3 = vld [vmem:[%s11692_s29 + $0x169] sm:$0xff]  ;;  %v12021_v6 = vld [vmem:[%s11692_s29 + $0x171] sm:$0xff] }
  0x8d   : > { %13744 = vst [vmem:[#allocation43_spill] sm:$0xff] %v12006_v1  ;;  %v12012_v5 = vld [vmem:[%s11692_s29 + $0x16a] sm:$0xff]  ;;  %v12026_v7 = vld [vmem:[%s11692_s29 + $0x172] sm:$0xff]  ;;  %v12203_v27 = vld [vmem:[%s11692_s29 + $0x120] sm:$0xff] }
  0x8e   : > { %9961 = vmatmul.mubr.msk.f32.gmra.mrb[12].mxu0 %vm388_vm1, %v11839_v32  ;;  %13745 = vst [vmem:[#allocation44_spill] sm:$0xff] %v12012_v5  ;;  %13746 = vst [vmem:[#allocation45_spill] sm:$0xff] %v12026_v7  ;;  %v12198_v29 = vld [vmem:[%s11692_s29 + $0x110] sm:$0xff]  ;;  %v12212_v25 = vld [vmem:[%s11692_s29 + $0x128] sm:$0xff] }
  0x8f   : > { %10161 = vmatmul.mubr.msk.f32.gmra.mrb[12].mxu1 %vm388_vm1, %v11844_v33  ;;  %9963 = vmatprep.mubr.msk.f32.mxu0 %vm388_vm1, %v11847_v34  ;;  %v12189_v33 = vld [vmem:[%s11692_s29 + $0x108] sm:$0xff]  ;;  %v12217_v23 = vld [vmem:[%s11692_s29 + $0x138] sm:$0xff]  ;;  %v12226_v21 = vld [vmem:[%s11692_s29 + $0x140] sm:$0xff] }
  0x90   : > { %10163 = vmatprep.mubr.msk.f32.mxu1 %vm388_vm1, %v11852_v35  ;;  %v12184_v35 = vld [vmem:[%s11692_s29 + $0xf8] sm:$0xff]  ;;  %v12231_v19 = vld [vmem:[%s11692_s29 + $0x150] sm:$0xff]  ;;  %v12245_v15 = vld [vmem:[%s11692_s29 + $0x168] sm:$0xff] }
  0x91   : > { %v12240_v17 = vld [vmem:[%s11692_s29 + $0x158] sm:$0xff]  ;;  %v12268_v11 = vld [vmem:[#allocation5 + $0x24] sm:$0xf]  ;;  %v12274_v9 = vld [vmem:[#allocation5 + $0x34] sm:$0xf] }
  0x92   : > { %9964 = vmatmul.mubr.msk.f32.gmra.mrb[14].mxu0 %vm388_vm1, %v11861_v36 }
  0x93   : > { %10164 = vmatmul.mubr.msk.f32.gmra.mrb[14].mxu1 %vm388_vm1, %v11866_v37  ;;  %9966 = vmatprep.mubr.msk.f32.mxu0 %vm388_vm1, %v11869_v38  ;;  %v12175_v37 = vld [vmem:[%s11692_s29 + $0xf0] sm:$0xff] }
  0x94   : > { %10166 = vmatprep.mubr.msk.f32.mxu1 %vm388_vm1, %v11872_v39  ;;  %v12170_v39 = vld [vmem:[%s11692_s29 + $0xe0] sm:$0xff] }
  0x96   : > { %9967 = vmatmul.mubr.msk.f32.gmra.mrb[16].mxu0 %vm388_vm1, %v11881_v40 }
  0x97   : > { %10167 = vmatmul.mubr.msk.f32.gmra.mrb[16].mxu1 %vm388_vm1, %v11886_v41  ;;  %9969 = vmatprep.mubr.msk.f32.mxu0 %vm388_vm1, %v11889_v42  ;;  %v12161_v41 = vld [vmem:[%s11692_s29 + $0xd8] sm:$0xff] }
  0x98   : > { %10169 = vmatprep.mubr.msk.f32.mxu1 %vm388_vm1, %v11892_v43  ;;  %v12156_v43 = vld [vmem:[%s11692_s29 + $0xc8] sm:$0xff] }
  0x9a   : > { %9970 = vmatmul.mubr.msk.f32.gmra.mrb[18].mxu0 %vm388_vm1, %v11901_v44 }
  0x9b   : > { %10170 = vmatmul.mubr.msk.f32.gmra.mrb[18].mxu1 %vm388_vm1, %v11906_v45  ;;  %9972 = vmatprep.mubr.msk.f32.mxu0 %vm388_vm1, %v11909_v46  ;;  %v12147_v45 = vld [vmem:[%s11692_s29 + $0xc0] sm:$0xff] }
  0x9c   : > { %10172 = vmatprep.mubr.msk.f32.mxu1 %vm388_vm1, %v11912_v47  ;;  %v12142_v47 = vld [vmem:[%s11692_s29 + $0xb0] sm:$0xff] }
  0x9e   : > { %9973 = vmatmul.mubr.msk.f32.gmra.mrb[20].mxu0 %vm388_vm1, %v11921_v48 }
  0x9f   : > { %10173 = vmatmul.mubr.msk.f32.gmra.mrb[20].mxu1 %vm388_vm1, %v11926_v49  ;;  %9975 = vmatprep.mubr.msk.f32.mxu0 %vm388_vm1, %v11929_v50  ;;  %v12133_v49 = vld [vmem:[%s11692_s29 + $0xa8] sm:$0xff] }
  0xa0   : > { %10175 = vmatprep.mubr.msk.f32.mxu1 %vm388_vm1, %v11932_v51  ;;  %v12128_v51 = vld [vmem:[%s11692_s29 + $0x98] sm:$0xff] }
  0xa2   : > { %9976 = vmatmul.mubr.msk.f32.gmra.mrb[22].mxu0 %vm388_vm1, %v11941_v52 }
  0xa3   : > { %10176 = vmatmul.mubr.msk.f32.gmra.mrb[22].mxu1 %vm388_vm1, %v11946_v53  ;;  %9978 = vmatprep.mubr.msk.f32.mxu0 %vm388_vm1, %v11949_v54  ;;  %v12119_v53 = vld [vmem:[%s11692_s29 + $0x90] sm:$0xff] }
  0xa4   : > { %10178 = vmatprep.mubr.msk.f32.mxu1 %vm388_vm1, %v11952_v55  ;;  %v12114_v55 = vld [vmem:[%s11692_s29 + $0x80] sm:$0xff] }
  0xa6   : > { %9979 = vmatmul.mubr.msk.f32.gmra.mrb[24].mxu0 %vm388_vm1, %v11961_v56 }
  0xa7   : > { %10179 = vmatmul.mubr.msk.f32.gmra.mrb[24].mxu1 %vm388_vm1, %v11966_v57  ;;  %9981 = vmatprep.mubr.msk.f32.mxu0 %vm388_vm1, %v11969_v58  ;;  %v12105_v57 = vld [vmem:[%s11692_s29 + $0x78] sm:$0xff] }
  0xa8   : > { %10181 = vmatprep.mubr.msk.f32.mxu1 %vm388_vm1, %v11972_v59  ;;  %v12100_v59 = vld [vmem:[%s11692_s29 + $0x68] sm:$0xff] }
  0xaa   : > { %9982 = vmatmul.mubr.msk.f32.gmra.mrb[26].mxu0 %vm388_vm1, %v11981_v60 }
  0xab   : > { %10182 = vmatmul.mubr.msk.f32.gmra.mrb[26].mxu1 %vm388_vm1, %v11986_v61  ;;  %9984 = vmatprep.mubr.msk.f32.mxu0 %vm388_vm1, %v11989_v62  ;;  %v12038_v61 = vld [vmem:[%s11692_s29 + $0x18] sm:$0xff] }
  0xac   : > { %10184 = vmatprep.mubr.msk.f32.mxu1 %vm388_vm1, %v11992_v63  ;;  %v321_v63 = vld [vmem:[%s11692_s29] sm:$0xff] }
  0xae   : > { %9985 = vmatmul.mubr.msk.f32.gmra.mrb[28].mxu0 %vm388_vm1, %v12001_v0 }
  0xaf   : > { %10185 = vmatmul.mubr.msk.f32.gmra.mrb[28].mxu1 %vm388_vm1, %v12006_v1  ;;  %9987 = vmatprep.mubr.msk.f32.mxu0 %vm388_vm1, %v12009_v3  ;;  %v322_v1 = vld [vmem:[%s11692_s29 + $0x8] sm:$0xff] }
  0xb0   : > { %10187 = vmatprep.mubr.msk.f32.mxu1 %vm388_vm1, %v12012_v5  ;;  %v12041_v5 = vld [vmem:[#allocation5 + $0xc] sm:$0xf] }
  0xb2   : > { %9988 = vmatmul.mubr.msk.f32.gmra.mrb[30].mxu0 %vm388_vm1, %v12021_v6 }
  0xb3   : > { %10188 = vmatmul.mubr.msk.f32.gmra.mrb[30].mxu1 %vm388_vm1, %v12026_v7  ;;  %9992 = vmatprep.mubr.msk.f32.mxu0 %vm388_vm1, %v321_v63  ;;  %v12048_v7 = vld [vmem:[%s11692_s29 + $0x20] sm:$0xff]  ;;  %v12050_v63 = vld [vmem:[#allocation5 + $0x1c] sm:$0xf] }
  0xb4   : > { %10192 = vmatprep.mubr.msk.f32.mxu1 %vm388_vm1, %v11703_v2  ;;  %v12057_v2 = vld [vmem:[%s11692_s29 + $0x30] sm:$0xff] }
  0xb6   : > { %9993 = vmatmul.mubr.msk.f32.vlgmr.msra.gmra.mrb[0].mxu0 %vm388_vm1, %v322_v1  ;;  %v12091_v1 = vld [vmem:[%s11692_s29 + $0x60] sm:$0xff] }
  0xb7   : > { %10193 = vmatmul.mubr.msk.f32.vlgmr.msra.gmra.mrb[0].mxu1 %vm388_vm1, %v11709_v4  ;;  %10041 = vmatpush3.msk.msra.mxu0 %vm485_vm0, %v11826_v30  ;;  %v12072_v4 = vld [vmem:[%s11692_s29 + $0x38] sm:$0xff]  ;;  %v12077_v30 = vld [vmem:[%s11692_s29 + $0x48] sm:$0xff] }
  0xb8   : > { %9995 = vmatprep.mubr.msk.f32.mxu0 %vm388_vm1, %v12038_v61  ;;  %10195 = vmatprep.mubr.msk.f32.mxu1 %vm388_vm1, %v11718_v8 }
  0xb9   : > { %10241 = vmatpush3.msk.msra.mxu1 %vm485_vm0, %v11828_v31  ;;  %10090 = vmatprep.subr.msk.mxu0 %vm485_vm0, %v12041_v5  ;;  %v12086_v31 = vld [vmem:[%s11692_s29 + $0x50] sm:$0xff] }
  0xba   : > { %9996 = vmatmul.mubr.msk.f32.gmra.mrb[2].mxu0 %vm388_vm1, %v12048_v7  ;;  %10290 = vmatprep.subr.msk.mxu1 %vm485_vm0, %v12050_v63 }
  0xbb   : > { %10196 = vmatmul.mubr.msk.f32.gmra.mrb[2].mxu1 %vm388_vm1, %v11729_v10  ;;  %9998 = vmatprep.mubr.msk.f32.mxu0 %vm388_vm1, %v12057_v2 }
  0xbc   : > { %10198 = vmatprep.mubr.msk.f32.mxu1 %vm388_vm1, %v11738_v12 }
  0xbe   : > { %9999 = vmatmul.mubr.msk.f32.gmra.mrb[4].mxu0 %vm388_vm1, %v12072_v4 }
  0xbf   : > { %10199 = vmatmul.mubr.msk.f32.gmra.mrb[4].mxu1 %vm388_vm1, %v11753_v14  ;;  %10001 = vmatprep.mubr.msk.f32.mxu0 %vm388_vm1, %v12077_v30 }
  0xc0   : > { %10201 = vmatprep.mubr.msk.f32.mxu1 %vm388_vm1, %v11761_v16 }
  0xc2   : > { %10002 = vmatmul.mubr.msk.f32.gmra.mrb[6].mxu0 %vm388_vm1, %v12086_v31 }
  0xc3   : > { %10202 = vmatmul.mubr.msk.f32.gmra.mrb[6].mxu1 %vm388_vm1, %v11773_v18  ;;  %10004 = vmatprep.mubr.msk.f32.mxu0 %vm388_vm1, %v12091_v1 }
  0xc4   : > { %10204 = vmatprep.mubr.msk.f32.mxu1 %vm388_vm1, %v11781_v20 }
  0xc6   : > { %10005 = vmatmul.mubr.msk.f32.gmra.mrb[8].mxu0 %vm388_vm1, %v12100_v59 }
  0xc7   : > { %10205 = vmatmul.mubr.msk.f32.gmra.mrb[8].mxu1 %vm388_vm1, %v11793_v22  ;;  %10007 = vmatprep.mubr.msk.f32.mxu0 %vm388_vm1, %v12105_v57 }
  0xc8   : > { %10207 = vmatprep.mubr.msk.f32.mxu1 %vm388_vm1, %v11801_v24 }
  0xca   : > { %10008 = vmatmul.mubr.msk.f32.gmra.mrb[10].mxu0 %vm388_vm1, %v12114_v55 }
  0xcb   : > { %10208 = vmatmul.mubr.msk.f32.gmra.mrb[10].mxu1 %vm388_vm1, %v11813_v26  ;;  %10010 = vmatprep.mubr.msk.f32.mxu0 %vm388_vm1, %v12119_v53 }
  0xcc   : > { %10210 = vmatprep.mubr.msk.f32.mxu1 %vm388_vm1, %v11821_v28 }
  0xce   : > { %10011 = vmatmul.mubr.msk.f32.gmra.mrb[12].mxu0 %vm388_vm1, %v12128_v51 }
  0xcf   : > { %10211 = vmatmul.mubr.msk.f32.gmra.mrb[12].mxu1 %vm388_vm1, %v11839_v32  ;;  %10013 = vmatprep.mubr.msk.f32.mxu0 %vm388_vm1, %v12133_v49 }
  0xd0   : > { %10213 = vmatprep.mubr.msk.f32.mxu1 %vm388_vm1, %v11847_v34 }
  0xd2   : > { %10014 = vmatmul.mubr.msk.f32.gmra.mrb[14].mxu0 %vm388_vm1, %v12142_v47 }
  0xd3   : > { %10214 = vmatmul.mubr.msk.f32.gmra.mrb[14].mxu1 %vm388_vm1, %v11861_v36  ;;  %10016 = vmatprep.mubr.msk.f32.mxu0 %vm388_vm1, %v12147_v45 }
  0xd4   : > { %10216 = vmatprep.mubr.msk.f32.mxu1 %vm388_vm1, %v11869_v38 }
  0xd6   : > { %10017 = vmatmul.mubr.msk.f32.gmra.mrb[16].mxu0 %vm388_vm1, %v12156_v43 }
  0xd7   : > { %10217 = vmatmul.mubr.msk.f32.gmra.mrb[16].mxu1 %vm388_vm1, %v11881_v40  ;;  %10019 = vmatprep.mubr.msk.f32.mxu0 %vm388_vm1, %v12161_v41 }
  0xd8   : > { %10219 = vmatprep.mubr.msk.f32.mxu1 %vm388_vm1, %v11889_v42 }
  0xda   : > { %10020 = vmatmul.mubr.msk.f32.gmra.mrb[18].mxu0 %vm388_vm1, %v12170_v39 }
  0xdb   : > { %10220 = vmatmul.mubr.msk.f32.gmra.mrb[18].mxu1 %vm388_vm1, %v11901_v44  ;;  %10022 = vmatprep.mubr.msk.f32.mxu0 %vm388_vm1, %v12175_v37 }
  0xdc   : > { %10222 = vmatprep.mubr.msk.f32.mxu1 %vm388_vm1, %v11909_v46 }
  0xde   : > { %10023 = vmatmul.mubr.msk.f32.gmra.mrb[20].mxu0 %vm388_vm1, %v12184_v35 }
  0xdf   : > { %10223 = vmatmul.mubr.msk.f32.gmra.mrb[20].mxu1 %vm388_vm1, %v11921_v48  ;;  %10025 = vmatprep.mubr.msk.f32.mxu0 %vm388_vm1, %v12189_v33 }
  0xe0   : > { %10225 = vmatprep.mubr.msk.f32.mxu1 %vm388_vm1, %v11929_v50 }
  0xe2   : > { %10026 = vmatmul.mubr.msk.f32.gmra.mrb[22].mxu0 %vm388_vm1, %v12198_v29 }
  0xe3   : > { %10226 = vmatmul.mubr.msk.f32.gmra.mrb[22].mxu1 %vm388_vm1, %v11941_v52  ;;  %10028 = vmatprep.mubr.msk.f32.mxu0 %vm388_vm1, %v12203_v27 }
  0xe4   : > { %10228 = vmatprep.mubr.msk.f32.mxu1 %vm388_vm1, %v11949_v54 }
  0xe6   : > { %10029 = vmatmul.mubr.msk.f32.gmra.mrb[24].mxu0 %vm388_vm1, %v12212_v25 }
  0xe7   : > { %10229 = vmatmul.mubr.msk.f32.gmra.mrb[24].mxu1 %vm388_vm1, %v11961_v56  ;;  %10031 = vmatprep.mubr.msk.f32.mxu0 %vm388_vm1, %v12217_v23 }
  0xe8   : > { %10231 = vmatprep.mubr.msk.f32.mxu1 %vm388_vm1, %v11969_v58 }
  0xea   : > { %10032 = vmatmul.mubr.msk.f32.gmra.mrb[26].mxu0 %vm388_vm1, %v12226_v21 }
  0xeb   : > { %10232 = vmatmul.mubr.msk.f32.gmra.mrb[26].mxu1 %vm388_vm1, %v11981_v60  ;;  %10034 = vmatprep.mubr.msk.f32.mxu0 %vm388_vm1, %v12231_v19 }
  0xec   : > { %10234 = vmatprep.mubr.msk.f32.mxu1 %vm388_vm1, %v11989_v62 }
  0xee   : > { %10035 = vmatmul.mubr.msk.f32.gmra.mrb[28].mxu0 %vm388_vm1, %v12240_v17 }
  0xef   : > { %10235 = vmatmul.mubr.msk.f32.gmra.mrb[28].mxu1 %vm388_vm1, %v12001_v0  ;;  %10037 = vmatprep.mubr.msk.f32.mxu0 %vm388_vm1, %v12245_v15 }
  0xf0   : > { %10237 = vmatprep.mubr.msk.f32.mxu1 %vm388_vm1, %v12009_v3 }
  0xf2   : > { %10038 = vmatmul.mubr.msk.f32.gmra.mrb[30].mxu0 %vm388_vm1, %v12254_v13 }
  0xf3   : > { %10238 = vmatmul.mubr.msk.f32.gmra.mrb[30].mxu1 %vm388_vm1, %v12021_v6  ;;  %10042 = vmatprep.mubr.msk.f32.mxu0 %vm388_vm1, %v12038_v61  ;;  %v8604_v61 = vld [vmem:[%s11692_s29 + $0x52] sm:$0xff] }
  0xf4   : > { %10242 = vmatprep.mubr.msk.f32.mxu1 %vm388_vm1, %v11718_v8 }
  0xf6   : > { %10043 = vmatmul.mubr.msk.f32.vlgmr.msra.gmra.mrb[0].mxu0 %vm388_vm1, %v12048_v7  ;;  %v8607_v7 = vld [vmem:[%s11692_s29 + $0x7a] sm:$0xff] }
  0xf7   : > { %10243 = vmatmul.mubr.msk.f32.vlgmr.msra.gmra.mrb[0].mxu1 %vm388_vm1, %v11729_v10  ;;  %10091 = vmatpush3.msk.msra.mxu0 %vm485_vm0, %v12041_v5  ;;  %v8606_v5 = vld [vmem:[%s11692_s29 + $0x6a] sm:$0xff] }
  0xf8   : > { %10045 = vmatprep.mubr.msk.f32.mxu0 %vm388_vm1, %v12057_v2  ;;  %10245 = vmatprep.mubr.msk.f32.mxu1 %vm388_vm1, %v11738_v12  ;;  %v8608_v2 = vld [vmem:[%s11692_s29 + $0x82] sm:$0xff] }
  0xf9   : > { %10291 = vmatpush3.msk.msra.mxu1 %vm485_vm0, %v12050_v63  ;;  %10340 = vmatprep.subr.msk.mxu0 %vm485_vm0, %v12268_v11  ;;  %v12635_v63 = vld [vmem:[%s11692_s29 + $0x81] sm:$0xff] }
  0xfa   : > { %10046 = vmatmul.mubr.msk.f32.gmra.mrb[2].mxu0 %vm388_vm1, %v12072_v4  ;;  %10540 = vmatprep.subr.msk.mxu1 %vm485_vm0, %v12274_v9  ;;  %v12640_v4 = vld [vmem:[%s11692_s29 + $0x91] sm:$0xff] }
  0xfb   : > { %10246 = vmatmul.mubr.msk.f32.gmra.mrb[2].mxu1 %vm388_vm1, %v11753_v14  ;;  %10048 = vmatprep.mubr.msk.f32.mxu0 %vm388_vm1, %v12077_v30  ;;  %v8609_v30 = vld [vmem:[%s11692_s29 + $0x92] sm:$0xff] }
  0xfc   : > { %10248 = vmatprep.mubr.msk.f32.mxu1 %vm388_vm1, %v11761_v16 }
  0xfe   : > { %10049 = vmatmul.mubr.msk.f32.gmra.mrb[4].mxu0 %vm388_vm1, %v12086_v31  ;;  %v12649_v31 = vld [vmem:[%s11692_s29 + $0x99] sm:$0xff] }
  0xff   : > { %10249 = vmatmul.mubr.msk.f32.gmra.mrb[4].mxu1 %vm388_vm1, %v11773_v18  ;;  %10051 = vmatprep.mubr.msk.f32.mxu0 %vm388_vm1, %v12091_v1  ;;  %v8610_v1 = vld [vmem:[%s11692_s29 + $0x9a] sm:$0xff] }
 0x100   : > { %10251 = vmatprep.mubr.msk.f32.mxu1 %vm388_vm1, %v11781_v20 }
 0x102   : > { %10052 = vmatmul.mubr.msk.f32.gmra.mrb[6].mxu0 %vm388_vm1, %v12100_v59  ;;  %v8603_v59 = vld [vmem:[%s11692_s29 + $0x4a] sm:$0xff] }
 0x103   : > { %10252 = vmatmul.mubr.msk.f32.gmra.mrb[6].mxu1 %vm388_vm1, %v11793_v22  ;;  %10054 = vmatprep.mubr.msk.f32.mxu0 %vm388_vm1, %v12105_v57  ;;  %v8602_v57 = vld [vmem:[%s11692_s29 + $0x3a] sm:$0xff] }
 0x104   : > { %10254 = vmatprep.mubr.msk.f32.mxu1 %vm388_vm1, %v11801_v24 }
 0x106   : > { %10055 = vmatmul.mubr.msk.f32.gmra.mrb[8].mxu0 %vm388_vm1, %v12114_v55  ;;  %v12583_v55 = vld [vmem:[%s11692_s29 + $0x39] sm:$0xff] }
 0x107   : > { %10255 = vmatmul.mubr.msk.f32.gmra.mrb[8].mxu1 %vm388_vm1, %v11813_v26  ;;  %10057 = vmatprep.mubr.msk.f32.mxu0 %vm388_vm1, %v12119_v53  ;;  %v8601_v53 = vld [vmem:[%s11692_s29 + $0x32] sm:$0xff] }
 0x108   : > { %10257 = vmatprep.mubr.msk.f32.mxu1 %vm388_vm1, %v11821_v28 }
 0x10a   : > { %10058 = vmatmul.mubr.msk.f32.gmra.mrb[10].mxu0 %vm388_vm1, %v12128_v51  ;;  %v8600_v51 = vld [vmem:[%s11692_s29 + $0x22] sm:$0xff] }
 0x10b   : > { %10258 = vmatmul.mubr.msk.f32.gmra.mrb[10].mxu1 %vm388_vm1, %v11839_v32  ;;  %10060 = vmatprep.mubr.msk.f32.mxu0 %vm388_vm1, %v12133_v49  ;;  %v8599_v49 = vld [vmem:[%s11692_s29 + $0x1a] sm:$0xff] }
 0x10c   : > { %10260 = vmatprep.mubr.msk.f32.mxu1 %vm388_vm1, %v11847_v34 }
 0x10e   : > { %10061 = vmatmul.mubr.msk.f32.gmra.mrb[12].mxu0 %vm388_vm1, %v12142_v47  ;;  %v12554_v47 = vld [vmem:[%s11692_s29 + $0x18a] sm:$0xff] }
 0x10f   : > { %10261 = vmatmul.mubr.msk.f32.gmra.mrb[12].mxu1 %vm388_vm1, %v11861_v36  ;;  %10063 = vmatprep.mubr.msk.f32.mxu0 %vm388_vm1, %v12147_v45  ;;  %v12543_v45 = vld [vmem:[%s11692_s29 + $0x182] sm:$0xff] }
 0x110   : > { %10263 = vmatprep.mubr.msk.f32.mxu1 %vm388_vm1, %v11869_v38 }
 0x112   : > { %10064 = vmatmul.mubr.msk.f32.gmra.mrb[14].mxu0 %vm388_vm1, %v12156_v43  ;;  %v13774_v43 = vld [vmem:[#allocation43_spill] sm:$0xff] }
 0x113   : > { %10264 = vmatmul.mubr.msk.f32.gmra.mrb[14].mxu1 %vm388_vm1, %v11881_v40  ;;  %10066 = vmatprep.mubr.msk.f32.mxu0 %vm388_vm1, %v12161_v41  ;;  %v13772_v41 = vld [vmem:[#allocation41_spill] sm:$0xff] }
 0x114   : > { %10266 = vmatprep.mubr.msk.f32.mxu1 %vm388_vm1, %v11889_v42 }
 0x116   : > { %10067 = vmatmul.mubr.msk.f32.gmra.mrb[16].mxu0 %vm388_vm1, %v12170_v39  ;;  %v13770_v39 = vld [vmem:[#allocation39_spill] sm:$0xff] }
 0x117   : > { %10267 = vmatmul.mubr.msk.f32.gmra.mrb[16].mxu1 %vm388_vm1, %v11901_v44  ;;  %10069 = vmatprep.mubr.msk.f32.mxu0 %vm388_vm1, %v12175_v37  ;;  %v13768_v37 = vld [vmem:[#allocation37_spill] sm:$0xff] }
 0x118   : > { %10269 = vmatprep.mubr.msk.f32.mxu1 %vm388_vm1, %v11909_v46 }
 0x11a   : > { %10070 = vmatmul.mubr.msk.f32.gmra.mrb[18].mxu0 %vm388_vm1, %v12184_v35  ;;  %v13766_v35 = vld [vmem:[#allocation35_spill] sm:$0xff] }
 0x11b   : > { %10270 = vmatmul.mubr.msk.f32.gmra.mrb[18].mxu1 %vm388_vm1, %v11921_v48  ;;  %10072 = vmatprep.mubr.msk.f32.mxu0 %vm388_vm1, %v12189_v33  ;;  %v13764_v33 = vld [vmem:[#allocation33_spill] sm:$0xff] }
 0x11c   : > { %10272 = vmatprep.mubr.msk.f32.mxu1 %vm388_vm1, %v11929_v50 }
 0x11e   : > { %10073 = vmatmul.mubr.msk.f32.gmra.mrb[20].mxu0 %vm388_vm1, %v12198_v29  ;;  %v13762_v29 = vld [vmem:[#allocation31_spill] sm:$0xff] }
 0x11f   : > { %10273 = vmatmul.mubr.msk.f32.gmra.mrb[20].mxu1 %vm388_vm1, %v11941_v52  ;;  %10075 = vmatprep.mubr.msk.f32.mxu0 %vm388_vm1, %v12203_v27  ;;  %v12426_v27 = vld [vmem:[#allocation5 + $0x30] sm:$0xf] }
 0x120   : > { %10275 = vmatprep.mubr.msk.f32.mxu1 %vm388_vm1, %v11949_v54 }
 0x122   : > { %10076 = vmatmul.mubr.msk.f32.gmra.mrb[22].mxu0 %vm388_vm1, %v12212_v25  ;;  %v13748_v25 = vld [vmem:[#allocation17_spill] sm:$0xff] }
 0x123   : > { %10276 = vmatmul.mubr.msk.f32.gmra.mrb[22].mxu1 %vm388_vm1, %v11961_v56  ;;  %10078 = vmatprep.mubr.msk.f32.mxu0 %vm388_vm1, %v12217_v23  ;;  %v12394_v23 = vld [vmem:[%s11692_s29 + $0x181] sm:$0xff] }
 0x124   : > { %10278 = vmatprep.mubr.msk.f32.mxu1 %vm388_vm1, %v11969_v58 }
 0x126   : > { %10079 = vmatmul.mubr.msk.f32.gmra.mrb[24].mxu0 %vm388_vm1, %v12226_v21  ;;  %v12391_v21 = vld [vmem:[%s11692_s29 + $0x180] sm:$0xff] }
 0x127   : > { %10279 = vmatmul.mubr.msk.f32.gmra.mrb[24].mxu1 %vm388_vm1, %v11981_v60  ;;  %10081 = vmatprep.mubr.msk.f32.mxu0 %vm388_vm1, %v12231_v19  ;;  %v12420_v19 = vld [vmem:[#allocation5 + $0x20] sm:$0xf] }
 0x128   : > { %10281 = vmatprep.mubr.msk.f32.mxu1 %vm388_vm1, %v11989_v62 }
 0x12a   : > { %10082 = vmatmul.mubr.msk.f32.gmra.mrb[26].mxu0 %vm388_vm1, %v12240_v17  ;;  %v12403_v17 = vld [vmem:[%s11692_s29 + $0x188] sm:$0xff] }
 0x12b   : > { %10282 = vmatmul.mubr.msk.f32.gmra.mrb[26].mxu1 %vm388_vm1, %v12001_v0  ;;  %10084 = vmatprep.mubr.msk.f32.mxu0 %vm388_vm1, %v12245_v15  ;;  %v12408_v15 = vld [vmem:[%s11692_s29 + $0x189] sm:$0xff] }
 0x12c   : > { %10284 = vmatprep.mubr.msk.f32.mxu1 %vm388_vm1, %v12009_v3 }
 0x12e   : > { %10085 = vmatmul.mubr.msk.f32.gmra.mrb[28].mxu0 %vm388_vm1, %v12254_v13  ;;  %v13747_v13 = vld [vmem:[#allocation16_spill] sm:$0xff] }
 0x12f   : > { %10285 = vmatmul.mubr.msk.f32.gmra.mrb[28].mxu1 %vm388_vm1, %v12021_v6  ;;  %10087 = vmatprep.mubr.msk.f32.mxu0 %vm388_vm1, %v12391_v21 }
 0x130   : > { %10287 = vmatprep.mubr.msk.f32.mxu1 %vm388_vm1, %v12394_v23 }
 0x132   : > { %10088 = vmatmul.mubr.msk.f32.gmra.mrb[30].mxu0 %vm388_vm1, %v12403_v17 }
 0x133   : > { %10288 = vmatmul.mubr.msk.f32.gmra.mrb[30].mxu1 %vm388_vm1, %v12408_v15  ;;  %10092 = vmatprep.mubr.msk.f32.mxu0 %vm388_vm1, %v11718_v8  ;;  %v13749_v8 = vld [vmem:[#allocation18_spill] sm:$0xff] }
 0x134   : > { %10292 = vmatprep.mubr.msk.f32.mxu1 %vm388_vm1, %v13747_v13  ;;  %v12654_v13 = vld [vmem:[%s11692_s29 + $0xa9] sm:$0xff] }
 0x136   : > { %10093 = vmatmul.mubr.msk.f32.vlgmr.msra.gmra.mrb[0].mxu0 %vm388_vm1, %v11729_v10  ;;  %v13750_v10 = vld [vmem:[#allocation19_spill] sm:$0xff] }
 0x137   : > { %10293 = vmatmul.mubr.msk.f32.vlgmr.msra.gmra.mrb[0].mxu1 %vm388_vm1, %v13748_v25  ;;  %10341 = vmatpush3.msk.msra.mxu0 %vm485_vm0, %v12268_v11  ;;  %v13751_v11 = vld [vmem:[#allocation20_spill] sm:$0xff] }
 0x138   : > { %10095 = vmatprep.mubr.msk.f32.mxu0 %vm388_vm1, %v11738_v12  ;;  %10295 = vmatprep.mubr.msk.f32.mxu1 %vm388_vm1, %v13749_v8  ;;  %v13753_v12 = vld [vmem:[#allocation22_spill] sm:$0xff] }
 0x139   : > { %10541 = vmatpush3.msk.msra.mxu1 %vm485_vm0, %v12274_v9  ;;  %10390 = vmatprep.subr.msk.mxu0 %vm485_vm0, %v12420_v19  ;;  %v13752_v9 = vld [vmem:[#allocation21_spill] sm:$0xff] }
 0x13a   : > { %10096 = vmatmul.mubr.msk.f32.gmra.mrb[2].mxu0 %vm388_vm1, %v11753_v14  ;;  %10590 = vmatprep.subr.msk.mxu1 %vm485_vm0, %v12426_v27  ;;  %v13754_v14 = vld [vmem:[#allocation23_spill] sm:$0xff] }
 0x13b   : > { %10296 = vmatmul.mubr.msk.f32.gmra.mrb[2].mxu1 %vm388_vm1, %v13750_v10  ;;  %10098 = vmatprep.mubr.msk.f32.mxu0 %vm388_vm1, %v11761_v16  ;;  %v13755_v16 = vld [vmem:[#allocation24_spill] sm:$0xff] }
 0x13c   : > { %10298 = vmatprep.mubr.msk.f32.mxu1 %vm388_vm1, %v13751_v11  ;;  %v12663_v25 = vld [vmem:[%s11692_s29 + $0xb1] sm:$0xff]  ;;  %v12668_v8 = vld [vmem:[%s11692_s29 + $0xc1] sm:$0xff]  ;;  %v12677_v11 = vld [vmem:[%s11692_s29 + $0xc9] sm:$0xff] }
 0x13d   : > { %v8613_v10 = vld [vmem:[%s11692_s29 + $0xc2] sm:$0xff] }
 0x13e   : > { %10099 = vmatmul.mubr.msk.f32.gmra.mrb[4].mxu0 %vm388_vm1, %v11773_v18  ;;  %v13756_v18 = vld [vmem:[#allocation25_spill] sm:$0xff] }
 0x13f   : > { %10299 = vmatmul.mubr.msk.f32.gmra.mrb[4].mxu1 %vm388_vm1, %v13752_v9  ;;  %10101 = vmatprep.mubr.msk.f32.mxu0 %vm388_vm1, %v11781_v20  ;;  %v13757_v20 = vld [vmem:[#allocation26_spill] sm:$0xff]  ;;  %v8614_v9 = vld [vmem:[%s11692_s29 + $0xca] sm:$0xff] }
 0x140   : > { %10301 = vmatprep.mubr.msk.f32.mxu1 %vm388_vm1, %v13753_v12  ;;  %v12682_v12 = vld [vmem:[%s11692_s29 + $0xd9] sm:$0xff] }
 0x142   : > { %10102 = vmatmul.mubr.msk.f32.gmra.mrb[6].mxu0 %vm388_vm1, %v11793_v22  ;;  %v13758_v22 = vld [vmem:[#allocation27_spill] sm:$0xff] }
 0x143   : > { %10302 = vmatmul.mubr.msk.f32.gmra.mrb[6].mxu1 %vm388_vm1, %v13754_v14  ;;  %10104 = vmatprep.mubr.msk.f32.mxu0 %vm388_vm1, %v11801_v24  ;;  %v13759_v24 = vld [vmem:[#allocation28_spill] sm:$0xff]  ;;  %v8615_v14 = vld [vmem:[%s11692_s29 + $0xda] sm:$0xff] }
 0x144   : > { %10304 = vmatprep.mubr.msk.f32.mxu1 %vm388_vm1, %v13755_v16  ;;  %v12691_v16 = vld [vmem:[%s11692_s29 + $0xe1] sm:$0xff] }
 0x146   : > { %10105 = vmatmul.mubr.msk.f32.gmra.mrb[8].mxu0 %vm388_vm1, %v11813_v26  ;;  %v13760_v26 = vld [vmem:[#allocation29_spill] sm:$0xff] }
 0x147   : > { %10305 = vmatmul.mubr.msk.f32.gmra.mrb[8].mxu1 %vm388_vm1, %v13756_v18  ;;  %10107 = vmatprep.mubr.msk.f32.mxu0 %vm388_vm1, %v11821_v28  ;;  %v13761_v28 = vld [vmem:[#allocation30_spill] sm:$0xff] }
 0x148   : > { %10307 = vmatprep.mubr.msk.f32.mxu1 %vm388_vm1, %v13757_v20  ;;  %v8616_v18 = vld [vmem:[%s11692_s29 + $0xe2] sm:$0xff]  ;;  %v12696_v20 = vld [vmem:[%s11692_s29 + $0xf1] sm:$0xff] }
 0x14a   : > { %10108 = vmatmul.mubr.msk.f32.gmra.mrb[10].mxu0 %vm388_vm1, %v11839_v32  ;;  %v13763_v32 = vld [vmem:[#allocation32_spill] sm:$0xff] }
 0x14b   : > { %10308 = vmatmul.mubr.msk.f32.gmra.mrb[10].mxu1 %vm388_vm1, %v13758_v22  ;;  %10110 = vmatprep.mubr.msk.f32.mxu0 %vm388_vm1, %v11847_v34  ;;  %v13765_v34 = vld [vmem:[#allocation34_spill] sm:$0xff] }
 0x14c   : > { %10310 = vmatprep.mubr.msk.f32.mxu1 %vm388_vm1, %v13759_v24  ;;  %v8617_v22 = vld [vmem:[%s11692_s29 + $0xf2] sm:$0xff] }
 0x14d   : > { %v12705_v24 = vld [vmem:[%s11692_s29 + $0xf9] sm:$0xff] }
 0x14e   : > { %10111 = vmatmul.mubr.msk.f32.gmra.mrb[12].mxu0 %vm388_vm1, %v11861_v36  ;;  %v13767_v36 = vld [vmem:[#allocation36_spill] sm:$0xff] }
 0x14f   : > { %10311 = vmatmul.mubr.msk.f32.gmra.mrb[12].mxu1 %vm388_vm1, %v13760_v26  ;;  %10113 = vmatprep.mubr.msk.f32.mxu0 %vm388_vm1, %v11869_v38  ;;  %v13769_v38 = vld [vmem:[#allocation38_spill] sm:$0xff]  ;;  %v8618_v26 = vld [vmem:[%s11692_s29 + $0xfa] sm:$0xff] }
 0x150   : > { %10313 = vmatprep.mubr.msk.f32.mxu1 %vm388_vm1, %v13761_v28  ;;  %v12710_v28 = vld [vmem:[%s11692_s29 + $0x109] sm:$0xff] }
 0x152   : > { %10114 = vmatmul.mubr.msk.f32.gmra.mrb[14].mxu0 %vm388_vm1, %v11881_v40  ;;  %v13771_v40 = vld [vmem:[#allocation40_spill] sm:$0xff] }
 0x153   : > { %10314 = vmatmul.mubr.msk.f32.gmra.mrb[14].mxu1 %vm388_vm1, %v13762_v29  ;;  %10116 = vmatprep.mubr.msk.f32.mxu0 %vm388_vm1, %v11889_v42  ;;  %v13773_v42 = vld [vmem:[#allocation42_spill] sm:$0xff]  ;;  %v8619_v29 = vld [vmem:[%s11692_s29 + $0x10a] sm:$0xff] }
 0x154   : > { %10316 = vmatprep.mubr.msk.f32.mxu1 %vm388_vm1, %v13763_v32  ;;  %v12719_v32 = vld [vmem:[%s11692_s29 + $0x111] sm:$0xff] }
 0x156   : > { %10117 = vmatmul.mubr.msk.f32.gmra.mrb[16].mxu0 %vm388_vm1, %v11901_v44  ;;  %v13775_v44 = vld [vmem:[#allocation44_spill] sm:$0xff] }
 0x157   : > { %10317 = vmatmul.mubr.msk.f32.gmra.mrb[16].mxu1 %vm388_vm1, %v13764_v33  ;;  %10119 = vmatprep.mubr.msk.f32.mxu0 %vm388_vm1, %v11909_v46  ;;  %v13776_v46 = vld [vmem:[#allocation45_spill] sm:$0xff]  ;;  %v8620_v33 = vld [vmem:[%s11692_s29 + $0x112] sm:$0xff] }
 0x158   : > { %10319 = vmatprep.mubr.msk.f32.mxu1 %vm388_vm1, %v13765_v34  ;;  %v12724_v34 = vld [vmem:[%s11692_s29 + $0x121] sm:$0xff] }
 0x15a   : > { %10120 = vmatmul.mubr.msk.f32.gmra.mrb[18].mxu0 %vm388_vm1, %v11921_v48  ;;  %v12557_v48 = vld [vmem:[%s11692_s29 + $0x19] sm:$0xff] }
 0x15b   : > { %10320 = vmatmul.mubr.msk.f32.gmra.mrb[18].mxu1 %vm388_vm1, %v13766_v35  ;;  %10122 = vmatprep.mubr.msk.f32.mxu0 %vm388_vm1, %v11929_v50  ;;  %v12567_v50 = vld [vmem:[%s11692_s29 + $0x21] sm:$0xff] }
 0x15c   : > { %10322 = vmatprep.mubr.msk.f32.mxu1 %vm388_vm1, %v13767_v36  ;;  %v8621_v35 = vld [vmem:[%s11692_s29 + $0x122] sm:$0xff] }
 0x15d   : > { %v12733_v36 = vld [vmem:[%s11692_s29 + $0x129] sm:$0xff] }
 0x15e   : > { %10123 = vmatmul.mubr.msk.f32.gmra.mrb[20].mxu0 %vm388_vm1, %v11941_v52  ;;  %v12572_v52 = vld [vmem:[%s11692_s29 + $0x31] sm:$0xff] }
 0x15f   : > { %10323 = vmatmul.mubr.msk.f32.gmra.mrb[20].mxu1 %vm388_vm1, %v13768_v37  ;;  %10125 = vmatprep.mubr.msk.f32.mxu0 %vm388_vm1, %v11949_v54  ;;  %v12577_v54 = vld [vmem:[#allocation5 + $0x28] sm:$0xf] }
 0x160   : > { %10325 = vmatprep.mubr.msk.f32.mxu1 %vm388_vm1, %v13769_v38  ;;  %v8622_v37 = vld [vmem:[%s11692_s29 + $0x12a] sm:$0xff]  ;;  %v12738_v38 = vld [vmem:[%s11692_s29 + $0x139] sm:$0xff] }
 0x162   : > { %10126 = vmatmul.mubr.msk.f32.gmra.mrb[22].mxu0 %vm388_vm1, %v11961_v56  ;;  %v12585_v56 = vld [vmem:[#allocation5 + $0x38] sm:$0xf] }
 0x163   : > { %10326 = vmatmul.mubr.msk.f32.gmra.mrb[22].mxu1 %vm388_vm1, %v13770_v39  ;;  %10128 = vmatprep.mubr.msk.f32.mxu0 %vm388_vm1, %v11969_v58  ;;  %v12592_v58 = vld [vmem:[%s11692_s29 + $0x49] sm:$0xff]  ;;  %v8623_v39 = vld [vmem:[%s11692_s29 + $0x13a] sm:$0xff] }
 0x164   : > { %10328 = vmatprep.mubr.msk.f32.mxu1 %vm388_vm1, %v13771_v40  ;;  %v12747_v40 = vld [vmem:[%s11692_s29 + $0x141] sm:$0xff] }
 0x166   : > { %10129 = vmatmul.mubr.msk.f32.gmra.mrb[24].mxu0 %vm388_vm1, %v11981_v60  ;;  %v12607_v60 = vld [vmem:[%s11692_s29 + $0x51] sm:$0xff] }
 0x167   : > { %10329 = vmatmul.mubr.msk.f32.gmra.mrb[24].mxu1 %vm388_vm1, %v13772_v41  ;;  %10131 = vmatprep.mubr.msk.f32.mxu0 %vm388_vm1, %v11989_v62  ;;  %v12612_v62 = vld [vmem:[%s11692_s29 + $0x61] sm:$0xff] }
 0x168   : > { %10331 = vmatprep.mubr.msk.f32.mxu1 %vm388_vm1, %v13773_v42  ;;  %v8624_v41 = vld [vmem:[%s11692_s29 + $0x142] sm:$0xff]  ;;  %v12752_v42 = vld [vmem:[%s11692_s29 + $0x151] sm:$0xff] }
 0x16a   : > { %10132 = vmatmul.mubr.msk.f32.gmra.mrb[26].mxu0 %vm388_vm1, %v12001_v0  ;;  %v8605_v0 = vld [vmem:[%s11692_s29 + $0x62] sm:$0xff] }
 0x16b   : > { %10332 = vmatmul.mubr.msk.f32.gmra.mrb[26].mxu1 %vm388_vm1, %v13774_v43  ;;  %10134 = vmatprep.mubr.msk.f32.mxu0 %vm388_vm1, %v12009_v3  ;;  %v12621_v3 = vld [vmem:[%s11692_s29 + $0x69] sm:$0xff]  ;;  %v8625_v43 = vld [vmem:[%s11692_s29 + $0x152] sm:$0xff] }
 0x16c   : > { %10334 = vmatprep.mubr.msk.f32.mxu1 %vm388_vm1, %v13775_v44  ;;  %v12761_v44 = vld [vmem:[%s11692_s29 + $0x159] sm:$0xff] }
 0x16e   : > { %10135 = vmatmul.mubr.msk.f32.gmra.mrb[28].mxu0 %vm388_vm1, %v12021_v6  ;;  %v12626_v6 = vld [vmem:[%s11692_s29 + $0x79] sm:$0xff] }
 0x16f   : > { %10335 = vmatmul.mubr.msk.f32.gmra.mrb[28].mxu1 %vm388_vm1, %v13776_v46  ;;  %10137 = vmatprep.mubr.msk.f32.mxu0 %vm388_vm1, %v12394_v23  ;;  %v8626_v46 = vld [vmem:[%s11692_s29 + $0x15a] sm:$0xff] }
 0x170   : > { %10337 = vmatprep.mubr.msk.f32.mxu1 %vm388_vm1, %v12543_v45 }
 0x172   : > { %10138 = vmatmul.mubr.msk.f32.gmra.mrb[30].mxu0 %vm388_vm1, %v12408_v15 }
 0x173   : > { %10338 = vmatmul.mubr.msk.f32.gmra.mrb[30].mxu1 %vm388_vm1, %v12554_v47  ;;  %10342 = vmatprep.mubr.msk.f32.mxu0 %vm388_vm1, %v12557_v48 }
 0x174   : > { %10542 = vmatprep.mubr.msk.f32.mxu1 %vm388_vm1, %v8599_v49  ;;  %v12766_v49 = vld [vmem:[%s11692_s29 + $0x169] sm:$0xff] }
 0x176   : > { %10343 = vmatmul.mubr.msk.f32.vlgmr.msra.gmra.mrb[32].mxu0 %vm388_vm1, %v12567_v50 }
 0x177   : > { %10543 = vmatmul.mubr.msk.f32.vlgmr.msra.gmra.mrb[32].mxu1 %vm388_vm1, %v8600_v51  ;;  %10391 = vmatpush3.msk.msra.mxu0 %vm485_vm0, %v12420_v19  ;;  %v8611_v19 = vld [vmem:[%s11692_s29 + $0xaa] sm:$0xff] }
 0x178   : > { %10345 = vmatprep.mubr.msk.f32.mxu0 %vm388_vm1, %v12572_v52  ;;  %10545 = vmatprep.mubr.msk.f32.mxu1 %vm388_vm1, %v8601_v53  ;;  %v8627_v51 = vld [vmem:[%s11692_s29 + $0x16a] sm:$0xff] }
 0x179   : > { %10591 = vmatpush3.msk.msra.mxu1 %vm485_vm0, %v12426_v27  ;;  %10440 = vmatprep.subr.msk.mxu0 %vm485_vm0, %v12577_v54  ;;  %v8612_v27 = vld [vmem:[%s11692_s29 + $0xb2] sm:$0xff] }
 0x17a   : > { %10346 = vmatmul.mubr.msk.f32.gmra.mrb[34].mxu0 %vm388_vm1, %v12583_v55  ;;  %10640 = vmatprep.subr.msk.mxu1 %vm485_vm0, %v12585_v56  ;;  %v12775_v53 = vld [vmem:[%s11692_s29 + $0x171] sm:$0xff] }
 0x17b   : > { %10546 = vmatmul.mubr.msk.f32.gmra.mrb[34].mxu1 %vm388_vm1, %v8602_v57  ;;  %10348 = vmatprep.mubr.msk.f32.mxu0 %vm388_vm1, %v12592_v58  ;;  %v8628_v57 = vld [vmem:[%s11692_s29 + $0x172] sm:$0xff] }
 0x17c   : > { %10548 = vmatprep.mubr.msk.f32.mxu1 %vm388_vm1, %v8603_v59  ;;  %v8243_v59 = vld [vmem:[%s11692_s29 + $0x18] sm:$0xff] }
 0x17e   : > { %10349 = vmatmul.mubr.msk.f32.gmra.mrb[36].mxu0 %vm388_vm1, %v12607_v60 }
 0x17f   : > { %10549 = vmatmul.mubr.msk.f32.gmra.mrb[36].mxu1 %vm388_vm1, %v8604_v61  ;;  %10351 = vmatprep.mubr.msk.f32.mxu0 %vm388_vm1, %v12612_v62  ;;  %v8244_v61 = vld [vmem:[%s11692_s29 + $0x20] sm:$0xff] }
 0x180   : > { %10551 = vmatprep.mubr.msk.f32.mxu1 %vm388_vm1, %v8605_v0  ;;  %v12796_v0 = vld [vmem:[%s11692_s29 + $0x30] sm:$0xff] }
 0x182   : > { %10352 = vmatmul.mubr.msk.f32.gmra.mrb[38].mxu0 %vm388_vm1, %v12621_v3 }
 0x183   : > { %10552 = vmatmul.mubr.msk.f32.gmra.mrb[38].mxu1 %vm388_vm1, %v8606_v5  ;;  %10354 = vmatprep.mubr.msk.f32.mxu0 %vm388_vm1, %v12626_v6  ;;  %v12808_v5 = vld [vmem:[#allocation5 + $0x3c] sm:$0xf] }
 0x184   : > { %10554 = vmatprep.mubr.msk.f32.mxu1 %vm388_vm1, %v8607_v7  ;;  %v12849_v7 = vld [vmem:[%s11692_s29 + $0x78] sm:$0xff] }
 0x186   : > { %10355 = vmatmul.mubr.msk.f32.gmra.mrb[40].mxu0 %vm388_vm1, %v12635_v63 }
 0x187   : > { %10555 = vmatmul.mubr.msk.f32.gmra.mrb[40].mxu1 %vm388_vm1, %v8608_v2  ;;  %10357 = vmatprep.mubr.msk.f32.mxu0 %vm388_vm1, %v12640_v4  ;;  %v12858_v2 = vld [vmem:[%s11692_s29 + $0x80] sm:$0xff] }
 0x188   : > { %10557 = vmatprep.mubr.msk.f32.mxu1 %vm388_vm1, %v8609_v30  ;;  %v12863_v30 = vld [vmem:[%s11692_s29 + $0x90] sm:$0xff] }
 0x18a   : > { %10358 = vmatmul.mubr.msk.f32.gmra.mrb[42].mxu0 %vm388_vm1, %v12649_v31 }
 0x18b   : > { %10558 = vmatmul.mubr.msk.f32.gmra.mrb[42].mxu1 %vm388_vm1, %v8610_v1  ;;  %10360 = vmatprep.mubr.msk.f32.mxu0 %vm388_vm1, %v12654_v13  ;;  %v12872_v1 = vld [vmem:[%s11692_s29 + $0x98] sm:$0xff] }
 0x18c   : > { %10560 = vmatprep.mubr.msk.f32.mxu1 %vm388_vm1, %v8611_v19  ;;  %v12877_v19 = vld [vmem:[%s11692_s29 + $0xa8] sm:$0xff] }
 0x18e   : > { %10361 = vmatmul.mubr.msk.f32.gmra.mrb[44].mxu0 %vm388_vm1, %v12663_v25 }
 0x18f   : > { %10561 = vmatmul.mubr.msk.f32.gmra.mrb[44].mxu1 %vm388_vm1, %v8612_v27  ;;  %10363 = vmatprep.mubr.msk.f32.mxu0 %vm388_vm1, %v12668_v8  ;;  %v12886_v27 = vld [vmem:[%s11692_s29 + $0xb0] sm:$0xff] }
 0x190   : > { %10563 = vmatprep.mubr.msk.f32.mxu1 %vm388_vm1, %v8613_v10  ;;  %v12891_v10 = vld [vmem:[%s11692_s29 + $0xc0] sm:$0xff] }
 0x192   : > { %10364 = vmatmul.mubr.msk.f32.gmra.mrb[46].mxu0 %vm388_vm1, %v12677_v11 }
 0x193   : > { %10564 = vmatmul.mubr.msk.f32.gmra.mrb[46].mxu1 %vm388_vm1, %v8614_v9  ;;  %10366 = vmatprep.mubr.msk.f32.mxu0 %vm388_vm1, %v12682_v12  ;;  %v12900_v9 = vld [vmem:[%s11692_s29 + $0xc8] sm:$0xff] }
 0x194   : > { %10566 = vmatprep.mubr.msk.f32.mxu1 %vm388_vm1, %v8615_v14  ;;  %v12905_v14 = vld [vmem:[%s11692_s29 + $0xd8] sm:$0xff] }
 0x196   : > { %10367 = vmatmul.mubr.msk.f32.gmra.mrb[48].mxu0 %vm388_vm1, %v12691_v16 }
 0x197   : > { %10567 = vmatmul.mubr.msk.f32.gmra.mrb[48].mxu1 %vm388_vm1, %v8616_v18  ;;  %10369 = vmatprep.mubr.msk.f32.mxu0 %vm388_vm1, %v12696_v20  ;;  %v12914_v18 = vld [vmem:[%s11692_s29 + $0xe0] sm:$0xff] }
 0x198   : > { %10569 = vmatprep.mubr.msk.f32.mxu1 %vm388_vm1, %v8617_v22  ;;  %v12919_v22 = vld [vmem:[%s11692_s29 + $0xf0] sm:$0xff] }
 0x19a   : > { %10370 = vmatmul.mubr.msk.f32.gmra.mrb[50].mxu0 %vm388_vm1, %v12705_v24 }
 0x19b   : > { %10570 = vmatmul.mubr.msk.f32.gmra.mrb[50].mxu1 %vm388_vm1, %v8618_v26  ;;  %10372 = vmatprep.mubr.msk.f32.mxu0 %vm388_vm1, %v12710_v28  ;;  %v12928_v26 = vld [vmem:[%s11692_s29 + $0xf8] sm:$0xff] }
 0x19c   : > { %10572 = vmatprep.mubr.msk.f32.mxu1 %vm388_vm1, %v8619_v29  ;;  %v12933_v29 = vld [vmem:[%s11692_s29 + $0x108] sm:$0xff] }
 0x19e   : > { %10373 = vmatmul.mubr.msk.f32.gmra.mrb[52].mxu0 %vm388_vm1, %v12719_v32 }
 0x19f   : > { %10573 = vmatmul.mubr.msk.f32.gmra.mrb[52].mxu1 %vm388_vm1, %v8620_v33  ;;  %10375 = vmatprep.mubr.msk.f32.mxu0 %vm388_vm1, %v12724_v34  ;;  %v12942_v33 = vld [vmem:[%s11692_s29 + $0x110] sm:$0xff] }
 0x1a0   : > { %10575 = vmatprep.mubr.msk.f32.mxu1 %vm388_vm1, %v8621_v35  ;;  %v12947_v35 = vld [vmem:[%s11692_s29 + $0x120] sm:$0xff] }
 0x1a2   : > { %10376 = vmatmul.mubr.msk.f32.gmra.mrb[54].mxu0 %vm388_vm1, %v12733_v36 }
 0x1a3   : > { %10576 = vmatmul.mubr.msk.f32.gmra.mrb[54].mxu1 %vm388_vm1, %v8622_v37  ;;  %10378 = vmatprep.mubr.msk.f32.mxu0 %vm388_vm1, %v12738_v38  ;;  %v12956_v37 = vld [vmem:[%s11692_s29 + $0x128] sm:$0xff] }
 0x1a4   : > { %10578 = vmatprep.mubr.msk.f32.mxu1 %vm388_vm1, %v8623_v39  ;;  %v12961_v39 = vld [vmem:[%s11692_s29 + $0x138] sm:$0xff] }
 0x1a6   : > { %10379 = vmatmul.mubr.msk.f32.gmra.mrb[56].mxu0 %vm388_vm1, %v12747_v40 }
 0x1a7   : > { %10579 = vmatmul.mubr.msk.f32.gmra.mrb[56].mxu1 %vm388_vm1, %v8624_v41  ;;  %10381 = vmatprep.mubr.msk.f32.mxu0 %vm388_vm1, %v12752_v42  ;;  %v12970_v41 = vld [vmem:[%s11692_s29 + $0x140] sm:$0xff] }
 0x1a8   : > { %10581 = vmatprep.mubr.msk.f32.mxu1 %vm388_vm1, %v8625_v43  ;;  %v12975_v43 = vld [vmem:[%s11692_s29 + $0x150] sm:$0xff] }
 0x1aa   : > { %10382 = vmatmul.mubr.msk.f32.gmra.mrb[58].mxu0 %vm388_vm1, %v12761_v44 }
 0x1ab   : > { %10582 = vmatmul.mubr.msk.f32.gmra.mrb[58].mxu1 %vm388_vm1, %v8626_v46  ;;  %10384 = vmatprep.mubr.msk.f32.mxu0 %vm388_vm1, %v12766_v49  ;;  %v12984_v46 = vld [vmem:[%s11692_s29 + $0x158] sm:$0xff] }
 0x1ac   : > { %10584 = vmatprep.mubr.msk.f32.mxu1 %vm388_vm1, %v8627_v51  ;;  %v12989_v51 = vld [vmem:[%s11692_s29 + $0x168] sm:$0xff] }
 0x1ae   : > { %10385 = vmatmul.mubr.msk.f32.gmra.mrb[60].mxu0 %vm388_vm1, %v12775_v53 }
 0x1af   : > { %10585 = vmatmul.mubr.msk.f32.gmra.mrb[60].mxu1 %vm388_vm1, %v8628_v57  ;;  %10387 = vmatprep.mubr.msk.f32.mxu0 %vm388_vm1, %v12394_v23  ;;  %v12998_v57 = vld [vmem:[%s11692_s29 + $0x170] sm:$0xff] }
 0x1b0   : > { %10587 = vmatprep.mubr.msk.f32.mxu1 %vm388_vm1, %v12543_v45  ;;  %v12799_v45 = vld [vmem:[#allocation5 + $0x2c] sm:$0xf] }
 0x1b2   : > { %10388 = vmatmul.mubr.msk.f32.gmra.mrb[62].mxu0 %vm388_vm1, %v12408_v15 }
 0x1b3   : > { %10588 = vmatmul.mubr.msk.f32.gmra.mrb[62].mxu1 %vm388_vm1, %v12554_v47  ;;  %10392 = vmatprep.mubr.msk.f32.mxu0 %vm388_vm1, %v8243_v59  ;;  %v12806_v47 = vld [vmem:[%s11692_s29 + $0x38] sm:$0xff] }
 0x1b4   : > { %10592 = vmatprep.mubr.msk.f32.mxu1 %vm388_vm1, %v12557_v48  ;;  %v12815_v48 = vld [vmem:[%s11692_s29 + $0x48] sm:$0xff] }
 0x1b6   : > { %10393 = vmatmul.mubr.msk.f32.vlgmr.msra.gmra.mrb[32].mxu0 %vm388_vm1, %v8244_v61 }
 0x1b7   : > { %10593 = vmatmul.mubr.msk.f32.vlgmr.msra.gmra.mrb[32].mxu1 %vm388_vm1, %v12567_v50  ;;  %10441 = vmatpush3.msk.msra.mxu0 %vm485_vm0, %v12577_v54  ;;  %v12830_v50 = vld [vmem:[%s11692_s29 + $0x50] sm:$0xff]  ;;  %v12835_v54 = vld [vmem:[%s11692_s29 + $0x60] sm:$0xff] }
 0x1b8   : > { %10395 = vmatprep.mubr.msk.f32.mxu0 %vm388_vm1, %v12796_v0  ;;  %10595 = vmatprep.mubr.msk.f32.mxu1 %vm388_vm1, %v12572_v52 }
 0x1b9   : > { %10641 = vmatpush3.msk.msra.mxu1 %vm485_vm0, %v12585_v56  ;;  %10490 = vmatprep.subr.msk.mxu0 %vm485_vm0, %v12799_v45  ;;  %v12844_v56 = vld [vmem:[%s11692_s29 + $0x68] sm:$0xff] }
 0x1ba   : > { %10396 = vmatmul.mubr.msk.f32.gmra.mrb[34].mxu0 %vm388_vm1, %v12806_v47  ;;  %10690 = vmatprep.subr.msk.mxu1 %vm485_vm0, %v12808_v5 }
 0x1bb   : > { %10596 = vmatmul.mubr.msk.f32.gmra.mrb[34].mxu1 %vm388_vm1, %v12583_v55  ;;  %10398 = vmatprep.mubr.msk.f32.mxu0 %vm388_vm1, %v12815_v48 }
 0x1bc   : > { %10598 = vmatprep.mubr.msk.f32.mxu1 %vm388_vm1, %v12592_v58 }
 0x1be   : > { %10399 = vmatmul.mubr.msk.f32.gmra.mrb[36].mxu0 %vm388_vm1, %v12830_v50 }
 0x1bf   : > { %10599 = vmatmul.mubr.msk.f32.gmra.mrb[36].mxu1 %vm388_vm1, %v12607_v60  ;;  %10401 = vmatprep.mubr.msk.f32.mxu0 %vm388_vm1, %v12835_v54 }
 0x1c0   : > { %10601 = vmatprep.mubr.msk.f32.mxu1 %vm388_vm1, %v12612_v62 }
 0x1c2   : > { %10402 = vmatmul.mubr.msk.f32.gmra.mrb[38].mxu0 %vm388_vm1, %v12844_v56 }
 0x1c3   : > { %10602 = vmatmul.mubr.msk.f32.gmra.mrb[38].mxu1 %vm388_vm1, %v12621_v3  ;;  %10404 = vmatprep.mubr.msk.f32.mxu0 %vm388_vm1, %v12849_v7 }
 0x1c4   : > { %10604 = vmatprep.mubr.msk.f32.mxu1 %vm388_vm1, %v12626_v6 }
 0x1c6   : > { %10405 = vmatmul.mubr.msk.f32.gmra.mrb[40].mxu0 %vm388_vm1, %v12858_v2 }
 0x1c7   : > { %10605 = vmatmul.mubr.msk.f32.gmra.mrb[40].mxu1 %vm388_vm1, %v12635_v63  ;;  %10407 = vmatprep.mubr.msk.f32.mxu0 %vm388_vm1, %v12863_v30 }
 0x1c8   : > { %10607 = vmatprep.mubr.msk.f32.mxu1 %vm388_vm1, %v12640_v4 }
 0x1ca   : > { %10408 = vmatmul.mubr.msk.f32.gmra.mrb[42].mxu0 %vm388_vm1, %v12872_v1 }
 0x1cb   : > { %10608 = vmatmul.mubr.msk.f32.gmra.mrb[42].mxu1 %vm388_vm1, %v12649_v31  ;;  %10410 = vmatprep.mubr.msk.f32.mxu0 %vm388_vm1, %v12877_v19 }
 0x1cc   : > { %10610 = vmatprep.mubr.msk.f32.mxu1 %vm388_vm1, %v12654_v13 }
 0x1ce   : > { %10411 = vmatmul.mubr.msk.f32.gmra.mrb[44].mxu0 %vm388_vm1, %v12886_v27 }
 0x1cf   : > { %10611 = vmatmul.mubr.msk.f32.gmra.mrb[44].mxu1 %vm388_vm1, %v12663_v25  ;;  %10413 = vmatprep.mubr.msk.f32.mxu0 %vm388_vm1, %v12891_v10 }
 0x1d0   : > { %10613 = vmatprep.mubr.msk.f32.mxu1 %vm388_vm1, %v12668_v8 }
 0x1d2   : > { %10414 = vmatmul.mubr.msk.f32.gmra.mrb[46].mxu0 %vm388_vm1, %v12900_v9 }
 0x1d3   : > { %10614 = vmatmul.mubr.msk.f32.gmra.mrb[46].mxu1 %vm388_vm1, %v12677_v11  ;;  %10416 = vmatprep.mubr.msk.f32.mxu0 %vm388_vm1, %v12905_v14 }
 0x1d4   : > { %10616 = vmatprep.mubr.msk.f32.mxu1 %vm388_vm1, %v12682_v12 }
 0x1d6   : > { %10417 = vmatmul.mubr.msk.f32.gmra.mrb[48].mxu0 %vm388_vm1, %v12914_v18 }
 0x1d7   : > { %10617 = vmatmul.mubr.msk.f32.gmra.mrb[48].mxu1 %vm388_vm1, %v12691_v16  ;;  %10419 = vmatprep.mubr.msk.f32.mxu0 %vm388_vm1, %v12919_v22 }
 0x1d8   : > { %10619 = vmatprep.mubr.msk.f32.mxu1 %vm388_vm1, %v12696_v20 }
 0x1da   : > { %10420 = vmatmul.mubr.msk.f32.gmra.mrb[50].mxu0 %vm388_vm1, %v12928_v26 }
 0x1db   : > { %10620 = vmatmul.mubr.msk.f32.gmra.mrb[50].mxu1 %vm388_vm1, %v12705_v24  ;;  %10422 = vmatprep.mubr.msk.f32.mxu0 %vm388_vm1, %v12933_v29 }
 0x1dc   : > { %10622 = vmatprep.mubr.msk.f32.mxu1 %vm388_vm1, %v12710_v28 }
 0x1de   : > { %10423 = vmatmul.mubr.msk.f32.gmra.mrb[52].mxu0 %vm388_vm1, %v12942_v33 }
 0x1df   : > { %10623 = vmatmul.mubr.msk.f32.gmra.mrb[52].mxu1 %vm388_vm1, %v12719_v32  ;;  %10425 = vmatprep.mubr.msk.f32.mxu0 %vm388_vm1, %v12947_v35 }
 0x1e0   : > { %10625 = vmatprep.mubr.msk.f32.mxu1 %vm388_vm1, %v12724_v34 }
 0x1e2   : > { %10426 = vmatmul.mubr.msk.f32.gmra.mrb[54].mxu0 %vm388_vm1, %v12956_v37 }
 0x1e3   : > { %10626 = vmatmul.mubr.msk.f32.gmra.mrb[54].mxu1 %vm388_vm1, %v12733_v36  ;;  %10428 = vmatprep.mubr.msk.f32.mxu0 %vm388_vm1, %v12961_v39 }
 0x1e4   : > { %10628 = vmatprep.mubr.msk.f32.mxu1 %vm388_vm1, %v12738_v38 }
 0x1e6   : > { %10429 = vmatmul.mubr.msk.f32.gmra.mrb[56].mxu0 %vm388_vm1, %v12970_v41 }
 0x1e7   : > { %10629 = vmatmul.mubr.msk.f32.gmra.mrb[56].mxu1 %vm388_vm1, %v12747_v40  ;;  %10431 = vmatprep.mubr.msk.f32.mxu0 %vm388_vm1, %v12975_v43 }
 0x1e8   : > { %10631 = vmatprep.mubr.msk.f32.mxu1 %vm388_vm1, %v12752_v42 }
 0x1ea   : > { %10432 = vmatmul.mubr.msk.f32.gmra.mrb[58].mxu0 %vm388_vm1, %v12984_v46 }
 0x1eb   : > { %10632 = vmatmul.mubr.msk.f32.gmra.mrb[58].mxu1 %vm388_vm1, %v12761_v44  ;;  %10434 = vmatprep.mubr.msk.f32.mxu0 %vm388_vm1, %v12989_v51 }
 0x1ec   : > { %10634 = vmatprep.mubr.msk.f32.mxu1 %vm388_vm1, %v12766_v49 }
 0x1ee   : > { %10435 = vmatmul.mubr.msk.f32.gmra.mrb[60].mxu0 %vm388_vm1, %v12998_v57 }
 0x1ef   : > { %10635 = vmatmul.mubr.msk.f32.gmra.mrb[60].mxu1 %vm388_vm1, %v12775_v53  ;;  %10437 = vmatprep.mubr.msk.f32.mxu0 %vm388_vm1, %v12391_v21  ;;  %v13058_v21 = vld [vmem:[#allocation7] ss:$0 sm:$0xff] }
 0x1f0   : > { %10637 = vmatprep.mubr.msk.f32.mxu1 %vm388_vm1, %v12394_v23 }
 0x1f2   : > { %10438 = vmatmul.mubr.msk.f32.gmra.mrb[62].mxu0 %vm388_vm1, %v12403_v17 }
 0x1f3   : > { %10638 = vmatmul.mubr.msk.f32.gmra.mrb[62].mxu1 %vm388_vm1, %v12408_v15  ;;  %10442 = vmatprep.mubr.msk.f32.mxu0 %vm388_vm1, %v12796_v0 }
 0x1f4   : > { %10642 = vmatprep.mubr.msk.f32.mxu1 %vm388_vm1, %v12572_v52 }
 0x1f6   : > { %10443 = vmatmul.mubr.msk.f32.vlgmr.msra.gmra.mrb[32].mxu0 %vm388_vm1, %v12806_v47 }
 0x1f7   : > { %10643 = vmatmul.mubr.msk.f32.vlgmr.msra.gmra.mrb[32].mxu1 %vm388_vm1, %v12583_v55  ;;  %10491 = vmatpush3.msk.msra.mxu0 %vm485_vm0, %v12799_v45 }
 0x1f8   : > { %10445 = vmatprep.mubr.msk.f32.mxu0 %vm388_vm1, %v12815_v48  ;;  %10645 = vmatprep.mubr.msk.f32.mxu1 %vm388_vm1, %v12592_v58 }
 0x1f9   : > { %10691 = vmatpush3.msk.msra.mxu1 %vm485_vm0, %v12808_v5 }
 0x1fa   : > { %10446 = vmatmul.mubr.msk.f32.gmra.mrb[34].mxu0 %vm388_vm1, %v12830_v50 }
 0x1fb   : > { %10646 = vmatmul.mubr.msk.f32.gmra.mrb[34].mxu1 %vm388_vm1, %v12607_v60  ;;  %10448 = vmatprep.mubr.msk.f32.mxu0 %vm388_vm1, %v12835_v54 }
 0x1fc   : > { %10648 = vmatprep.mubr.msk.f32.mxu1 %vm388_vm1, %v12612_v62 }
 0x1fe   : > { %10449 = vmatmul.mubr.msk.f32.gmra.mrb[36].mxu0 %vm388_vm1, %v12844_v56 }
 0x1ff   : > { %10649 = vmatmul.mubr.msk.f32.gmra.mrb[36].mxu1 %vm388_vm1, %v12621_v3  ;;  %10451 = vmatprep.mubr.msk.f32.mxu0 %vm388_vm1, %v12849_v7 }
 0x200   : > { %10651 = vmatprep.mubr.msk.f32.mxu1 %vm388_vm1, %v12626_v6 }
 0x202   : > { %10452 = vmatmul.mubr.msk.f32.gmra.mrb[38].mxu0 %vm388_vm1, %v12858_v2 }
 0x203   : > { %10652 = vmatmul.mubr.msk.f32.gmra.mrb[38].mxu1 %vm388_vm1, %v12635_v63  ;;  %10454 = vmatprep.mubr.msk.f32.mxu0 %vm388_vm1, %v12863_v30 }
 0x204   : > { %10654 = vmatprep.mubr.msk.f32.mxu1 %vm388_vm1, %v12640_v4 }
 0x206   : > { %10455 = vmatmul.mubr.msk.f32.gmra.mrb[40].mxu0 %vm388_vm1, %v12872_v1 }
 0x207   : > { %10655 = vmatmul.mubr.msk.f32.gmra.mrb[40].mxu1 %vm388_vm1, %v12649_v31  ;;  %10457 = vmatprep.mubr.msk.f32.mxu0 %vm388_vm1, %v12877_v19 }
 0x208   : > { %10657 = vmatprep.mubr.msk.f32.mxu1 %vm388_vm1, %v12654_v13 }
 0x209   : > { %v10094_v23 = vpop.f32.mrb[0].mxu0 }
 0x20a   : > { %v1820_v17 = vmul.f32 %v10094_v23, %v10094_v23  ;;  %v1896_v15 = vadd.f32 %v10094_v23, %v13058_v21  ;;  %v10294_v52 = vpop.f32.mrb[0].mxu1  ;;  %v1628_v55 = vpop.f32.mrb[1].mxu0  ;;  %10458 = vmatmul.mubr.msk.f32.gmra.mrb[42].mxu0 %vm388_vm1, %v12886_v27 }
 0x20b   : > { %v3622_v58 = vmul.f32 %v10294_v52, %v10294_v52  ;;  %v3692_v60 = vadd.f32 %v10294_v52, %v13058_v21  ;;  %v1819_v62 = vmul.f32 %v1628_v55, %v1628_v55  ;;  %v1895_v3 = vadd.f32 %v13058_v21, %v1628_v55  ;;  %v3430_v6 = vpop.f32.mrb[1].mxu1  ;;  %10658 = vmatmul.mubr.msk.f32.gmra.mrb[42].mxu1 %vm388_vm1, %v12663_v25 }
 0x20c   : > { %v3621_v63 = vmul.f32 %v3430_v6, %v3430_v6  ;;  %v3691_v4 = vadd.f32 %v13058_v21, %v3430_v6  ;;  %10460 = vmatprep.mubr.msk.f32.mxu0 %vm388_vm1, %v12891_v10  ;;  %10660 = vmatprep.mubr.msk.f32.mxu1 %vm388_vm1, %v12668_v8 }
 0x20d   : > { %v1851_v31 = vadd.f32 %v1820_v17, %v1819_v62  ;;  %v1927_v13 = vadd.f32 %v1896_v15, %v1895_v3  ;;  %v9032_v59 = vpack.c.bf16 %v1896_v15, %v1895_v3  ;;  %v10097_v61 = vpop.f32.mrb[2].mxu0 }
 0x20e   : > { %v3653_v0 = vadd.f32 %v3622_v58, %v3621_v63  ;;  %v3723_v45 = vadd.f32 %v3692_v60, %v3691_v4  ;;  %v9112_v47 = vpack.c.bf16 %v3692_v60, %v3691_v4  ;;  %v10297_v5 = vpop.f32.mrb[2].mxu1  ;;  %v1638_v48 = vpop.f32.mrb[3].mxu0  ;;  %10461 = vmatmul.mubr.msk.f32.gmra.mrb[44].mxu0 %vm388_vm1, %v12900_v9  ;;  %v1898_v25 = vadd.f32 %v10097_v61, %v13058_v21 }
 0x20f   : > { %9033 = vst [vmem:[%s13079_s28] sm:$0xff] %v9032_v59   ;;  %v3694_v8 = vadd.f32 %v10297_v5, %v13058_v21  ;;  %v1821_v50 = vmul.f32 %v1638_v48, %v1638_v48  ;;  %v3440_v54 = vpop.f32.mrb[3].mxu1  ;;  %10661 = vmatmul.mubr.msk.f32.gmra.mrb[44].mxu1 %vm388_vm1, %v12677_v11  ;;  %v1897_v56 = vadd.f32 %v13058_v21, %v1638_v48 }
 0x210   : > { %9364 = vst [vmem:[%s13079_s28 + $0x80] sm:$0xff] %v9112_v47   ;;  %v3623_v7 = vmul.f32 %v3440_v54, %v3440_v54  ;;  %v3693_v2 = vadd.f32 %v13058_v21, %v3440_v54  ;;  %10463 = vmatprep.mubr.msk.f32.mxu0 %vm388_vm1, %v12905_v14  ;;  %10663 = vmatprep.mubr.msk.f32.mxu1 %vm388_vm1, %v12682_v12 }
 0x211   : > { %v1822_v30 = vmul.f32 %v10097_v61, %v10097_v61  ;;  %v1852_v1 = vadd.f32 %v1851_v31, %v1821_v50  ;;  %v10100_v19 = vpop.f32.mrb[4].mxu0  ;;  %v1928_v27 = vadd.f32 %v1927_v13, %v1897_v56  ;;  %v9037_v10 = vpack.c.bf16 %v1898_v25, %v1897_v56 }
 0x212   : > { %v3654_v9 = vadd.f32 %v3653_v0, %v3623_v7  ;;  %v3724_v11 = vadd.f32 %v3723_v45, %v3693_v2  ;;  %v10300_v23 = vpop.f32.mrb[4].mxu1  ;;  %v1648_v17 = vpop.f32.mrb[5].mxu0  ;;  %10464 = vmatmul.mubr.msk.f32.gmra.mrb[46].mxu0 %vm388_vm1, %v12914_v18  ;;  %v3624_v15 = vmul.f32 %v10297_v5, %v10297_v5  ;;  %v9117_v52 = vpack.c.bf16 %v3694_v8, %v3693_v2 }
 0x213   : > { %v1900_v14 = vadd.f32 %v10100_v19, %v13058_v21  ;;  %v3450_v55 = vpop.f32.mrb[5].mxu1  ;;  %10664 = vmatmul.mubr.msk.f32.gmra.mrb[46].mxu1 %vm388_vm1, %v12691_v16  ;;  %9349 = vst [vmem:[%s13079_s28 + $0x8] sm:$0xff] %v9037_v10   ;;  %v3696_v12 = vadd.f32 %v10300_v23, %v13058_v21  ;;  %v1823_v58 = vmul.f32 %v1648_v17, %v1648_v17 }
 0x214   : > { %v1853_v60 = vadd.f32 %v1852_v1, %v1822_v30  ;;  %v1899_v62 = vadd.f32 %v13058_v21, %v1648_v17  ;;  %10466 = vmatprep.mubr.msk.f32.mxu0 %vm388_vm1, %v12919_v22  ;;  %9365 = vst [vmem:[%s13079_s28 + $0x88] sm:$0xff] %v9117_v52   ;;  %v1929_v18 = vadd.f32 %v1928_v27, %v1898_v25 }
 0x215   : > { %v3625_v3 = vmul.f32 %v3450_v55, %v3450_v55  ;;  %v3655_v6 = vadd.f32 %v3654_v9, %v3624_v15  ;;  %v3695_v63 = vadd.f32 %v13058_v21, %v3450_v55  ;;  %v10103_v4 = vpop.f32.mrb[6].mxu0  ;;  %10666 = vmatprep.mubr.msk.f32.mxu1 %vm388_vm1, %v12696_v20  ;;  %v1824_v16 = vmul.f32 %v10100_v19, %v10100_v19 }
 0x216   : > { %v1854_v31 = vadd.f32 %v1853_v60, %v1823_v58  ;;  %v9042_v13 = vpack.c.bf16 %v1900_v14, %v1899_v62  ;;  %v3725_v59 = vadd.f32 %v3724_v11, %v3694_v8  ;;  %v10303_v61 = vpop.f32.mrb[6].mxu1  ;;  %v1658_v0 = vpop.f32.mrb[7].mxu0  ;;  %10467 = vmatmul.mubr.msk.f32.gmra.mrb[48].mxu0 %vm388_vm1, %v12928_v26  ;;  %v1930_v22 = vadd.f32 %v1929_v18, %v1899_v62 }
 0x217   : > { %v3656_v45 = vadd.f32 %v3655_v6, %v3625_v3  ;;  %v9122_v47 = vpack.c.bf16 %v3696_v12, %v3695_v63  ;;  %v1902_v5 = vadd.f32 %v10103_v4, %v13058_v21  ;;  %v3460_v48 = vpop.f32.mrb[7].mxu1  ;;  %10667 = vmatmul.mubr.msk.f32.gmra.mrb[48].mxu1 %vm388_vm1, %v12705_v24  ;;  %v3626_v20 = vmul.f32 %v10300_v23, %v10300_v23 }
 0x218   : > { %9350 = vst [vmem:[%s13079_s28 + $0x10] sm:$0xff] %v9042_v13   ;;  %v3726_v25 = vadd.f32 %v3725_v59, %v3695_v63  ;;  %v3698_v8 = vadd.f32 %v10303_v61, %v13058_v21  ;;  %v1825_v50 = vmul.f32 %v1658_v0, %v1658_v0  ;;  %10469 = vmatprep.mubr.msk.f32.mxu0 %vm388_vm1, %v12933_v29 }
 0x219   : > { %9366 = vst [vmem:[%s13079_s28 + $0x90] sm:$0xff] %v9122_v47   ;;  %v1855_v26 = vadd.f32 %v1854_v31, %v1824_v16  ;;  %v1901_v54 = vadd.f32 %v13058_v21, %v1658_v0  ;;  %v1931_v56 = vadd.f32 %v1930_v22, %v1900_v14  ;;  %v3627_v7 = vmul.f32 %v3460_v48, %v3460_v48  ;;  %v10106_v2 = vpop.f32.mrb[8].mxu0 }
 0x21a   : > { %10669 = vmatprep.mubr.msk.f32.mxu1 %vm388_vm1, %v12710_v28  ;;  %v1826_v24 = vmul.f32 %v10103_v4, %v10103_v4  ;;  %v3657_v30 = vadd.f32 %v3656_v45, %v3626_v20  ;;  %v3697_v1 = vadd.f32 %v13058_v21, %v3460_v48  ;;  %v3727_v19 = vadd.f32 %v3726_v25, %v3696_v12  ;;  %v10306_v27 = vpop.f32.mrb[8].mxu1  ;;  %v1668_v10 = vpop.f32.mrb[9].mxu0 }
 0x21b   : > { %10470 = vmatmul.mubr.msk.f32.gmra.mrb[50].mxu0 %vm388_vm1, %v12942_v33  ;;  %v1856_v29 = vadd.f32 %v1855_v26, %v1825_v50  ;;  %v1932_v9 = vadd.f32 %v1931_v56, %v1901_v54  ;;  %v9047_v11 = vpack.c.bf16 %v1902_v5, %v1901_v54  ;;  %v1904_v23 = vadd.f32 %v10106_v2, %v13058_v21  ;;  %v3470_v17 = vpop.f32.mrb[9].mxu1 }
 0x21c   : > { %10670 = vmatmul.mubr.msk.f32.gmra.mrb[50].mxu1 %vm388_vm1, %v12719_v32  ;;  %v3628_v28 = vmul.f32 %v10303_v61, %v10303_v61  ;;  %v3658_v15 = vadd.f32 %v3657_v30, %v3627_v7  ;;  %v3728_v52 = vadd.f32 %v3727_v19, %v3697_v1  ;;  %v9127_v14 = vpack.c.bf16 %v3698_v8, %v3697_v1 }
 0x21d   : > { %10472 = vmatprep.mubr.msk.f32.mxu0 %vm388_vm1, %v12947_v35  ;;  %9351 = vst [vmem:[%s13079_s28 + $0x18] sm:$0xff] %v9047_v11   ;;  %v3700_v33 = vadd.f32 %v10306_v27, %v13058_v21  ;;  %v1827_v55 = vmul.f32 %v1668_v10, %v1668_v10  ;;  %v1857_v12 = vadd.f32 %v1856_v29, %v1826_v24  ;;  %v10109_v60 = vpop.f32.mrb[10].mxu0 }
 0x21e   : > { %v1903_v58 = vadd.f32 %v13058_v21, %v1668_v10  ;;  %10672 = vmatprep.mubr.msk.f32.mxu1 %vm388_vm1, %v12724_v34  ;;  %9367 = vst [vmem:[%s13079_s28 + $0x98] sm:$0xff] %v9127_v14   ;;  %v1933_v32 = vadd.f32 %v1932_v9, %v1902_v5  ;;  %v3629_v62 = vmul.f32 %v3470_v17, %v3470_v17  ;;  %v10309_v6 = vpop.f32.mrb[10].mxu1  ;;  %v1678_v35 = vpop.f32.mrb[11].mxu0 }
 0x21f   : > { %v3659_v18 = vadd.f32 %v3658_v15, %v3628_v28  ;;  %v3699_v3 = vadd.f32 %v13058_v21, %v3470_v17  ;;  %10473 = vmatmul.mubr.msk.f32.gmra.mrb[52].mxu0 %vm388_vm1, %v12956_v37  ;;  %v1828_v63 = vmul.f32 %v10106_v2, %v10106_v2  ;;  %v1858_v4 = vadd.f32 %v1857_v12, %v1827_v55  ;;  %v3480_v13 = vpop.f32.mrb[11].mxu1 }
 0x220   : > { %v9052_v16 = vpack.c.bf16 %v1904_v23, %v1903_v58  ;;  %v3729_v31 = vadd.f32 %v3728_v52, %v3698_v8  ;;  %10673 = vmatmul.mubr.msk.f32.gmra.mrb[52].mxu1 %vm388_vm1, %v12733_v36  ;;  %v1934_v34 = vadd.f32 %v1933_v32, %v1903_v58  ;;  %v1906_v0 = vadd.f32 %v10109_v60, %v13058_v21 }
 0x221   : > { %v3660_v59 = vadd.f32 %v3659_v18, %v3629_v62  ;;  %v9132_v61 = vpack.c.bf16 %v3700_v33, %v3699_v3  ;;  %10475 = vmatprep.mubr.msk.f32.mxu0 %vm388_vm1, %v12961_v39  ;;  %v3630_v22 = vmul.f32 %v10306_v27, %v10306_v27  ;;  %v3702_v45 = vadd.f32 %v10309_v6, %v13058_v21  ;;  %v10112_v5 = vpop.f32.mrb[12].mxu0  ;;  %v8401_v18 = vld [vmem:[%s11692_s29 + $0x180] sm:$0xff] }
 0x222   : > { %9352 = vst [vmem:[%s13079_s28 + $0x20] sm:$0xff] %v9052_v16   ;;  %v3730_v37 = vadd.f32 %v3729_v31, %v3699_v3  ;;  %v1829_v47 = vmul.f32 %v1678_v35, %v1678_v35  ;;  %10675 = vmatprep.mubr.msk.f32.mxu1 %vm388_vm1, %v12738_v38  ;;  %v1859_v36 = vadd.f32 %v1858_v4, %v1828_v63  ;;  %v10312_v8 = vpop.f32.mrb[12].mxu1  ;;  %v1688_v50 = vpop.f32.mrb[13].mxu0  ;;  %v13178_v4 = vld [vmem:[%s11692_s29 + $0x181] sm:$0xff] }
 0x223   : > { %9368 = vst [vmem:[%s13079_s28 + $0xa0] sm:$0xff] %v9132_v61   ;;  %v1905_v48 = vadd.f32 %v13058_v21, %v1678_v35  ;;  %v1935_v20 = vadd.f32 %v1934_v34, %v1904_v23  ;;  %v3631_v25 = vmul.f32 %v3480_v13, %v3480_v13  ;;  %10476 = vmatmul.mubr.msk.f32.gmra.mrb[54].mxu0 %vm388_vm1, %v12970_v41  ;;  %v3490_v7 = vpop.f32.mrb[13].mxu1 }
 0x224   : > { %v1830_v39 = vmul.f32 %v10109_v60, %v10109_v60  ;;  %v3661_v26 = vadd.f32 %v3660_v59, %v3630_v22  ;;  %v3701_v54 = vadd.f32 %v13058_v21, %v3480_v13  ;;  %v3731_v56 = vadd.f32 %v3730_v37, %v3700_v33  ;;  %10676 = vmatmul.mubr.msk.f32.gmra.mrb[54].mxu1 %vm388_vm1, %v12747_v40  ;;  %v8402_v59 = vld [vmem:[%s11692_s29 + $0x188] sm:$0xff] }
 0x225   : > { %v1860_v38 = vadd.f32 %v1859_v36, %v1829_v47  ;;  %v1936_v2 = vadd.f32 %v1935_v20, %v1905_v48  ;;  %v9057_v24 = vpack.c.bf16 %v1906_v0, %v1905_v48  ;;  %v1908_v30 = vadd.f32 %v10112_v5, %v13058_v21  ;;  %10478 = vmatprep.mubr.msk.f32.mxu0 %vm388_vm1, %v12975_v43  ;;  %v10115_v10 = vpop.f32.mrb[14].mxu0 }
 0x226   : > { %v3632_v41 = vmul.f32 %v10309_v6, %v10309_v6  ;;  %v3662_v1 = vadd.f32 %v3661_v26, %v3631_v25  ;;  %v3732_v19 = vadd.f32 %v3731_v56, %v3701_v54  ;;  %v9137_v27 = vpack.c.bf16 %v3702_v45, %v3701_v54  ;;  %10678 = vmatprep.mubr.msk.f32.mxu1 %vm388_vm1, %v12752_v42  ;;  %v10315_v23 = vpop.f32.mrb[14].mxu1  ;;  %v1698_v17 = vpop.f32.mrb[15].mxu0  ;;  %v13198_v54 = vld [vmem:[%s11692_s29 + $0x199] sm:$0xff] }
 0x227   : > { %9353 = vst [vmem:[%s13079_s28 + $0x28] sm:$0xff] %v9057_v24   ;;  %v3704_v40 = vadd.f32 %v10312_v8, %v13058_v21  ;;  %v1831_v29 = vmul.f32 %v1688_v50, %v1688_v50  ;;  %v1861_v9 = vadd.f32 %v1860_v38, %v1830_v39  ;;  %v1907_v11 = vadd.f32 %v13058_v21, %v1688_v50  ;;  %v3500_v42 = vpop.f32.mrb[15].mxu1 }
 0x228   : > { %10479 = vmatmul.mubr.msk.f32.gmra.mrb[56].mxu0 %vm388_vm1, %v12984_v46  ;;  %9369 = vst [vmem:[%s13079_s28 + $0xa8] sm:$0xff] %v9137_v27   ;;  %v1937_v43 = vadd.f32 %v1936_v2, %v1906_v0  ;;  %v3633_v28 = vmul.f32 %v3490_v7, %v3490_v7  ;;  %v3663_v15 = vadd.f32 %v3662_v1, %v3632_v41 }
 0x229   : > { %v3703_v52 = vadd.f32 %v13058_v21, %v3490_v7  ;;  %10679 = vmatmul.mubr.msk.f32.gmra.mrb[56].mxu1 %vm388_vm1, %v12761_v44  ;;  %v1832_v14 = vmul.f32 %v10112_v5, %v10112_v5  ;;  %v1862_v33 = vadd.f32 %v1861_v9, %v1831_v29  ;;  %v9062_v55 = vpack.c.bf16 %v1908_v30, %v1907_v11  ;;  %v10118_v62 = vpop.f32.mrb[16].mxu0 }
 0x22a   : > { %v3733_v12 = vadd.f32 %v3732_v19, %v3702_v45  ;;  %10481 = vmatprep.mubr.msk.f32.mxu0 %vm388_vm1, %v12989_v51  ;;  %v1938_v46 = vadd.f32 %v1937_v43, %v1907_v11  ;;  %v3664_v58 = vadd.f32 %v3663_v15, %v3633_v28  ;;  %v1910_v32 = vadd.f32 %v10115_v10, %v13058_v21  ;;  %v10318_v51 = vpop.f32.mrb[16].mxu1  ;;  %v1708_v63 = vpop.f32.mrb[17].mxu0 }
 0x22b   : > { %v9142_v60 = vpack.c.bf16 %v3704_v40, %v3703_v52  ;;  %10681 = vmatprep.mubr.msk.f32.mxu1 %vm388_vm1, %v12766_v49  ;;  %v3634_v44 = vmul.f32 %v10312_v8, %v10312_v8  ;;  %9354 = vst [vmem:[%s13079_s28 + $0x30] sm:$0xff] %v9062_v55   ;;  %v3706_v6 = vadd.f32 %v10315_v23, %v13058_v21  ;;  %v3510_v34 = vpop.f32.mrb[17].mxu1 }
 0x22c   : > { %v3734_v3 = vadd.f32 %v3733_v12, %v3703_v52  ;;  %v1833_v35 = vmul.f32 %v1698_v17, %v1698_v17  ;;  %10482 = vmatmul.mubr.msk.f32.gmra.mrb[58].mxu0 %vm388_vm1, %v12998_v57  ;;  %v1863_v16 = vadd.f32 %v1862_v33, %v1832_v14  ;;  %v1909_v49 = vadd.f32 %v13058_v21, %v1698_v17  ;;  %v13188_v57 = vld [vmem:[%s11692_s29 + $0x189] sm:$0xff]  ;;  %v8438_v17 = vld [vmem:[%s11692_s29 + $0x31] sm:$0xff] }
 0x22d   : > { %9370 = vst [vmem:[%s13079_s28 + $0xb0] sm:$0xff] %v9142_v60   ;;  %v1939_v31 = vadd.f32 %v1938_v46, %v1908_v30  ;;  %v3635_v13 = vmul.f32 %v3500_v42, %v3500_v42  ;;  %10682 = vmatmul.mubr.msk.f32.gmra.mrb[58].mxu1 %vm388_vm1, %v12775_v53  ;;  %v1834_v61 = vmul.f32 %v10115_v10, %v10115_v10  ;;  %v10121_v48 = vpop.f32.mrb[18].mxu0  ;;  %v8403_v53 = vld [vmem:[%s11692_s29 + $0x198] sm:$0xff]  ;;  %v8404_v30 = vld [vmem:[%s11692_s29 + $0x1a0] sm:$0xff] }
 0x22e   : > { %v3665_v0 = vadd.f32 %v3664_v58, %v3634_v44  ;;  %v3705_v22 = vadd.f32 %v13058_v21, %v3500_v42  ;;  %v3735_v37 = vadd.f32 %v3734_v3, %v3704_v40  ;;  %10484 = vmatprep.mubr.msk.f32.mxu0 %vm388_vm1, %v8401_v18  ;;  %v1864_v45 = vadd.f32 %v1863_v16, %v1833_v35  ;;  %v13194_v39 = vpop.f32.mrb[18].mxu1  ;;  %v1718_v26 = vpop.f32.mrb[19].mxu0  ;;  %v13210_v10 = vld [vmem:[%s11692_s29 + $0x1a1] sm:$0xff]  ;;  %v8762_v33 = vld [vmem:[%s11692_s29 + $0x32] sm:$0xff] }
 0x22f   : > { %v1940_v47 = vadd.f32 %v1939_v31, %v1909_v49  ;;  %v9067_v5 = vpack.c.bf16 %v1910_v32, %v1909_v49  ;;  %v1912_v36 = vadd.f32 %v10118_v62, %v13058_v21  ;;  %10684 = vmatprep.mubr.msk.f32.mxu1 %vm388_vm1, %v13178_v4  ;;  %v3636_v20 = vmul.f32 %v10315_v23, %v10315_v23  ;;  %v3520_v24 = vpop.f32.mrb[19].mxu1  ;;  %v8440_v31 = vld [vmem:[%s11692_s29 + $0x49] sm:$0xff] }
 0x230   : > { %v3666_v25 = vadd.f32 %v3665_v0, %v3635_v13  ;;  %v3736_v8 = vadd.f32 %v3735_v37, %v3705_v22  ;;  %v9147_v50 = vpack.c.bf16 %v3706_v6, %v3705_v22  ;;  %10485 = vmatmul.mubr.msk.f32.gmra.mrb[60].mxu0 %vm388_vm1, %v8402_v59  ;;  %v3708_v56 = vadd.f32 %v10318_v51, %v13058_v21  ;;  %v8764_v37 = vld [vmem:[%s11692_s29 + $0x4a] sm:$0xff] }
 0x231   : > { %9355 = vst [vmem:[%s13079_s28 + $0x38] sm:$0xff] %v9067_v5   ;;  %v1835_v7 = vmul.f32 %v1708_v63, %v1708_v63  ;;  %v1865_v38 = vadd.f32 %v1864_v45, %v1834_v61  ;;  %v1911_v2 = vadd.f32 %v13058_v21, %v1708_v63  ;;  %10685 = vmatmul.mubr.msk.f32.gmra.mrb[60].mxu1 %vm388_vm1, %v13188_v57  ;;  %v10124_v23 = vpop.f32.mrb[20].mxu0 }
 0x232   : > { %9371 = vst [vmem:[%s13079_s28 + $0xb8] sm:$0xff] %v9147_v50   ;;  %v1941_v41 = vadd.f32 %v1940_v47, %v1910_v32  ;;  %v3637_v1 = vmul.f32 %v3510_v34, %v3510_v34  ;;  %v3667_v19 = vadd.f32 %v3666_v25, %v3636_v20  ;;  %v3707_v27 = vadd.f32 %v13058_v21, %v3510_v34  ;;  %v13216_v42 = vpop.f32.mrb[20].mxu1  ;;  %v1728_v14 = vpop.f32.mrb[21].mxu0  ;;  %v8439_v32 = vld [vmem:[%s11692_s29 + $0x39] sm:$0xff] }
 0x233   : > { %10487 = vmatprep.mubr.msk.f32.mxu0 %vm388_vm1, %v8403_v53  ;;  %v1836_v40 = vmul.f32 %v10118_v62, %v10118_v62  ;;  %v1866_v29 = vadd.f32 %v1865_v38, %v1835_v7  ;;  %v9072_v9 = vpack.c.bf16 %v1912_v36, %v1911_v2  ;;  %v3737_v11 = vadd.f32 %v3736_v8, %v3706_v6  ;;  %v3530_v60 = vpop.f32.mrb[21].mxu1  ;;  %v8763_v6 = vld [vmem:[%s11692_s29 + $0x3a] sm:$0xff]  ;;  %v8441_v53 = vld [vmem:[%s11692_s29 + $0x51] sm:$0xff] }
 0x234   : > { %10687 = vmatprep.mubr.msk.f32.mxu1 %vm388_vm1, %v13198_v54  ;;  %v1942_v43 = vadd.f32 %v1941_v41, %v1911_v2  ;;  %v3668_v28 = vadd.f32 %v3667_v19, %v3637_v1  ;;  %v9152_v15 = vpack.c.bf16 %v3708_v56, %v3707_v27  ;;  %v1914_v52 = vadd.f32 %v10121_v48, %v13058_v21 }
 0x235   : > { %10488 = vmatmul.mubr.msk.f32.gmra.mrb[62].mxu0 %vm388_vm1, %v8404_v30  ;;  %v3638_v55 = vmul.f32 %v10318_v51, %v10318_v51  ;;  %9356 = vst [vmem:[%s13079_s28 + $0x40] sm:$0xff] %v9072_v9   ;;  %v3738_v12 = vadd.f32 %v3737_v11, %v3707_v27  ;;  %v3710_v46 = vadd.f32 %v13194_v39, %v13058_v21  ;;  %v10127_v49 = vpop.f32.mrb[22].mxu0 }
 0x236   : > { %v1837_v58 = vmul.f32 %v1718_v26, %v1718_v26  ;;  %10688 = vmatmul.mubr.msk.f32.gmra.mrb[62].mxu1 %vm388_vm1, %v13210_v10  ;;  %9372 = vst [vmem:[%s13079_s28 + $0xc0] sm:$0xff] %v9152_v15   ;;  %v1867_v62 = vadd.f32 %v1866_v29, %v1836_v40  ;;  %v1913_v18 = vadd.f32 %v13058_v21, %v1718_v26  ;;  %v13234_v0 = vpop.f32.mrb[22].mxu1  ;;  %v1738_v22 = vpop.f32.mrb[23].mxu0  ;;  %v8765_v26 = vld [vmem:[%s11692_s29 + $0x52] sm:$0xff]  ;;  %v8766_v29 = vld [vmem:[%s11692_s29 + $0x62] sm:$0xff] }
 0x237   : > { %v1943_v44 = vadd.f32 %v1942_v43, %v1912_v36  ;;  %v3639_v3 = vmul.f32 %v3520_v24, %v3520_v24  ;;  %10492 = vmatprep.mubr.msk.f32.mxu0 %vm388_vm1, %v8438_v17  ;;  %v1838_v35 = vmul.f32 %v10121_v48, %v10121_v48  ;;  %v3669_v51 = vadd.f32 %v3668_v28, %v3638_v55  ;;  %v3540_v48 = vpop.f32.mrb[23].mxu1  ;;  %v8767_v55 = vld [vmem:[%s11692_s29 + $0x6a] sm:$0xff] }
 0x238   : > { %v3709_v63 = vadd.f32 %v13058_v21, %v3520_v24  ;;  %v3739_v16 = vadd.f32 %v3738_v12, %v3708_v56  ;;  %10692 = vmatprep.mubr.msk.f32.mxu1 %vm388_vm1, %v8762_v33  ;;  %v1868_v13 = vadd.f32 %v1867_v62, %v1837_v58  ;;  %v9077_v59 = vpack.c.bf16 %v1914_v52, %v1913_v18  ;;  %v8442_v24 = vld [vmem:[%s11692_s29 + $0x61] sm:$0xff] }
 0x239   : > { %v1944_v34 = vadd.f32 %v1943_v44, %v1913_v18  ;;  %v1916_v61 = vadd.f32 %v10124_v23, %v13058_v21  ;;  %10493 = vmatmul.mubr.msk.f32.vlgmr.msra.gmra.mrb[32].mxu0 %vm388_vm1, %v8439_v32  ;;  %v3640_v45 = vmul.f32 %v13194_v39, %v13194_v39  ;;  %v3670_v47 = vadd.f32 %v3669_v51, %v3639_v3  ;;  %v13250_v2 = vpop.f32.mrb[24].mxu0  ;;  %v8768_v51 = vld [vmem:[%s11692_s29 + $0x7a] sm:$0xff] }
 0x23a   : > { %v3740_v5 = vadd.f32 %v3739_v16, %v3709_v63  ;;  %v9157_v36 = vpack.c.bf16 %v3710_v46, %v3709_v63  ;;  %10693 = vmatmul.mubr.msk.f32.vlgmr.msra.gmra.mrb[32].mxu1 %vm388_vm1, %v8763_v6  ;;  %9357 = vst [vmem:[%s13079_s28 + $0x48] sm:$0xff] %v9077_v59   ;;  %v3712_v20 = vadd.f32 %v13216_v42, %v13058_v21  ;;  %v13254_v27 = vpop.f32.mrb[24].mxu1  ;;  %v1748_v40 = vpop.f32.mrb[25].mxu0 }
 0x23b   : > { %v1839_v25 = vmul.f32 %v1728_v14, %v1728_v14  ;;  %v1869_v8 = vadd.f32 %v1868_v13, %v1838_v35  ;;  %v1915_v50 = vadd.f32 %v13058_v21, %v1728_v14  ;;  %10495 = vmatprep.mubr.msk.f32.mxu0 %vm388_vm1, %v8440_v31  ;;  %v1945_v39 = vadd.f32 %v1944_v34, %v1914_v52  ;;  %v3550_v28 = vpop.f32.mrb[25].mxu1 }
 0x23c   : > { %9373 = vst [vmem:[%s13079_s28 + $0xc8] sm:$0xff] %v9157_v36   ;;  %v3641_v56 = vmul.f32 %v3530_v60, %v3530_v60  ;;  %v3671_v7 = vadd.f32 %v3670_v47, %v3640_v45  ;;  %v3711_v38 = vadd.f32 %v13058_v21, %v3530_v60  ;;  %10695 = vmatprep.mubr.msk.f32.mxu1 %vm388_vm1, %v8764_v37  ;;  %v8769_v45 = vld [vmem:[%s11692_s29 + $0x82] sm:$0xff] }
 0x23d   : > { %v1840_v30 = vmul.f32 %v10124_v23, %v10124_v23  ;;  %v1870_v41 = vadd.f32 %v1869_v8, %v1839_v25  ;;  %v9082_v1 = vpack.c.bf16 %v1916_v61, %v1915_v50  ;;  %v3741_v19 = vadd.f32 %v3740_v5, %v3710_v46  ;;  %10496 = vmatmul.mubr.msk.f32.gmra.mrb[34].mxu0 %vm388_vm1, %v8441_v53  ;;  %v8443_v23 = vld [vmem:[%s11692_s29 + $0x69] sm:$0xff]  ;;  %v13270_v32 = vpop.f32.mrb[26].mxu0 }
 0x23e   : > { %v1946_v9 = vadd.f32 %v1945_v39, %v1915_v50  ;;  %v3672_v11 = vadd.f32 %v3671_v7, %v3641_v56  ;;  %v9162_v17 = vpack.c.bf16 %v3712_v20, %v3711_v38  ;;  %v1918_v43 = vadd.f32 %v10127_v49, %v13058_v21  ;;  %10696 = vmatmul.mubr.msk.f32.gmra.mrb[34].mxu1 %vm388_vm1, %v8765_v26  ;;  %v13275_v6 = vpop.f32.mrb[26].mxu1  ;;  %v1758_v35 = vpop.f32.mrb[27].mxu0  ;;  %v8770_v56 = vld [vmem:[%s11692_s29 + $0x92] sm:$0xff] }
 0x23f   : > { %v3642_v15 = vmul.f32 %v13216_v42, %v13216_v42  ;;  %9358 = vst [vmem:[%s13079_s28 + $0x50] sm:$0xff] %v9082_v1   ;;  %v3742_v52 = vadd.f32 %v3741_v19, %v3711_v38  ;;  %v3714_v14 = vadd.f32 %v13234_v0, %v13058_v21  ;;  %v1841_v33 = vmul.f32 %v1738_v22, %v1738_v22  ;;  %v8444_v42 = vld [vmem:[%s11692_s29 + $0x79] sm:$0xff]  ;;  %v3560_v34 = vpop.f32.mrb[27].mxu1 }
 0x240   : > { %10498 = vmatprep.mubr.msk.f32.mxu0 %vm388_vm1, %v8442_v24  ;;  %9374 = vst [vmem:[%s13079_s28 + $0xd0] sm:$0xff] %v9162_v17   ;;  %v1871_v12 = vadd.f32 %v1870_v41, %v1840_v30  ;;  %v1917_v46 = vadd.f32 %v13058_v21, %v1738_v22  ;;  %v1947_v58 = vadd.f32 %v1946_v9, %v1916_v61  ;;  %v8447_v1 = vld [vmem:[%s11692_s29 + $0x99] sm:$0xff] }
 0x241   : > { %v3643_v60 = vmul.f32 %v3540_v48, %v3540_v48  ;;  %10698 = vmatprep.mubr.msk.f32.mxu1 %vm388_vm1, %v8766_v29  ;;  %v1842_v62 = vmul.f32 %v10127_v49, %v10127_v49  ;;  %v3673_v18 = vadd.f32 %v3672_v11, %v3642_v15  ;;  %v3713_v44 = vadd.f32 %v13058_v21, %v3540_v48  ;;  %v8445_v49 = vld [vmem:[%s11692_s29 + $0x81] sm:$0xff]  ;;  %v13291_v53 = vpop.f32.mrb[28].mxu0  ;;  %v8448_v15 = vld [vmem:[%s11692_s29 + $0xa9] sm:$0xff] }
 0x242   : > { %v3743_v3 = vadd.f32 %v3742_v52, %v3712_v20  ;;  %10499 = vmatmul.mubr.msk.f32.gmra.mrb[36].mxu0 %vm388_vm1, %v8443_v23  ;;  %v1872_v63 = vadd.f32 %v1871_v12, %v1841_v33  ;;  %v1948_v16 = vadd.f32 %v1947_v58, %v1917_v46  ;;  %v9087_v31 = vpack.c.bf16 %v1918_v43, %v1917_v46  ;;  %v13297_v26 = vpop.f32.mrb[28].mxu1  ;;  %v1768_v39 = vpop.f32.mrb[29].mxu0  ;;  %v8771_v11 = vld [vmem:[%s11692_s29 + $0x9a] sm:$0xff]  ;;  %v8772_v46 = vld [vmem:[%s11692_s29 + $0xaa] sm:$0xff] }
 0x243   : > { %v1920_v13 = vadd.f32 %v13250_v2, %v13058_v21  ;;  %10699 = vmatmul.mubr.msk.f32.gmra.mrb[36].mxu1 %vm388_vm1, %v8767_v55  ;;  %v3644_v59 = vmul.f32 %v13234_v0, %v13234_v0  ;;  %v3674_v61 = vadd.f32 %v3673_v18, %v3643_v60  ;;  %v9167_v37 = vpack.c.bf16 %v3714_v14, %v3713_v44  ;;  %v8446_v0 = vld [vmem:[%s11692_s29 + $0x91] sm:$0xff]  ;;  %v3570_v41 = vpop.f32.mrb[29].mxu1 }
 0x244   : > { %v3744_v22 = vadd.f32 %v3743_v3, %v3713_v44  ;;  %10501 = vmatprep.mubr.msk.f32.mxu0 %vm388_vm1, %v8444_v42  ;;  %9359 = vst [vmem:[%s13079_s28 + $0x58] sm:$0xff] %v9087_v31   ;;  %v3716_v47 = vadd.f32 %v13254_v27, %v13058_v21  ;;  %v1843_v5 = vmul.f32 %v1748_v40, %v1748_v40  ;;  %v8449_v44 = vld [vmem:[%s11692_s29 + $0xb1] sm:$0xff] }
 0x245   : > { %v1873_v36 = vadd.f32 %v1872_v63, %v1842_v62  ;;  %v1919_v48 = vadd.f32 %v13058_v21, %v1748_v40  ;;  %10701 = vmatprep.mubr.msk.f32.mxu1 %vm388_vm1, %v8768_v51  ;;  %9375 = vst [vmem:[%s13079_s28 + $0xd8] sm:$0xff] %v9167_v37   ;;  %v1949_v20 = vadd.f32 %v1948_v16, %v1918_v43  ;;  %v13314_v23 = vpop.f32.mrb[30].mxu0 }
 0x246   : > { %v3645_v25 = vmul.f32 %v3550_v28, %v3550_v28  ;;  %v3675_v8 = vadd.f32 %v3674_v61, %v3644_v59  ;;  %v3715_v50 = vadd.f32 %v13058_v21, %v3550_v28  ;;  %10502 = vmatmul.mubr.msk.f32.gmra.mrb[38].mxu0 %vm388_vm1, %v8445_v49  ;;  %v1844_v7 = vmul.f32 %v13250_v2, %v13250_v2  ;;  %v1778_v12 = vpop.f32.mrb[31].mxu0  ;;  %v8450_v49 = vld [vmem:[%s11692_s29 + $0xc1] sm:$0xff] }
 0x247   : > { %v1874_v38 = vadd.f32 %v1873_v36, %v1843_v5  ;;  %v9092_v24 = vpack.c.bf16 %v1920_v13, %v1919_v48  ;;  %v3745_v30 = vadd.f32 %v3744_v22, %v3714_v14  ;;  %10702 = vmatmul.mubr.msk.f32.gmra.mrb[38].mxu1 %vm388_vm1, %v8769_v45  ;;  %v1950_v19 = vadd.f32 %v1949_v20, %v1919_v48  ;;  %v8774_v45 = vld [vmem:[%s11692_s29 + $0xc2] sm:$0xff] }
 0x248   : > { %v3676_v40 = vadd.f32 %v3675_v8, %v3645_v25  ;;  %v9172_v29 = vpack.c.bf16 %v3716_v47, %v3715_v50  ;;  %v1922_v9 = vadd.f32 %v13270_v32, %v13058_v21  ;;  %10504 = vmatprep.mubr.msk.f32.mxu0 %vm388_vm1, %v8446_v0  ;;  %v3646_v2 = vmul.f32 %v13254_v27, %v13254_v27  ;;  %v13320_v27 = vpop.f32.mrb[30].mxu1  ;;  %v8451_v48 = vld [vmem:[%s11692_s29 + $0xc9] sm:$0xff] }
 0x249   : > { %9360 = vst [vmem:[%s13079_s28 + $0x60] sm:$0xff] %v9092_v24   ;;  %v3746_v17 = vadd.f32 %v3745_v30, %v3715_v50  ;;  %v3718_v43 = vadd.f32 %v13275_v6, %v13058_v21  ;;  %v1845_v28 = vmul.f32 %v1758_v35, %v1758_v35  ;;  %10704 = vmatprep.mubr.msk.f32.mxu1 %vm388_vm1, %v8770_v56  ;;  %v3580_v18 = vpop.f32.mrb[31].mxu1  ;;  %v8775_v50 = vld [vmem:[%s11692_s29 + $0xca] sm:$0xff]  ;;  %v8452_v24 = vld [vmem:[%s11692_s29 + $0xd9] sm:$0xff] }
 0x24a   : > { %9376 = vst [vmem:[%s13079_s28 + $0xe0] sm:$0xff] %v9172_v29   ;;  %v1875_v52 = vadd.f32 %v1874_v38, %v1844_v7  ;;  %v1921_v14 = vadd.f32 %v13058_v21, %v1758_v35  ;;  %v1951_v33 = vadd.f32 %v1950_v19, %v1920_v13  ;;  %v3647_v55 = vmul.f32 %v3560_v34, %v3560_v34  ;;  %v8776_v30 = vld [vmem:[%s11692_s29 + $0xda] sm:$0xff] }
 0x24b   : > { %10505 = vmatmul.mubr.msk.f32.gmra.mrb[40].mxu0 %vm388_vm1, %v8447_v1  ;;  %v1846_v58 = vmul.f32 %v13270_v32, %v13270_v32  ;;  %v3677_v60 = vadd.f32 %v3676_v40, %v3646_v2  ;;  %v3717_v42 = vadd.f32 %v13058_v21, %v3560_v34  ;;  %v3747_v62 = vadd.f32 %v3746_v17, %v3716_v47  ;;  %v8773_v32 = vld [vmem:[%s11692_s29 + $0xb2] sm:$0xff] }
 0x24c   : > { %10705 = vmatmul.mubr.msk.f32.gmra.mrb[40].mxu1 %vm388_vm1, %v8771_v11  ;;  %v1876_v3 = vadd.f32 %v1875_v52, %v1845_v28  ;;  %v1952_v35 = vadd.f32 %v1951_v33, %v1921_v14  ;;  %v9097_v51 = vpack.c.bf16 %v1922_v9, %v1921_v14  ;;  %v1924_v63 = vadd.f32 %v13291_v53, %v13058_v21  ;;  %v8777_v28 = vld [vmem:[%s11692_s29 + $0xe2] sm:$0xff] }
 0x24d   : > { %10507 = vmatprep.mubr.msk.f32.mxu0 %vm388_vm1, %v8448_v15  ;;  %v3648_v16 = vmul.f32 %v13275_v6, %v13275_v6  ;;  %v3678_v31 = vadd.f32 %v3677_v60, %v3647_v55  ;;  %v3748_v13 = vadd.f32 %v3747_v62, %v3717_v42  ;;  %v9177_v34 = vpack.c.bf16 %v3718_v43, %v3717_v42  ;;  %v8454_v15 = vld [vmem:[%s11692_s29 + $0xf1] sm:$0xff] }
 0x24e   : > { %10707 = vmatprep.mubr.msk.f32.mxu1 %vm388_vm1, %v8772_v46  ;;  %9361 = vst [vmem:[%s13079_s28 + $0x68] sm:$0xff] %v9097_v51   ;;  %v3720_v59 = vadd.f32 %v13297_v26, %v13058_v21  ;;  %v1847_v61 = vmul.f32 %v1768_v39, %v1768_v39  ;;  %v1877_v22 = vadd.f32 %v1876_v3, %v1846_v58  ;;  %v8456_v3 = vld [vmem:[%s11692_s29 + $0x109] sm:$0xff] }
 0x24f   : > { %v1923_v37 = vadd.f32 %v13058_v21, %v1768_v39  ;;  %10508 = vmatmul.mubr.msk.f32.gmra.mrb[42].mxu0 %vm388_vm1, %v8449_v44  ;;  %9377 = vst [vmem:[%s13079_s28 + $0xe8] sm:$0xff] %v9177_v34   ;;  %v1953_v6 = vadd.f32 %v1952_v35, %v1922_v9  ;;  %v3649_v47 = vmul.f32 %v3570_v41, %v3570_v41  ;;  %v8457_v34 = vld [vmem:[%s11692_s29 + $0x111] sm:$0xff] }
 0x250   : > { %v3679_v5 = vadd.f32 %v3678_v31, %v3648_v16  ;;  %v3719_v36 = vadd.f32 %v13058_v21, %v3570_v41  ;;  %10708 = vmatmul.mubr.msk.f32.gmra.mrb[42].mxu1 %vm388_vm1, %v8773_v32  ;;  %v1848_v0 = vmul.f32 %v13291_v53, %v13291_v53  ;;  %v1878_v20 = vadd.f32 %v1877_v22, %v1847_v61  ;;  %v8781_v61 = vld [vmem:[%s11692_s29 + $0x112] sm:$0xff]  ;;  %v8458_v22 = vld [vmem:[%s11692_s29 + $0x121] sm:$0xff] }
 0x251   : > { %v9102_v25 = vpack.c.bf16 %v1924_v63, %v1923_v37  ;;  %v3749_v8 = vadd.f32 %v3748_v13, %v3718_v43  ;;  %10510 = vmatprep.mubr.msk.f32.mxu0 %vm388_vm1, %v8450_v49  ;;  %v1954_v39 = vadd.f32 %v1953_v6, %v1923_v37  ;;  %v1926_v38 = vadd.f32 %v13314_v23, %v13058_v21  ;;  %v8782_v6 = vld [vmem:[%s11692_s29 + $0x122] sm:$0xff] }
 0x252   : > { %v3680_v56 = vadd.f32 %v3679_v5, %v3649_v47  ;;  %v9182_v7 = vpack.c.bf16 %v3720_v59, %v3719_v36  ;;  %10710 = vmatprep.mubr.msk.f32.mxu1 %vm388_vm1, %v8774_v45  ;;  %v3650_v53 = vmul.f32 %v13297_v26, %v13297_v26  ;;  %v3722_v1 = vadd.f32 %v13320_v27, %v13058_v21  ;;  %v8453_v26 = vld [vmem:[%s11692_s29 + $0xe1] sm:$0xff] }
 0x253   : > { %9362 = vst [vmem:[%s13079_s28 + $0x70] sm:$0xff] %v9102_v25   ;;  %v3750_v41 = vadd.f32 %v3749_v8, %v3719_v36  ;;  %v1849_v19 = vmul.f32 %v1778_v12, %v1778_v12  ;;  %10511 = vmatmul.mubr.msk.f32.gmra.mrb[44].mxu0 %vm388_vm1, %v8451_v48  ;;  %v1879_v40 = vadd.f32 %v1878_v20, %v1848_v0  ;;  %v8459_v0 = vld [vmem:[%s11692_s29 + $0x129] sm:$0xff] }
 0x254   : > { %9378 = vst [vmem:[%s13079_s28 + $0xf0] sm:$0xff] %v9182_v7   ;;  %v1925_v29 = vadd.f32 %v13058_v21, %v1778_v12  ;;  %v1955_v9 = vadd.f32 %v1954_v39, %v1924_v63  ;;  %v3651_v11 = vmul.f32 %v3580_v18, %v3580_v18  ;;  %10711 = vmatmul.mubr.msk.f32.gmra.mrb[44].mxu1 %vm388_vm1, %v8775_v50  ;;  %v8778_v12 = vld [vmem:[%s11692_s29 + $0xf2] sm:$0xff]  ;;  %v8780_v63 = vld [vmem:[%s11692_s29 + $0x10a] sm:$0xff]  ;;  %v8784_v7 = vld [vmem:[%s11692_s29 + $0x13a] sm:$0xff] }
 0x255   : > { %v3681_v2 = vadd.f32 %v3680_v56, %v3650_v53  ;;  %v3721_v17 = vadd.f32 %v13058_v21, %v3580_v18  ;;  %v3751_v43 = vadd.f32 %v3750_v41, %v3720_v59  ;;  %10513 = vmatprep.mubr.msk.f32.mxu0 %vm388_vm1, %v8452_v24  ;;  %10713 = vmatprep.mubr.msk.f32.mxu1 %vm388_vm1, %v8776_v30  ;;  %v8783_v8 = vld [vmem:[%s11692_s29 + $0x12a] sm:$0xff]  ;;  %v8460_v50 = vld [vmem:[%s11692_s29 + $0x139] sm:$0xff]  ;;  %v8461_v41 = vld [vmem:[%s11692_s29 + $0x141] sm:$0xff] }
 0x256   : > { %v1850_v52 = vmul.f32 %v13314_v23, %v13314_v23  ;;  %v1880_v14 = vadd.f32 %v1879_v40, %v1849_v19  ;;  %v1956_v33 = vadd.f32 %v1955_v9, %v1925_v29  ;;  %v9107_v55 = vpack.c.bf16 %v1926_v38, %v1925_v29  ;;  %v8455_v23 = vld [vmem:[%s11692_s29 + $0xf9] sm:$0xff]  ;;  %v8785_v40 = vld [vmem:[%s11692_s29 + $0x142] sm:$0xff]  ;;  %v8462_v29 = vld [vmem:[%s11692_s29 + $0x151] sm:$0xff] }
 0x257   : > { %v3652_v21 = vmul.f32 %v13320_v27, %v13320_v27  ;;  %v3682_v46 = vadd.f32 %v3681_v2, %v3651_v11  ;;  %v3752_v58 = vadd.f32 %v3751_v43, %v3721_v17  ;;  %v9187_v60 = vpack.c.bf16 %v3722_v1, %v3721_v17  ;;  %10514 = vmatmul.mubr.msk.f32.gmra.mrb[46].mxu0 %vm388_vm1, %v8453_v26  ;;  %v8779_v27 = vld [vmem:[%s11692_s29 + $0xfa] sm:$0xff]  ;;  %v8786_v9 = vld [vmem:[%s11692_s29 + $0x152] sm:$0xff]  ;;  %v8464_v43 = vld [vmem:[%s11692_s29 + $0x169] sm:$0xff] }
 0x258   : > { %v1881_v42 = vadd.f32 %v1880_v14, %v1850_v52  ;;  %v1957_v62 = vadd.f32 %v1956_v33, %v1926_v38  ;;  %9363 = vst [vmem:[%s13079_s28 + $0x78] sm:$0xff] %v9107_v55   ;;  %10714 = vmatmul.mubr.msk.f32.gmra.mrb[46].mxu1 %vm388_vm1, %v8777_v28  ;;  %10516 = vmatprep.mubr.msk.f32.mxu0 %vm388_vm1, %v8454_v15  ;;  %v8463_v2 = vld [vmem:[%s11692_s29 + $0x159] sm:$0xff]  ;;  %v8788_v28 = vld [vmem:[%s11692_s29 + $0x16a] sm:$0xff]  ;;  %v8790_v14 = vld [vmem:[%s11692_s29 + $0x182] sm:$0xff] }
 0x259   : > { %v3683_v18 = vadd.f32 %v3682_v46, %v3652_v21  ;;  %v3753_v44 = vadd.f32 %v3752_v58, %v3722_v1  ;;  %9379 = vst [vmem:[%s13079_s28 + $0xf8] sm:$0xff] %v9187_v60   ;;  %10716 = vmatprep.mubr.msk.f32.mxu1 %vm388_vm1, %v8778_v12  ;;  %v8787_v17 = vld [vmem:[%s11692_s29 + $0x15a] sm:$0xff]  ;;  %v8465_v15 = vld [vmem:[%s11692_s29 + $0x171] sm:$0xff]  ;;  %v8793_v12 = vld [vmem:[%s11692_s29 + $0x1a2] sm:$0xff] }
 0x25a   : > { %v1882_v35 = vrot.slane %v1881_v42, 4  ;;  %v1958_v51 = vrot.slane %v1957_v62, 4  ;;  %v8789_v52 = vld [vmem:[%s11692_s29 + $0x172] sm:$0xff]  ;;  %v8791_v33 = vld [vmem:[%s11692_s29 + $0x18a] sm:$0xff]  ;;  %v8792_v55 = vld [vmem:[%s11692_s29 + $0x19a] sm:$0xff] }
 0x25b   : > { %v3684_v32 = vrot.slane %v3683_v18, 4  ;;  %v3754_v16 = vrot.slane %v3753_v44, 4  ;;  %10517 = vmatmul.mubr.msk.f32.gmra.mrb[48].mxu0 %vm388_vm1, %v8455_v23  ;;  %v13446_v46 = vld [vmem:[#allocation7] ss:$0 sm:$0xff] }
 0x25c   : > { %v1883_v31 = vadd.f32 %v1882_v35, %v1881_v42  ;;  %v1959_v13 = vadd.f32 %v1958_v51, %v1957_v62  ;;  %10717 = vmatmul.mubr.msk.f32.gmra.mrb[48].mxu1 %vm388_vm1, %v8779_v27  ;;  %10519 = vmatprep.mubr.msk.f32.mxu0 %vm388_vm1, %v8456_v3 }
 0x25d   : > { %v3685_v49 = vadd.f32 %v3684_v32, %v3683_v18  ;;  %v3755_v59 = vadd.f32 %v3754_v16, %v3753_v44  ;;  %10719 = vmatprep.mubr.msk.f32.mxu1 %vm388_vm1, %v8780_v63 }
 0x25e   : > { %v1884_v37 = vrot.slane %v1883_v31, 2  ;;  %v1960_v45 = vrot.slane %v1959_v13, 2 }
 0x25f   : > { %v3686_v47 = vrot.slane %v3685_v49, 2  ;;  %v3756_v5 = vrot.slane %v3755_v59, 2  ;;  %10520 = vmatmul.mubr.msk.f32.gmra.mrb[50].mxu0 %vm388_vm1, %v8457_v34 }
 0x260   : > { %v1885_v36 = vadd.f32 %v1884_v37, %v1883_v31  ;;  %v1961_v48 = vadd.f32 %v1960_v45, %v1959_v13  ;;  %10720 = vmatmul.mubr.msk.f32.gmra.mrb[50].mxu1 %vm388_vm1, %v8781_v61  ;;  %10522 = vmatprep.mubr.msk.f32.mxu0 %vm388_vm1, %v8458_v22 }
 0x261   : > { %v3687_v20 = vadd.f32 %v3686_v47, %v3685_v49  ;;  %v3757_v25 = vadd.f32 %v3756_v5, %v3755_v59  ;;  %10722 = vmatprep.mubr.msk.f32.mxu1 %vm388_vm1, %v8782_v6 }
 0x262   : > { %v1886_v39 = vrot.slane %v1885_v36, 1  ;;  %v1962_v56 = vrot.slane %v1961_v48, 1 }
 0x263   : > { %v3688_v38 = vrot.slane %v3687_v20, 1  ;;  %v3758_v24 = vrot.slane %v3757_v25, 1  ;;  %10523 = vmatmul.mubr.msk.f32.gmra.mrb[52].mxu0 %vm388_vm1, %v8459_v0 }
 0x264   : > { %v1887_v30 = vadd.f32 %v1886_v39, %v1885_v36  ;;  %v1963_v53 = vadd.f32 %v1962_v56, %v1961_v48  ;;  %10723 = vmatmul.mubr.msk.f32.gmra.mrb[52].mxu1 %vm388_vm1, %v8783_v8  ;;  %10525 = vmatprep.mubr.msk.f32.mxu0 %vm388_vm1, %v8460_v50 }
 0x265   : > { %v3689_v1 = vadd.f32 %v3688_v38, %v3687_v20  ;;  %v3759_v19 = vadd.f32 %v3758_v24, %v3757_v25  ;;  %10725 = vmatprep.mubr.msk.f32.mxu1 %vm388_vm1, %v8784_v7 }
 0x267   : > { %v13410_v11 = vadd.f32 %v3689_v1, %v1887_v30  ;;  %v13412_v26 = vadd.f32 %v3759_v19, %v1963_v53  ;;  %10526 = vmatmul.mubr.msk.f32.gmra.mrb[54].mxu0 %vm388_vm1, %v8461_v41 }
 0x268   : > { %10726 = vmatmul.mubr.msk.f32.gmra.mrb[54].mxu1 %vm388_vm1, %v8785_v40  ;;  %10528 = vmatprep.mubr.msk.f32.mxu0 %vm388_vm1, %v8462_v29 }
 0x269   : > { %10728 = vmatprep.mubr.msk.f32.mxu1 %vm388_vm1, %v8786_v9 }
 0x26b   : > { %10529 = vmatmul.mubr.msk.f32.gmra.mrb[56].mxu0 %vm388_vm1, %v8463_v2 }
 0x26c   : > { %10729 = vmatmul.mubr.msk.f32.gmra.mrb[56].mxu1 %vm388_vm1, %v8787_v17  ;;  %10531 = vmatprep.mubr.msk.f32.mxu0 %vm388_vm1, %v8464_v43 }
 0x26d   : > { %10731 = vmatprep.mubr.msk.f32.mxu1 %vm388_vm1, %v8788_v28 }
 0x26f   : > { %10532 = vmatmul.mubr.msk.f32.gmra.mrb[58].mxu0 %vm388_vm1, %v8465_v15 }
 0x270   : > { %10732 = vmatmul.mubr.msk.f32.gmra.mrb[58].mxu1 %vm388_vm1, %v8789_v52  ;;  %10534 = vmatprep.mubr.msk.f32.mxu0 %vm388_vm1, %v13178_v4 }
 0x271   : > { %10734 = vmatprep.mubr.msk.f32.mxu1 %vm388_vm1, %v8790_v14 }
 0x273   : > { %10535 = vmatmul.mubr.msk.f32.gmra.mrb[60].mxu0 %vm388_vm1, %v13188_v57 }
 0x274   : > { %10735 = vmatmul.mubr.msk.f32.gmra.mrb[60].mxu1 %vm388_vm1, %v8791_v33  ;;  %10537 = vmatprep.mubr.msk.f32.mxu0 %vm388_vm1, %v13198_v54 }
 0x275   : > { %10737 = vmatprep.mubr.msk.f32.mxu1 %vm388_vm1, %v8792_v55 }
 0x277   : > { %10538 = vmatmul.mubr.msk.f32.gmra.mrb[62].mxu0 %vm388_vm1, %v13210_v10 }
 0x278   : > { %10738 = vmatmul.mubr.msk.f32.gmra.mrb[62].mxu1 %vm388_vm1, %v8793_v12 }
 0x30c   : > { %v10494_v4 = vpop.f32.mrb[32].mxu0 }
 0x30d   : > { %v5420_v21 = vmul.f32 %v10494_v4, %v10494_v4  ;;  %v5490_v58 = vadd.f32 %v13446_v46, %v10494_v4  ;;  %v10694_v57 = vpop.f32.mrb[32].mxu1  ;;  %v5228_v60 = vpop.f32.mrb[33].mxu0 }
 0x30e   : > { %v7217_v42 = vmul.f32 %v10694_v57, %v10694_v57  ;;  %v7287_v54 = vadd.f32 %v13446_v46, %v10694_v57  ;;  %v5419_v62 = vmul.f32 %v5228_v60, %v5228_v60  ;;  %v5489_v23 = vadd.f32 %v13446_v46, %v5228_v60  ;;  %v7025_v18 = vpop.f32.mrb[33].mxu1 }
 0x30f   : > { %v7216_v44 = vmul.f32 %v7025_v18, %v7025_v18  ;;  %v7286_v10 = vadd.f32 %v13446_v46, %v7025_v18 }
 0x310   : > { %v5451_v27 = vadd.f32 %v5420_v21, %v5419_v62  ;;  %v5521_v3 = vadd.f32 %v5490_v58, %v5489_v23  ;;  %v9192_v35 = vpack.c.bf16 %v5490_v58, %v5489_v23  ;;  %v10497_v51 = vpop.f32.mrb[34].mxu0 }
 0x311   : > { %v7248_v63 = vadd.f32 %v7217_v42, %v7216_v44  ;;  %v7318_v32 = vadd.f32 %v7287_v54, %v7286_v10  ;;  %v9272_v16 = vpack.c.bf16 %v7287_v54, %v7286_v10  ;;  %v10697_v31 = vpop.f32.mrb[34].mxu1  ;;  %v5238_v13 = vpop.f32.mrb[35].mxu0  ;;  %v5492_v34 = vadd.f32 %v13446_v46, %v10497_v51 }
 0x312   : > { %9380 = vst [vmem:[%s13079_s28 + $0x100] sm:$0xff] %v9192_v35   ;;  %v7289_v49 = vadd.f32 %v13446_v46, %v10697_v31  ;;  %v5421_v59 = vmul.f32 %v5238_v13, %v5238_v13  ;;  %v7035_v61 = vpop.f32.mrb[35].mxu1  ;;  %v5491_v22 = vadd.f32 %v13446_v46, %v5238_v13  ;;  %v5422_v6 = vmul.f32 %v10497_v51, %v10497_v51 }
 0x313   : > { %9396 = vst [vmem:[%s13079_s28 + $0x180] sm:$0xff] %v9272_v16   ;;  %v7218_v37 = vmul.f32 %v7035_v61, %v7035_v61  ;;  %v7288_v45 = vadd.f32 %v13446_v46, %v7035_v61  ;;  %v7219_v50 = vmul.f32 %v10697_v31, %v10697_v31 }
 0x314   : > { %v5452_v47 = vadd.f32 %v5451_v27, %v5421_v59  ;;  %v5522_v36 = vadd.f32 %v5521_v3, %v5491_v22  ;;  %v9197_v48 = vpack.c.bf16 %v5492_v34, %v5491_v22 }
 0x315   : > { %v10500_v5 = vpop.f32.mrb[36].mxu0  ;;  %v7249_v0 = vadd.f32 %v7248_v63, %v7218_v37  ;;  %v7319_v20 = vadd.f32 %v7318_v32, %v7288_v45  ;;  %v9277_v39 = vpack.c.bf16 %v7289_v49, %v7288_v45 }
 0x316   : > { %v10700_v25 = vpop.f32.mrb[36].mxu1  ;;  %v5248_v8 = vpop.f32.mrb[37].mxu0  ;;  %v5494_v56 = vadd.f32 %v13446_v46, %v10500_v5  ;;  %9381 = vst [vmem:[%s13079_s28 + $0x108] sm:$0xff] %v9197_v48   ;;  %v5453_v30 = vadd.f32 %v5452_v47, %v5422_v6  ;;  %v5523_v41 = vadd.f32 %v5522_v36, %v5492_v34  ;;  %v5424_v9 = vmul.f32 %v10500_v5, %v10500_v5 }
 0x317   : > { %v7045_v7 = vpop.f32.mrb[37].mxu1  ;;  %v7291_v38 = vadd.f32 %v13446_v46, %v10700_v25  ;;  %v5423_v24 = vmul.f32 %v5248_v8, %v5248_v8  ;;  %v5493_v53 = vadd.f32 %v13446_v46, %v5248_v8  ;;  %9397 = vst [vmem:[%s13079_s28 + $0x188] sm:$0xff] %v9277_v39   ;;  %v7250_v19 = vadd.f32 %v7249_v0, %v7219_v50 }
 0x318   : > { %v7220_v1 = vmul.f32 %v7045_v7, %v7045_v7  ;;  %v7290_v40 = vadd.f32 %v13446_v46, %v7045_v7  ;;  %v7320_v43 = vadd.f32 %v7319_v20, %v7289_v49  ;;  %v7221_v4 = vmul.f32 %v10700_v25, %v10700_v25 }
 0x319   : > { %v10503_v29 = vpop.f32.mrb[38].mxu0  ;;  %v5454_v2 = vadd.f32 %v5453_v30, %v5423_v24  ;;  %v9202_v17 = vpack.c.bf16 %v5494_v56, %v5493_v53  ;;  %v5524_v52 = vadd.f32 %v5523_v41, %v5493_v53 }
 0x31a   : > { %v10703_v28 = vpop.f32.mrb[38].mxu1  ;;  %v5258_v15 = vpop.f32.mrb[39].mxu0  ;;  %v7251_v14 = vadd.f32 %v7250_v19, %v7220_v1  ;;  %v9282_v33 = vpack.c.bf16 %v7291_v38, %v7290_v40  ;;  %v5496_v55 = vadd.f32 %v13446_v46, %v10503_v29  ;;  %v7321_v21 = vadd.f32 %v7320_v43, %v7290_v40 }
 0x31b   : > { %v7055_v12 = vpop.f32.mrb[39].mxu1  ;;  %9382 = vst [vmem:[%s13079_s28 + $0x110] sm:$0xff] %v9202_v17   ;;  %v7293_v58 = vadd.f32 %v13446_v46, %v10703_v28  ;;  %v5425_v57 = vmul.f32 %v5258_v15, %v5258_v15  ;;  %v5455_v60 = vadd.f32 %v5454_v2, %v5424_v9  ;;  %v5495_v42 = vadd.f32 %v13446_v46, %v5258_v15 }
 0x31c   : > { %9398 = vst [vmem:[%s13079_s28 + $0x190] sm:$0xff] %v9282_v33   ;;  %v5525_v54 = vadd.f32 %v5524_v52, %v5494_v56  ;;  %v7222_v62 = vmul.f32 %v7055_v12, %v7055_v12  ;;  %v5426_v18 = vmul.f32 %v10503_v29, %v10503_v29  ;;  %v7252_v44 = vadd.f32 %v7251_v14, %v7221_v4 }
 0x31d   : > { %v7292_v10 = vadd.f32 %v13446_v46, %v7055_v12  ;;  %v7322_v27 = vadd.f32 %v7321_v21, %v7291_v38  ;;  %v5456_v51 = vadd.f32 %v5455_v60, %v5425_v57  ;;  %v9207_v32 = vpack.c.bf16 %v5496_v55, %v5495_v42 }
 0x31e   : > { %v10506_v23 = vpop.f32.mrb[40].mxu0  ;;  %v5526_v63 = vadd.f32 %v5525_v54, %v5495_v42  ;;  %v7223_v13 = vmul.f32 %v10703_v28, %v10703_v28  ;;  %v7253_v34 = vadd.f32 %v7252_v44, %v7222_v62 }
 0x31f   : > { %v10706_v3 = vpop.f32.mrb[40].mxu1  ;;  %v5268_v35 = vpop.f32.mrb[41].mxu0  ;;  %v5498_v16 = vadd.f32 %v13446_v46, %v10506_v23  ;;  %v7323_v49 = vadd.f32 %v7322_v27, %v7292_v10  ;;  %v9287_v59 = vpack.c.bf16 %v7293_v58, %v7292_v10  ;;  %9383 = vst [vmem:[%s13079_s28 + $0x118] sm:$0xff] %v9207_v32   ;;  %v5457_v37 = vadd.f32 %v5456_v51, %v5426_v18 }
 0x320   : > { %v7065_v31 = vpop.f32.mrb[41].mxu1  ;;  %v7295_v61 = vadd.f32 %v13446_v46, %v10706_v3  ;;  %v5427_v22 = vmul.f32 %v5268_v35, %v5268_v35  ;;  %v5497_v45 = vadd.f32 %v13446_v46, %v5268_v35  ;;  %v5527_v47 = vadd.f32 %v5526_v63, %v5496_v55 }
 0x321   : > { %9399 = vst [vmem:[%s13079_s28 + $0x198] sm:$0xff] %v9287_v59   ;;  %v7224_v5 = vmul.f32 %v7065_v31, %v7065_v31  ;;  %v7254_v36 = vadd.f32 %v7253_v34, %v7223_v13  ;;  %v7294_v48 = vadd.f32 %v13446_v46, %v7065_v31  ;;  %v5428_v25 = vmul.f32 %v10506_v23, %v10506_v23 }
 0x322   : > { %v10509_v6 = vpop.f32.mrb[42].mxu0  ;;  %v5458_v8 = vadd.f32 %v5457_v37, %v5427_v22  ;;  %v9212_v50 = vpack.c.bf16 %v5498_v16, %v5497_v45  ;;  %v7324_v39 = vadd.f32 %v7323_v49, %v7293_v58  ;;  %v5528_v7 = vadd.f32 %v5527_v47, %v5497_v45 }
 0x323   : > { %v10709_v0 = vpop.f32.mrb[42].mxu1  ;;  %v5278_v20 = vpop.f32.mrb[43].mxu0  ;;  %v7255_v38 = vadd.f32 %v7254_v36, %v7224_v5  ;;  %v9292_v24 = vpack.c.bf16 %v7295_v61, %v7294_v48  ;;  %v5500_v30 = vadd.f32 %v13446_v46, %v10509_v6  ;;  %v7225_v53 = vmul.f32 %v10706_v3, %v10706_v3 }
 0x324   : > { %v7075_v56 = vpop.f32.mrb[43].mxu1  ;;  %9384 = vst [vmem:[%s13079_s28 + $0x120] sm:$0xff] %v9212_v50   ;;  %v7325_v41 = vadd.f32 %v7324_v39, %v7294_v48  ;;  %v7297_v1 = vadd.f32 %v13446_v46, %v10709_v0  ;;  %v5429_v19 = vmul.f32 %v5278_v20, %v5278_v20  ;;  %v5459_v29 = vadd.f32 %v5458_v8, %v5428_v25 }
 0x325   : > { %9400 = vst [vmem:[%s13079_s28 + $0x1a0] sm:$0xff] %v9292_v24   ;;  %v5499_v9 = vadd.f32 %v13446_v46, %v5278_v20  ;;  %v5529_v2 = vadd.f32 %v5528_v7, %v5498_v16  ;;  %v7226_v17 = vmul.f32 %v7075_v56, %v7075_v56  ;;  %v5430_v15 = vmul.f32 %v10509_v6, %v10509_v6 }
 0x326   : > { %v10512_v40 = vpop.f32.mrb[44].mxu0  ;;  %v7256_v52 = vadd.f32 %v7255_v38, %v7225_v53  ;;  %v7296_v14 = vadd.f32 %v13446_v46, %v7075_v56  ;;  %v7326_v33 = vadd.f32 %v7325_v41, %v7295_v61  ;;  %v5460_v12 = vadd.f32 %v5459_v29, %v5429_v19 }
 0x327   : > { %v10712_v43 = vpop.f32.mrb[44].mxu1  ;;  %v5288_v28 = vpop.f32.mrb[45].mxu0  ;;  %v5530_v4 = vadd.f32 %v5529_v2, %v5499_v9  ;;  %v9217_v21 = vpack.c.bf16 %v5500_v30, %v5499_v9  ;;  %v5502_v58 = vadd.f32 %v13446_v46, %v10512_v40  ;;  %v7227_v57 = vmul.f32 %v10709_v0, %v10709_v0 }
 0x328   : > { %v7085_v55 = vpop.f32.mrb[45].mxu1  ;;  %v7257_v60 = vadd.f32 %v7256_v52, %v7226_v17  ;;  %v7327_v42 = vadd.f32 %v7326_v33, %v7296_v14  ;;  %v9297_v54 = vpack.c.bf16 %v7297_v1, %v7296_v14  ;;  %v7299_v23 = vadd.f32 %v13446_v46, %v10712_v43 }
 0x329   : > { %9385 = vst [vmem:[%s13079_s28 + $0x128] sm:$0xff] %v9217_v21   ;;  %v5431_v18 = vmul.f32 %v5288_v28, %v5288_v28  ;;  %v5461_v44 = vadd.f32 %v5460_v12, %v5430_v15  ;;  %v5501_v10 = vadd.f32 %v13446_v46, %v5288_v28  ;;  %v5531_v35 = vadd.f32 %v5530_v4, %v5500_v30 }
 0x32a   : > { %v10515_v62 = vpop.f32.mrb[46].mxu0  ;;  %9401 = vst [vmem:[%s13079_s28 + $0x1a8] sm:$0xff] %v9297_v54   ;;  %v7228_v51 = vmul.f32 %v7085_v55, %v7085_v55  ;;  %v7258_v63 = vadd.f32 %v7257_v60, %v7227_v57  ;;  %v7298_v32 = vadd.f32 %v13446_v46, %v7085_v55  ;;  %v5432_v31 = vmul.f32 %v10512_v40, %v10512_v40 }
 0x32b   : > { %v10715_v27 = vpop.f32.mrb[46].mxu1  ;;  %v5298_v3 = vpop.f32.mrb[47].mxu0  ;;  %v5462_v13 = vadd.f32 %v5461_v44, %v5431_v18  ;;  %v9222_v34 = vpack.c.bf16 %v5502_v58, %v5501_v10  ;;  %v7328_v49 = vadd.f32 %v7327_v42, %v7297_v1  ;;  %v5532_v59 = vadd.f32 %v5531_v35, %v5501_v10 }
 0x32c   : > { %v7095_v16 = vpop.f32.mrb[47].mxu1  ;;  %v7259_v61 = vadd.f32 %v7258_v63, %v7228_v51  ;;  %v9302_v22 = vpack.c.bf16 %v7299_v23, %v7298_v32  ;;  %v5504_v37 = vadd.f32 %v13446_v46, %v10515_v62  ;;  %v7229_v6 = vmul.f32 %v10712_v43, %v10712_v43 }
 0x32d   : > { %9386 = vst [vmem:[%s13079_s28 + $0x130] sm:$0xff] %v9222_v34   ;;  %v7329_v47 = vadd.f32 %v7328_v49, %v7298_v32  ;;  %v7301_v5 = vadd.f32 %v13446_v46, %v10715_v27  ;;  %v5433_v36 = vmul.f32 %v5298_v3, %v5298_v3  ;;  %v5463_v20 = vadd.f32 %v5462_v13, %v5432_v31 }
 0x32e   : > { %v10518_v45 = vpop.f32.mrb[48].mxu0  ;;  %9402 = vst [vmem:[%s13079_s28 + $0x1b0] sm:$0xff] %v9302_v22   ;;  %v5503_v25 = vadd.f32 %v13446_v46, %v5298_v3  ;;  %v5533_v8 = vadd.f32 %v5532_v59, %v5502_v58  ;;  %v7230_v50 = vmul.f32 %v7095_v16, %v7095_v16  ;;  %v5434_v56 = vmul.f32 %v10515_v62, %v10515_v62 }
 0x32f   : > { %v10718_v48 = vpop.f32.mrb[48].mxu1  ;;  %v5308_v0 = vpop.f32.mrb[49].mxu0  ;;  %v7260_v7 = vadd.f32 %v7259_v61, %v7229_v6  ;;  %v7300_v38 = vadd.f32 %v13446_v46, %v7095_v16  ;;  %v7330_v24 = vadd.f32 %v7329_v47, %v7299_v23  ;;  %v5464_v30 = vadd.f32 %v5463_v20, %v5433_v36 }
 0x330   : > { %v7105_v39 = vpop.f32.mrb[49].mxu1  ;;  %v5534_v53 = vadd.f32 %v5533_v8, %v5503_v25  ;;  %v9227_v41 = vpack.c.bf16 %v5504_v37, %v5503_v25  ;;  %v5506_v1 = vadd.f32 %v13446_v46, %v10518_v45  ;;  %v7231_v40 = vmul.f32 %v10715_v27, %v10715_v27 }
 0x331   : > { %v7261_v29 = vadd.f32 %v7260_v7, %v7230_v50  ;;  %v7331_v9 = vadd.f32 %v7330_v24, %v7300_v38  ;;  %v9307_v2 = vpack.c.bf16 %v7301_v5, %v7300_v38  ;;  %v7303_v28 = vadd.f32 %v13446_v46, %v10718_v48 }
 0x332   : > { %v10521_v19 = vpop.f32.mrb[50].mxu0  ;;  %9387 = vst [vmem:[%s13079_s28 + $0x138] sm:$0xff] %v9227_v41   ;;  %v5435_v15 = vmul.f32 %v5308_v0, %v5308_v0  ;;  %v5465_v52 = vadd.f32 %v5464_v30, %v5434_v56  ;;  %v5505_v14 = vadd.f32 %v13446_v46, %v5308_v0  ;;  %v5535_v55 = vadd.f32 %v5534_v53, %v5504_v37 }
 0x333   : > { %v10721_v17 = vpop.f32.mrb[50].mxu1  ;;  %v5318_v43 = vpop.f32.mrb[51].mxu0  ;;  %9403 = vst [vmem:[%s13079_s28 + $0x1b8] sm:$0xff] %v9307_v2   ;;  %v7232_v12 = vmul.f32 %v7105_v39, %v7105_v39  ;;  %v7262_v4 = vadd.f32 %v7261_v29, %v7231_v40  ;;  %v7302_v21 = vadd.f32 %v13446_v46, %v7105_v39  ;;  %v5436_v58 = vmul.f32 %v10518_v45, %v10518_v45 }
 0x334   : > { %v7115_v33 = vpop.f32.mrb[51].mxu1  ;;  %v5466_v57 = vadd.f32 %v5465_v52, %v5435_v15  ;;  %v9232_v60 = vpack.c.bf16 %v5506_v1, %v5505_v14  ;;  %v7332_v42 = vadd.f32 %v7331_v9, %v7301_v5  ;;  %v5536_v62 = vadd.f32 %v5535_v55, %v5505_v14 }
 0x335   : > { %v7263_v23 = vadd.f32 %v7262_v4, %v7232_v12  ;;  %v9312_v18 = vpack.c.bf16 %v7303_v28, %v7302_v21  ;;  %v5508_v44 = vadd.f32 %v13446_v46, %v10521_v19  ;;  %v7233_v3 = vmul.f32 %v10718_v48, %v10718_v48 }
 0x336   : > { %v10524_v54 = vpop.f32.mrb[52].mxu0  ;;  %9388 = vst [vmem:[%s13079_s28 + $0x140] sm:$0xff] %v9232_v60   ;;  %v7333_v35 = vadd.f32 %v7332_v42, %v7302_v21  ;;  %v7305_v51 = vadd.f32 %v13446_v46, %v10721_v17  ;;  %v5437_v63 = vmul.f32 %v5318_v43, %v5318_v43  ;;  %v5467_v16 = vadd.f32 %v5466_v57, %v5436_v58 }
 0x337   : > { %v10724_v10 = vpop.f32.mrb[52].mxu1  ;;  %v5328_v27 = vpop.f32.mrb[53].mxu0  ;;  %9404 = vst [vmem:[%s13079_s28 + $0x1c0] sm:$0xff] %v9312_v18   ;;  %v5507_v31 = vadd.f32 %v13446_v46, %v5318_v43  ;;  %v5537_v13 = vadd.f32 %v5536_v62, %v5506_v1  ;;  %v7234_v34 = vmul.f32 %v7115_v33, %v7115_v33  ;;  %v5438_v49 = vmul.f32 %v10521_v19, %v10521_v19 }
 0x338   : > { %v7125_v32 = vpop.f32.mrb[53].mxu1  ;;  %v7264_v59 = vadd.f32 %v7263_v23, %v7233_v3  ;;  %v7304_v61 = vadd.f32 %v13446_v46, %v7115_v33  ;;  %v7334_v22 = vadd.f32 %v7333_v35, %v7303_v28  ;;  %v5468_v45 = vadd.f32 %v5467_v16, %v5437_v63 }
 0x339   : > { %v5538_v6 = vadd.f32 %v5537_v13, %v5507_v31  ;;  %v9237_v47 = vpack.c.bf16 %v5508_v44, %v5507_v31  ;;  %v5510_v5 = vadd.f32 %v13446_v46, %v10524_v54  ;;  %v7235_v0 = vmul.f32 %v10721_v17, %v10721_v17 }
 0x33a   : > { %v10527_v37 = vpop.f32.mrb[54].mxu0  ;;  %v7265_v20 = vadd.f32 %v7264_v59, %v7234_v34  ;;  %v7335_v25 = vadd.f32 %v7334_v22, %v7304_v61  ;;  %v9317_v8 = vpack.c.bf16 %v7305_v51, %v7304_v61  ;;  %v7307_v39 = vadd.f32 %v13446_v46, %v10724_v10 }
 0x33b   : > { %v10727_v36 = vpop.f32.mrb[54].mxu1  ;;  %v5338_v48 = vpop.f32.mrb[55].mxu0  ;;  %9389 = vst [vmem:[%s13079_s28 + $0x148] sm:$0xff] %v9237_v47   ;;  %v5439_v56 = vmul.f32 %v5328_v27, %v5328_v27  ;;  %v5469_v7 = vadd.f32 %v5468_v45, %v5438_v49  ;;  %v5509_v38 = vadd.f32 %v13446_v46, %v5328_v27  ;;  %v5539_v24 = vadd.f32 %v5538_v6, %v5508_v44 }
 0x33c   : > { %v7135_v50 = vpop.f32.mrb[55].mxu1  ;;  %9405 = vst [vmem:[%s13079_s28 + $0x1c8] sm:$0xff] %v9317_v8   ;;  %v7236_v30 = vmul.f32 %v7125_v32, %v7125_v32  ;;  %v7266_v53 = vadd.f32 %v7265_v20, %v7235_v0  ;;  %v7306_v41 = vadd.f32 %v13446_v46, %v7125_v32  ;;  %v5440_v19 = vmul.f32 %v10524_v54, %v10524_v54 }
 0x33d   : > { %v5470_v40 = vadd.f32 %v5469_v7, %v5439_v56  ;;  %v9242_v29 = vpack.c.bf16 %v5510_v5, %v5509_v38  ;;  %v7336_v9 = vadd.f32 %v7335_v25, %v7305_v51  ;;  %v5540_v43 = vadd.f32 %v5539_v24, %v5509_v38 }
 0x33e   : > { %v10530_v1 = vpop.f32.mrb[56].mxu0  ;;  %v7267_v28 = vadd.f32 %v7266_v53, %v7236_v30  ;;  %v9322_v15 = vpack.c.bf16 %v7307_v39, %v7306_v41  ;;  %v5512_v52 = vadd.f32 %v13446_v46, %v10527_v37  ;;  %v7237_v33 = vmul.f32 %v10724_v10, %v10724_v10 }
 0x33f   : > { %v10730_v2 = vpop.f32.mrb[56].mxu1  ;;  %v5348_v17 = vpop.f32.mrb[57].mxu0  ;;  %9390 = vst [vmem:[%s13079_s28 + $0x150] sm:$0xff] %v9242_v29   ;;  %v7337_v55 = vadd.f32 %v7336_v9, %v7306_v41  ;;  %v7309_v12 = vadd.f32 %v13446_v46, %v10727_v36  ;;  %v5441_v4 = vmul.f32 %v5338_v48, %v5338_v48  ;;  %v5471_v21 = vadd.f32 %v5470_v40, %v5440_v19 }
 0x340   : > { %v7145_v14 = vpop.f32.mrb[57].mxu1  ;;  %9406 = vst [vmem:[%s13079_s28 + $0x1d0] sm:$0xff] %v9322_v15   ;;  %v5511_v58 = vadd.f32 %v13446_v46, %v5338_v48  ;;  %v5541_v57 = vadd.f32 %v5540_v43, %v5510_v5  ;;  %v7238_v60 = vmul.f32 %v7135_v50, %v7135_v50  ;;  %v5442_v54 = vmul.f32 %v10527_v37, %v10527_v37 }
 0x341   : > { %v7268_v62 = vadd.f32 %v7267_v28, %v7237_v33  ;;  %v7308_v23 = vadd.f32 %v13446_v46, %v7135_v50  ;;  %v7338_v18 = vadd.f32 %v7337_v55, %v7307_v39  ;;  %v5472_v27 = vadd.f32 %v5471_v21, %v5441_v4 }
 0x342   : > { %v10533_v42 = vpop.f32.mrb[58].mxu0  ;;  %v5542_v3 = vadd.f32 %v5541_v57, %v5511_v58  ;;  %v9247_v35 = vpack.c.bf16 %v5512_v52, %v5511_v58  ;;  %v5514_v51 = vadd.f32 %v13446_v46, %v10530_v1  ;;  %v7239_v32 = vmul.f32 %v10727_v36, %v10727_v36 }
 0x343   : > { %v10733_v44 = vpop.f32.mrb[58].mxu1  ;;  %v5358_v10 = vpop.f32.mrb[59].mxu0  ;;  %v7269_v16 = vadd.f32 %v7268_v62, %v7238_v60  ;;  %v7339_v31 = vadd.f32 %v7338_v18, %v7308_v23  ;;  %v9327_v13 = vpack.c.bf16 %v7309_v12, %v7308_v23  ;;  %v7311_v34 = vadd.f32 %v13446_v46, %v10730_v2 }
 0x344   : > { %v7155_v63 = vpop.f32.mrb[59].mxu1  ;;  %9391 = vst [vmem:[%s13079_s28 + $0x158] sm:$0xff] %v9247_v35   ;;  %v5443_v49 = vmul.f32 %v5348_v17, %v5348_v17  ;;  %v5473_v59 = vadd.f32 %v5472_v27, %v5442_v54  ;;  %v5513_v61 = vadd.f32 %v13446_v46, %v5348_v17  ;;  %v5543_v37 = vadd.f32 %v5542_v3, %v5512_v52 }
 0x345   : > { %9407 = vst [vmem:[%s13079_s28 + $0x1d8] sm:$0xff] %v9327_v13   ;;  %v7240_v45 = vmul.f32 %v7145_v14, %v7145_v14  ;;  %v7270_v6 = vadd.f32 %v7269_v16, %v7239_v32  ;;  %v7310_v47 = vadd.f32 %v13446_v46, %v7145_v14  ;;  %v5444_v48 = vmul.f32 %v10530_v1, %v10530_v1 }
 0x346   : > { %v10536_v22 = vpop.f32.mrb[60].mxu0  ;;  %v5474_v0 = vadd.f32 %v5473_v59, %v5443_v49  ;;  %v9252_v20 = vpack.c.bf16 %v5514_v51, %v5513_v61  ;;  %v7340_v25 = vadd.f32 %v7339_v31, %v7309_v12  ;;  %v5544_v50 = vadd.f32 %v5543_v37, %v5513_v61 }
 0x347   : > { %v10736_v5 = vpop.f32.mrb[60].mxu1  ;;  %v5368_v36 = vpop.f32.mrb[61].mxu0  ;;  %v7271_v39 = vadd.f32 %v7270_v6, %v7240_v45  ;;  %v9332_v56 = vpack.c.bf16 %v7311_v34, %v7310_v47  ;;  %v5516_v7 = vadd.f32 %v13446_v46, %v10533_v42  ;;  %v7241_v38 = vmul.f32 %v10730_v2, %v10730_v2 }
 0x348   : > { %v7165_v8 = vpop.f32.mrb[61].mxu1  ;;  %9392 = vst [vmem:[%s13079_s28 + $0x160] sm:$0xff] %v9252_v20   ;;  %v7341_v24 = vadd.f32 %v7340_v25, %v7310_v47  ;;  %v7313_v30 = vadd.f32 %v13446_v46, %v10733_v44  ;;  %v5445_v53 = vmul.f32 %v5358_v10, %v5358_v10  ;;  %v5475_v19 = vadd.f32 %v5474_v0, %v5444_v48 }
 0x349   : > { %9408 = vst [vmem:[%s13079_s28 + $0x1e0] sm:$0xff] %v9332_v56   ;;  %v5515_v1 = vadd.f32 %v13446_v46, %v5358_v10  ;;  %v5545_v40 = vadd.f32 %v5544_v50, %v5514_v51  ;;  %v7242_v29 = vmul.f32 %v7155_v63, %v7155_v63  ;;  %v5446_v43 = vmul.f32 %v10533_v42, %v10533_v42 }
 0x34a   : > { %v10539_v41 = vpop.f32.mrb[62].mxu0  ;;  %v7272_v28 = vadd.f32 %v7271_v39, %v7241_v38  ;;  %v7312_v15 = vadd.f32 %v13446_v46, %v7155_v63  ;;  %v7342_v2 = vadd.f32 %v7341_v24, %v7311_v34  ;;  %v5476_v14 = vadd.f32 %v5475_v19, %v5445_v53 }
 0x34b   : > { %v10739_v9 = vpop.f32.mrb[62].mxu1  ;;  %v5378_v17 = vpop.f32.mrb[63].mxu0  ;;  %v5546_v33 = vadd.f32 %v5545_v40, %v5515_v1  ;;  %v9257_v55 = vpack.c.bf16 %v5516_v7, %v5515_v1  ;;  %v5518_v12 = vadd.f32 %v13446_v46, %v10536_v22  ;;  %v7243_v4 = vmul.f32 %v10733_v44, %v10733_v44 }
 0x34c   : > { %v7175_v52 = vpop.f32.mrb[63].mxu1  ;;  %v7273_v21 = vadd.f32 %v7272_v28, %v7242_v29  ;;  %v7343_v58 = vadd.f32 %v7342_v2, %v7312_v15  ;;  %v9337_v57 = vpack.c.bf16 %v7313_v30, %v7312_v15  ;;  %v7315_v60 = vadd.f32 %v13446_v46, %v10736_v5 }
 0x34d   : > { %9393 = vst [vmem:[%s13079_s28 + $0x168] sm:$0xff] %v9257_v55   ;;  %v5447_v54 = vmul.f32 %v5368_v36, %v5368_v36  ;;  %v5477_v42 = vadd.f32 %v5476_v14, %v5446_v43  ;;  %v5517_v62 = vadd.f32 %v13446_v46, %v5368_v36  ;;  %v5547_v23 = vadd.f32 %v5546_v33, %v5516_v7 }
 0x34e   : > { %9409 = vst [vmem:[%s13079_s28 + $0x1e8] sm:$0xff] %v9337_v57   ;;  %v7244_v18 = vmul.f32 %v7165_v8, %v7165_v8  ;;  %v7274_v10 = vadd.f32 %v7273_v21, %v7243_v4  ;;  %v7314_v27 = vadd.f32 %v13446_v46, %v7165_v8  ;;  %v5448_v44 = vmul.f32 %v10536_v22, %v10536_v22 }
 0x34f   : > { %v5478_v3 = vadd.f32 %v5477_v42, %v5447_v54  ;;  %v9262_v35 = vpack.c.bf16 %v5518_v12, %v5517_v62  ;;  %v7344_v51 = vadd.f32 %v7343_v58, %v7313_v30  ;;  %v5548_v63 = vadd.f32 %v5547_v23, %v5517_v62 }
 0x350   : > { %v7275_v32 = vadd.f32 %v7274_v10, %v7244_v18  ;;  %v9342_v16 = vpack.c.bf16 %v7315_v60, %v7314_v27  ;;  %v5520_v31 = vadd.f32 %v13446_v46, %v10539_v41  ;;  %v7245_v13 = vmul.f32 %v10736_v5, %v10736_v5 }
 0x351   : > { %9394 = vst [vmem:[%s13079_s28 + $0x170] sm:$0xff] %v9262_v35   ;;  %v7345_v34 = vadd.f32 %v7344_v51, %v7314_v27  ;;  %v7317_v49 = vadd.f32 %v13446_v46, %v10739_v9  ;;  %v5449_v59 = vmul.f32 %v5378_v17, %v5378_v17  ;;  %v5479_v61 = vadd.f32 %v5478_v3, %v5448_v44 }
 0x352   : > { %9410 = vst [vmem:[%s13079_s28 + $0x1f0] sm:$0xff] %v9342_v16   ;;  %v5519_v22 = vadd.f32 %v13446_v46, %v5378_v17  ;;  %v5549_v37 = vadd.f32 %v5548_v63, %v5518_v12  ;;  %v7246_v45 = vmul.f32 %v7175_v52, %v7175_v52  ;;  %v7276_v6 = vadd.f32 %v7275_v32, %v7245_v13 }
 0x353   : > { %v7316_v47 = vadd.f32 %v13446_v46, %v7175_v52  ;;  %v7346_v36 = vadd.f32 %v7345_v34, %v7315_v60  ;;  %v5450_v5 = vmul.f32 %v10539_v41, %v10539_v41  ;;  %v5480_v48 = vadd.f32 %v5479_v61, %v5449_v59 }
 0x354   : > { %v5550_v0 = vadd.f32 %v5549_v37, %v5519_v22  ;;  %v9267_v20 = vpack.c.bf16 %v5520_v31, %v5519_v22  ;;  %v7247_v25 = vmul.f32 %v10739_v9, %v10739_v9  ;;  %v7277_v8 = vadd.f32 %v7276_v6, %v7246_v45 }
 0x355   : > { %v7347_v46 = vadd.f32 %v7346_v36, %v7316_v47  ;;  %v9347_v50 = vpack.c.bf16 %v7317_v49, %v7316_v47  ;;  %v5481_v39 = vadd.f32 %v5480_v48, %v5450_v5 }
 0x356   : > { %v5551_v56 = vadd.f32 %v5550_v0, %v5520_v31  ;;  %9395 = vst [vmem:[%s13079_s28 + $0x178] sm:$0xff] %v9267_v20   ;;  %v7278_v7 = vadd.f32 %v7277_v8, %v7247_v25 }
 0x357   : > { %v7348_v38 = vadd.f32 %v7347_v46, %v7317_v49  ;;  %9411 = vst [vmem:[%s13079_s28 + $0x1f8] sm:$0xff] %v9347_v50   ;;  %v5482_v24 = vrot.slane %v5481_v39, 4 }
 0x358   : > { %v5552_v30 = vrot.slane %v5551_v56, 4 }
 0x359   : > { %11326 = shalt.err (!%p11323_p1)
}
 0x35a   : > { %s11327_s29 = scalar_lea.hbm %s13547_s10, 8192  ;;  %s11331_s13 = scalar_lea.hbm %s13670_s3, 16384 }
 0x35b   : > { %p11328_p6 = scmp.ne.s32.totalorder %s13547_s10, %s11327_s29  ;;  %p11332_p4 = scmp.lt.u32.totalorder %s13547_s10, %s13670_s3 }
 0x35c   : > { %p11333_p9 = scmp.lt.u32.totalorder %s11331_s13, %s11327_s29  ;;  %p11335_p11 = scmp.lt.u32.totalorder %s11327_s29, %s13547_s10 }
 0x35d   : > { %p11329_p10 = pnand %p11328_p6, %p13777_p2 }
 0x35e   : > { %p11334_p8 = por %p11333_p9, %p11332_p4 }
 0x35f   : > { %p11330_p3 = pneg %p11329_p10 }
 0x360   : > { %p11336_p13 = por %p11335_p11, %p11334_p8 }
 0x362   : > { %p11337_p5 = pnand %p11336_p13, %p11330_p3 }
 0x364   : > { %11340 = shalt.err (!%p11337_p5)
}
 0x365   : > { %s11469_s25 = smov 64   ;;  %s11470_s15 = smov 4   ;;  %v7279_v53 = vrot.slane %v7278_v7, 4  ;;  %v7349_v41 = vrot.slane %v7348_v38, 4  ;;  %v5483_v19 = vadd.f32 %v5482_v24, %v5481_v39  ;;  %v5553_v1 = vadd.f32 %v5552_v30, %v5551_v56 }
 0x366   : > { %11137 = dma.vmem_to_hbm [thread:$0]  (%p13777_p2), %s13549_s30, 8192, %s13547_s10, %s7520_s8, %s11469_s25, %s11469_s25, %s11470_s15  }
 0x367   : > { %v7280_v40 = vadd.f32 %v7279_v53, %v7278_v7  ;;  %v7350_v29 = vadd.f32 %v7349_v41, %v7348_v38  ;;  %v5484_v9 = vrot.slane %v5483_v19, 2  ;;  %v5554_v17 = vrot.slane %v5553_v1, 2  ;;  %s7752_s17 = sshll.u32 %s11688_s16, 3  ;;  %s7524_s30 = sand.u32 1, %s11534_s24  }
 0x368   : > { %s8896_s10 = sshll.u32 %s11451_s21, 7  ;;  %s312_s8 = scalar_lea.vmem [#allocation9], %s7752_s17 }
 0x369   : > { %v7281_v43 = vrot.slane %v7280_v40, 2  ;;  %v7351_v28 = vrot.slane %v7350_v29, 2  ;;  %v5485_v15 = vadd.f32 %v5484_v9, %v5483_v19  ;;  %v5555_v2 = vadd.f32 %v5554_v17, %v5553_v1  ;;  %s7561_s12 = sshll.u32 %s312_s8, 4  ;;  %s319_s16 = scalar_lea.vmem [#allocation11], %s7752_s17  ;;  %s13587_s12 = int_to_ptr.vmem [resolvable:$true] %s7561_s12 }
 0x36a   : > { %s7575_s29 = sshll.u32 %s319_s16, 4  ;;  %s13585_s13 = scalar_lea.hbm %s13671_s4, %s8896_s10  ;;  %s13594_s29 = int_to_ptr.vmem [resolvable:$true] %s7575_s29 }
 0x36b   : > { %v7282_v52 = vadd.f32 %v7281_v43, %v7280_v40  ;;  %v7352_v14 = vadd.f32 %v7351_v28, %v7350_v29  ;;  %v5486_v33 = vrot.slane %v5485_v15, 1  ;;  %v5556_v55 = vrot.slane %v5555_v2, 1  ;;  %s13592_s7 = scalar_lea.hbm %s13672_s5, %s8896_s10  ;;  %s13596_s11 = scalar_lea.sflag [#allocation10], %s7524_s30 }
 0x36c   : > { %s11341_s25 = scalar_lea.vmem %s13587_s12, 128  ;;  %s11471_s15 = smov [#allocation9]  }
 0x36d   : > { %v7283_v12 = vrot.slane %v7282_v52, 1  ;;  %v7353_v4 = vrot.slane %v7352_v14, 1  ;;  %v5487_v21 = vadd.f32 %v5486_v33, %v5485_v15  ;;  %v5557_v58 = vadd.f32 %v5556_v55, %v5555_v2  ;;  %p11342_p7 = scmp.ne.s32.totalorder %s13587_s12, %s11341_s25  ;;  %s11345_s17 = sshll.u32 %s11471_s15, 4  ;;  %s11346_s17 = int_to_ptr.vmem [resolvable:$false] %s11345_s17 }
 0x36e   : > { %s11347_s26 = scalar_lea.vmem %s11346_s17, 256  ;;  %p11348_p1 = scmp.lt.s32.totalorder %s13587_s12, %s11346_s17 }
 0x36f   : > { %v5488_v57 = vadd.f32 %v5487_v21, %v13410_v11  ;;  %v7284_v60 = vadd.f32 %v7283_v12, %v7282_v52  ;;  %v7354_v54 = vadd.f32 %v7353_v4, %v7352_v14  ;;  %v5558_v42 = vadd.f32 %v5557_v58, %v13412_v26  ;;  %p11343_p12 = pnand %p11342_p7, %p13777_p2  ;;  %p11349_p6 = scmp.lt.s32.totalorder %s11347_s26, %s11341_s25 }
 0x371   : > { %v7285_v62 = vadd.f32 %v7284_v60, %v5488_v57  ;;  %v7355_v23 = vadd.f32 %v7354_v54, %v5558_v42  ;;  %p11344_p0 = pneg %p11343_p12  ;;  %p11350_p10 = por %p11349_p6, %p11348_p1 }
 0x373   : > { %7517 = vst [vmem:[%s312_s8] sm:$0xff] %v7355_v23  ;;  %7518 = vst [vmem:[%s319_s16] sm:$0xff] %v7285_v62  ;;  %p11351_p3 = pnand %p11350_p10, %p11344_p0 }
 0x375   : > { %11354 = shalt.err (!%p11351_p3)
}
 0x376   : > { %s11355_s30 = scalar_lea.hbm %s13585_s13, 128  ;;  %s11359_s16 = scalar_lea.hbm %s13671_s4, 256 }
 0x377   : > { %p11356_p4 = scmp.ne.s32.totalorder %s13585_s13, %s11355_s30  ;;  %p11360_p11 = scmp.lt.u32.totalorder %s13585_s13, %s13671_s4 }
 0x378   : > { %p11361_p13 = scmp.lt.u32.totalorder %s11359_s16, %s11355_s30  ;;  %p11363_p7 = scmp.lt.u32.totalorder %s11355_s30, %s13585_s13 }
 0x379   : > { %p11357_p9 = pnand %p11356_p4, %p13777_p2 }
 0x37a   : > { %p11362_p5 = por %p11361_p13, %p11360_p11 }
 0x37b   : > { %p11358_p8 = pneg %p11357_p9 }
 0x37c   : > { %p11364_p12 = por %p11363_p7, %p11362_p5 }
 0x37e   : > { %p11365_p0 = pnand %p11364_p12, %p11358_p8 }
 0x380   : > { %11368 = shalt.err (!%p11365_p0)
}
 0x381   : > { %11138 = dma.vmem_to_hbm [thread:$0]  (%p13777_p2), %s13587_s12, 128, %s13585_s13, %s13596_s11  }
 0x382   : > { %s11369_s24 = scalar_lea.vmem %s13594_s29, 128  ;;  %s11472_s25 = smov [#allocation11]  }
 0x383   : > { %p11370_p1 = scmp.ne.s32.totalorder %s13594_s29, %s11369_s24  ;;  %s11373_s15 = sshll.u32 %s11472_s25, 4  ;;  %s11374_s15 = int_to_ptr.vmem [resolvable:$false] %s11373_s15 }
 0x384   : > { %s11375_s17 = scalar_lea.vmem %s11374_s15, 256  ;;  %p11376_p3 = scmp.lt.s32.totalorder %s13594_s29, %s11374_s15 }
 0x385   : > { %p11371_p6 = pnand %p11370_p1, %p13777_p2  ;;  %p11377_p4 = scmp.lt.s32.totalorder %s11375_s17, %s11369_s24 }
 0x387   : > { %p11372_p10 = pneg %p11371_p6  ;;  %p11378_p9 = por %p11377_p4, %p11376_p3 }
 0x389   : > { %p11379_p8 = pnand %p11378_p9, %p11372_p10 }
 0x38b   : > { %11382 = shalt.err (!%p11379_p8)
}
 0x38c   : > { %s11383_s12 = scalar_lea.hbm %s13592_s7, 128  ;;  %s11387_s30 = scalar_lea.hbm %s13672_s5, 256 }
 0x38d   : > { %p11384_p11 = scmp.ne.s32.totalorder %s13592_s7, %s11383_s12  ;;  %p11388_p7 = scmp.lt.u32.totalorder %s13592_s7, %s13672_s5 }
 0x38e   : > { %p11389_p12 = scmp.lt.u32.totalorder %s11387_s30, %s11383_s12  ;;  %p11391_p1 = scmp.lt.u32.totalorder %s11383_s12, %s13592_s7 }
 0x38f   : > { %p11385_p13 = pnand %p11384_p11, %p13777_p2 }
 0x390   : > { %p11390_p0 = por %p11389_p12, %p11388_p7 }
 0x391   : > { %p11386_p5 = pneg %p11385_p13 }
 0x392   : > { %p11392_p6 = por %p11391_p1, %p11390_p0 }
 0x394   : > { %p11393_p10 = pnand %p11392_p6, %p11386_p5 }
 0x396   : > { %11396 = shalt.err (!%p11393_p10)
}
 0x397   : > { %11139 = dma.vmem_to_hbm [thread:$0]  (%p13777_p2), %s13594_s29, 128, %s13592_s7, %s13596_s11  }
 0x398 PF: > { %s7587_s16 = sand.u32 1, %s11439_s18   ;;  %p13778_p3 = scmp.ne.s32.totalorder %s13708_s27, 0 }
 0x399   : > { %p13779_p4 = scmp.ge.s32.totalorder %s11459_s23, 2  ;;  %s7588_s28 = scalar_lea.sflag [#allocation4], %s7587_s16 }
 0x39b   : > { %p11155_p9 = pnand %p13779_p4, %p13778_p3 }
 0x39d   : > { %11430 = dma.done.wait (!%p11155_p9), %s7588_s28, 8192  }
 0x39e   : > { %11432 = vsyncadd (!%p11155_p9), %s7588_s28, 4294959104  ;;  %s13780_s21 = sadd.s32 4294967294, %s11459_s23  }
 0x39f   : > { %s7596_s24 = sand.u32 1, %s13780_s21  }
 0x3a0   : > { %s7597_s25 = scalar_lea.sflag [#allocation10], %s7596_s24 }
 0x3a1   : > { %11434 = dma.done.wait (!%p11155_p9), %s7597_s25, 256  }
 0x3a2   : > { %11436 = vsyncadd (!%p11155_p9), %s7597_s25, 4294967040  ;;  %s26_s23 = sadd.s32 1, %s11459_s23   ;;  %s13781_s18 = smov %s11443_s19 }
 0x3a3   : > { %p23_p2 = scmp.ge.s32.totalorder %s26_s23, 4   ;;  %s13782_s19 = smov %s11447_s20 }
 0x3a4   : > { %s13783_s20 = smov %s11647_s14  ;;  %s13784_s21 = smov %s11455_s22 }
 0x3a5   : > { %s13785_s22 = smov %s13787_s9  ;;  %25 = sbr.rel (!%p23_p2) target bundleno = 9 (0x9), region = 139 }
 0x3ac   :  { %7611 = vsyncpa [#allocation3], 1 }
 0x3ad   :  { %7613 = vsyncpa [#allocation3 + $0x1], 1 }
 0x3ae   :  { %7614 = vsyncpa [#allocation6], 1 }
 0x3af   :  { %7615 = vsyncpa [#allocation4], 1 }
 0x3b0   :  { %7617 = vsyncpa [#allocation4 + $0x1], 1 }
 0x3b1   :  { %7618 = vsyncpa [#allocation10], 1 }
 0x3b2   :  { %7620 = vsyncpa [#allocation10 + $0x1], 1 }

</bundles_post_ra>
